<compile_context>
chip_gen: v6e
topology: v6e:2x2x1
jax: 0.10.0
libtpu: 0.0.40
codegen_flags: <defaults>
</compile_context>

<pallas_src>
import functools

import jax
import jax.numpy as jnp
import numpy as np
from jax import lax
from jax.experimental import pallas as pl
from jax.experimental.pallas import tpu as pltpu


def _convlstm_gate_kernel(x_ref, w_ref, b_ref, c_ref, h_out_ref, c_out_ref, *,
                          hidden_dim, num_kh, num_kw, wp, q):
    """One batch element: in-kernel conv (tap-accumulated matmuls) + LSTM gates.

    x_ref     : (1, Ct, S)        padded input, channel-major, flat spatial
    w_ref     : (KH, KW, 4*hd, Ct) conv weight, one (4*hd, Ct) matrix per tap
    b_ref     : (4*hd, 1)         conv bias (f32)
    c_ref     : (1, hd, Q)        current cell state (f32, width-padded flat)
    h_out_ref : (1, hd, Q)
    c_out_ref : (1, hd, Q)        (f32)
    """
    hd = hidden_dim
    n = 4 * hd

    # ---- conv as KH*KW accumulating MXU matmuls (f32 accumulation) ---------
    acc = jnp.zeros((n, q), dtype=jnp.float32)
    for kh in range(num_kh):
        for kw in range(num_kw):
            off = kh * wp + kw                       # static column offset
            x_tap = x_ref[0, :, off:off + q]         # (Ct, Q)
            w_tap = w_ref[kh, kw]                    # (4*hd, Ct)
            acc = acc + jnp.dot(w_tap, x_tap,
                                preferred_element_type=jnp.float32)
    acc = acc + b_ref[...]                           # (4*hd, 1) -> lane broadcast

    # ---- LSTM gates: sublane slices, lane-dense (hd|3*hd, Q) elementwise ----
    s_gates = jax.nn.sigmoid(acc[:3 * hd, :])        # i, f, o in one pass
    i = s_gates[0 * hd:1 * hd]
    f = s_gates[1 * hd:2 * hd]
    o = s_gates[2 * hd:3 * hd]
    g = jnp.tanh(acc[3 * hd:, :])

    c_cur = c_ref[0]                                 # (hd, Q) f32
    c_next = f * c_cur + i * g
    h_next = o * jnp.tanh(c_next)

    h_out_ref[0] = h_next.astype(h_out_ref.dtype)
    c_out_ref[0] = c_next                            # cell state stays f32


def conv_lstm_cell(x, h_cur, c_cur, weight, bias, kernel_size, hidden_dim,
                   compute_dtype=jnp.bfloat16):
    """ConvLSTMCell.forward: returns (h_next, c_next), both NCHW.

    x      : (B, Cin, H, W)
    h_cur  : (B, hd, H, W)
    c_cur  : (B, hd, H, W)
    weight : (4*hd, Cin+hd, KH, KW)   (torch Conv2d layout)
    bias   : (4*hd,)
    """
    B, Cin, H, W = x.shape
    KH, KW = kernel_size
    assert KH % 2 == 1 and KW % 2 == 1, "ConvLSTMCell assumes odd kernel sizes"
    ph, pw = KH // 2, KW // 2

    Ct = Cin + hidden_dim
    N = 4 * hidden_dim
    Wp = W + 2 * pw              # padded width (also the flat column stride)
    Hp = H + 2 * ph + 1          # +1 extra zero row so every tap window is in-bounds
    S = Hp * Wp                  # flat padded spatial extent
    Q = H * Wp                   # flat output columns (incl. 2*pw garbage cols/row)

    # ---- glue (all cheap: concat + pad + free reshapes, NO transposes) -----
    combined = jnp.concatenate([x, h_cur], axis=1)                 # (B, Ct, H, W)
    padded = jnp.pad(combined, ((0, 0), (0, 0), (ph, ph + 1), (pw, pw)))
    x_flat = padded.reshape(B, Ct, S).astype(compute_dtype)        # (B, Ct, S)

    # torch weight (4*hd, Ct, KH, KW) -> per-tap matmul matrices (KH, KW, 4*hd, Ct)
    w_taps = jnp.transpose(weight, (2, 3, 0, 1)).astype(compute_dtype)
    b_col = bias.reshape(N, 1).astype(jnp.float32)

    # cell state: pad width to Wp so it shares the flat column indexing of acc
    c_flat = jnp.pad(c_cur, ((0, 0), (0, 0), (0, 0), (0, Wp - W)))
    c_flat = c_flat.reshape(B, hidden_dim, Q).astype(jnp.float32)  # (B, hd, Q)

    kernel = functools.partial(_convlstm_gate_kernel, hidden_dim=hidden_dim,
                               num_kh=KH, num_kw=KW, wp=Wp, q=Q)

    h_flat, c_next_flat = pl.pallas_call(
        kernel,
        out_shape=(jax.ShapeDtypeStruct((B, hidden_dim, Q), x.dtype),
                   jax.ShapeDtypeStruct((B, hidden_dim, Q), jnp.float32)),
        grid=(B,),
        in_specs=[
            pl.BlockSpec((1, Ct, S), lambda b: (b, 0, 0)),            # padded input
            pl.BlockSpec((KH, KW, N, Ct), lambda b: (0, 0, 0, 0)),    # weights
            pl.BlockSpec((N, 1), lambda b: (0, 0)),                   # bias
            pl.BlockSpec((1, hidden_dim, Q), lambda b: (b, 0, 0)),    # c_cur
        ],
        out_specs=(
            pl.BlockSpec((1, hidden_dim, Q), lambda b: (b, 0, 0)),    # h_next
            pl.BlockSpec((1, hidden_dim, Q), lambda b: (b, 0, 0)),    # c_next (f32)
        ),
        input_output_aliases={3: 1},   # reuse the c buffer for c_next
        compiler_params=pltpu.CompilerParams(
            dimension_semantics=("parallel",),
            vmem_limit_bytes=32 * 1024 * 1024),
    )(x_flat, w_taps, b_col, c_flat)

    # drop the width-padding garbage columns; layout is already NCHW
    h_next = h_flat.reshape(B, hidden_dim, H, Wp)[:, :, :, :W]
    c_next = c_next_flat.reshape(B, hidden_dim, H, Wp)[:, :, :, :W]
    return h_next, c_next.astype(jnp.float32)


def conv_lstm_cell_reference(x, h_cur, c_cur, weight, bias, kernel_size,
                             hidden_dim):
    """Pure-JAX reference mirroring the PyTorch module exactly (NCHW, f32)."""
    combined = jnp.concatenate([x, h_cur], axis=1)
    KH, KW = kernel_size
    conv = lax.conv_general_dilated(
        combined, weight,
        window_strides=(1, 1),
        padding=((KH // 2, KH // 2), (KW // 2, KW // 2)),
        dimension_numbers=("NCHW", "OIHW", "NCHW"))
    conv = conv + bias.reshape(1, -1, 1, 1)
    cc_i, cc_f, cc_o, cc_g = jnp.split(conv, 4, axis=1)
    i = jax.nn.sigmoid(cc_i)
    f = jax.nn.sigmoid(cc_f)
    o = jax.nn.sigmoid(cc_o)
    g = jnp.tanh(cc_g)
    c_next = f * c_cur + i * g
    h_next = o * jnp.tanh(c_next)
    return h_next, c_next


if __name__ == "__main__":
    # Small config consistent with the ConvLSTMCell module.
    B, Cin, H, W = 2, 4, 16, 16
    hidden_dim = 32
    kernel_size = (3, 3)

    key = jax.random.PRNGKey(0)
    kx, khk, kck, kwk, kbk = jax.random.split(key, 5)

    x = jax.random.normal(kx, (B, Cin, H, W), dtype=jnp.float32)
    h_cur = jax.random.normal(khk, (B, hidden_dim, H, W), dtype=jnp.float32)
    c_cur = jax.random.normal(kck, (B, hidden_dim, H, W), dtype=jnp.float32)

    # Deterministic params with the same shapes/scale as nn.Conv2d in the module.
    Ct = Cin + hidden_dim
    fan_in = Ct * kernel_size[0] * kernel_size[1]
    bound = 1.0 / np.sqrt(fan_in)
    weight = jax.random.uniform(kwk, (4 * hidden_dim, Ct, *kernel_size),
                                minval=-bound, maxval=bound, dtype=jnp.float32)
    bias = jax.random.uniform(kbk, (4 * hidden_dim,),
                              minval=-bound, maxval=bound, dtype=jnp.float32)

    h_ref, c_ref = conv_lstm_cell_reference(x, h_cur, c_cur, weight, bias,
                                            kernel_size, hidden_dim)

    # 1) f32 MXU path: tight check of the kernel structure itself.
    cell_f32 = jax.jit(functools.partial(
        conv_lstm_cell, kernel_size=kernel_size, hidden_dim=hidden_dim,
        compute_dtype=jnp.float32))
    h32, c32 = cell_f32(x, h_cur, c_cur, weight, bias)
    jax.block_until_ready((h32, c32))
    np.testing.assert_allclose(np.asarray(h32), np.asarray(h_ref),
                               rtol=1e-5, atol=1e-5)
    np.testing.assert_allclose(np.asarray(c32), np.asarray(c_ref),
                               rtol=1e-5, atol=1e-5)

    # 2) bf16 conv-input path (default / production): looser tolerance is
    #    expected and acceptable (f32 accumulation + f32 gates/cell state).
    cell_bf16 = jax.jit(functools.partial(
        conv_lstm_cell, kernel_size=kernel_size, hidden_dim=hidden_dim))
    h_next, c_next = cell_bf16(x, h_cur, c_cur, weight, bias)
    jax.block_until_ready((h_next, c_next))
    np.testing.assert_allclose(np.asarray(h_next), np.asarray(h_ref),
                               rtol=5e-2, atol=5e-2)
    np.testing.assert_allclose(np.asarray(c_next), np.asarray(c_ref),
                               rtol=5e-2, atol=5e-2)

    print("KERNEL_OK")
</pallas_src>

<mosaic_0001>
module attributes {stable_mosaic.version = 11 : i64} {
  func.func @_convlstm_gate_kernel(%arg0: i32, %arg1: memref<1x36x342xf32, #tpu.memory_space<vmem>>, %arg2: memref<3x3x128x36xf32, #tpu.memory_space<vmem>>, %arg3: memref<128x1xf32, #tpu.memory_space<vmem>>, %arg4: memref<1x32x288xf32, #tpu.memory_space<vmem>>, %arg5: memref<1x32x288xf32, #tpu.memory_space<vmem>>, %arg6: memref<1x32x288xf32, #tpu.memory_space<vmem>>) attributes {dimension_semantics = [#tpu.dimension_semantics<parallel>], iteration_bounds = array<i64: 2>, scalar_prefetch = 0 : i64, scratch_operands = 0 : i64, tpu.core_type = #tpu.core_type<tc>, window_params = [{transform_indices = @transform_0, window_bounds = array<i64: 1, 36, 342>}, {pipeline_mode = #tpu.pipeline_mode<synchronous>, transform_indices = @transform_1, window_bounds = array<i64: 3, 3, 128, 36>}, {pipeline_mode = #tpu.pipeline_mode<synchronous>, transform_indices = @transform_2, window_bounds = array<i64: 128, 1>}, {transform_indices = @transform_3, window_bounds = array<i64: 1, 32, 288>}, {transform_indices = @transform_4, window_bounds = array<i64: 1, 32, 288>}, {transform_indices = @transform_5, window_bounds = array<i64: 1, 32, 288>}]} {
    %cst = arith.constant 0.000000e+00 : f32
    %0 = vector.broadcast %cst : f32 to vector<128x288xf32>
    %c0 = arith.constant 0 : index
    %c0_0 = arith.constant 0 : index
    %c0_1 = arith.constant 0 : index
    %1 = vector.load %arg1[%c0, %c0_0, %c0_1] : memref<1x36x342xf32, #tpu.memory_space<vmem>>, vector<1x36x288xf32>
    %2 = vector.shape_cast %1 : vector<1x36x288xf32> to vector<36x288xf32>
    %c0_2 = arith.constant 0 : index
    %c0_3 = arith.constant 0 : index
    %c0_4 = arith.constant 0 : index
    %c0_5 = arith.constant 0 : index
    %3 = vector.load %arg2[%c0_2, %c0_3, %c0_4, %c0_5] : memref<3x3x128x36xf32, #tpu.memory_space<vmem>>, vector<1x1x128x36xf32>
    %4 = vector.shape_cast %3 : vector<1x1x128x36xf32> to vector<128x36xf32>
    %cst_6 = arith.constant dense<0.000000e+00> : vector<128x288xf32>
    %5 = tpu.matmul %4, %2, %cst_6 {dimension_numbers = #tpu.dot_dimension_numbers<[1], [0], [0], [1], [0, 0, 1, 1], [], []>} : vector<128x36xf32>, vector<36x288xf32>, vector<128x288xf32> -> vector<128x288xf32>
    %6 = arith.addf %0, %5 : vector<128x288xf32>
    %c0_7 = arith.constant 0 : index
    %c0_8 = arith.constant 0 : index
    %c1 = arith.constant 1 : index
    %7 = vector.load %arg1[%c0_7, %c0_8, %c1] : memref<1x36x342xf32, #tpu.memory_space<vmem>>, vector<1x36x288xf32>
    %8 = vector.shape_cast %7 : vector<1x36x288xf32> to vector<36x288xf32>
    %c0_9 = arith.constant 0 : index
    %c1_10 = arith.constant 1 : index
    %c0_11 = arith.constant 0 : index
    %c0_12 = arith.constant 0 : index
    %9 = vector.load %arg2[%c0_9, %c1_10, %c0_11, %c0_12] : memref<3x3x128x36xf32, #tpu.memory_space<vmem>>, vector<1x1x128x36xf32>
    %10 = vector.shape_cast %9 : vector<1x1x128x36xf32> to vector<128x36xf32>
    %cst_13 = arith.constant dense<0.000000e+00> : vector<128x288xf32>
    %11 = tpu.matmul %10, %8, %cst_13 {dimension_numbers = #tpu.dot_dimension_numbers<[1], [0], [0], [1], [0, 0, 1, 1], [], []>} : vector<128x36xf32>, vector<36x288xf32>, vector<128x288xf32> -> vector<128x288xf32>
    %12 = arith.addf %6, %11 : vector<128x288xf32>
    %c0_14 = arith.constant 0 : index
    %c0_15 = arith.constant 0 : index
    %c2 = arith.constant 2 : index
    %13 = vector.load %arg1[%c0_14, %c0_15, %c2] : memref<1x36x342xf32, #tpu.memory_space<vmem>>, vector<1x36x288xf32>
    %14 = vector.shape_cast %13 : vector<1x36x288xf32> to vector<36x288xf32>
    %c0_16 = arith.constant 0 : index
    %c2_17 = arith.constant 2 : index
    %c0_18 = arith.constant 0 : index
    %c0_19 = arith.constant 0 : index
    %15 = vector.load %arg2[%c0_16, %c2_17, %c0_18, %c0_19] : memref<3x3x128x36xf32, #tpu.memory_space<vmem>>, vector<1x1x128x36xf32>
    %16 = vector.shape_cast %15 : vector<1x1x128x36xf32> to vector<128x36xf32>
    %cst_20 = arith.constant dense<0.000000e+00> : vector<128x288xf32>
    %17 = tpu.matmul %16, %14, %cst_20 {dimension_numbers = #tpu.dot_dimension_numbers<[1], [0], [0], [1], [0, 0, 1, 1], [], []>} : vector<128x36xf32>, vector<36x288xf32>, vector<128x288xf32> -> vector<128x288xf32>
    %18 = arith.addf %12, %17 : vector<128x288xf32>
    %c0_21 = arith.constant 0 : index
    %c0_22 = arith.constant 0 : index
    %c18 = arith.constant 18 : index
    %19 = vector.load %arg1[%c0_21, %c0_22, %c18] : memref<1x36x342xf32, #tpu.memory_space<vmem>>, vector<1x36x288xf32>
    %20 = vector.shape_cast %19 : vector<1x36x288xf32> to vector<36x288xf32>
    %c1_23 = arith.constant 1 : index
    %c0_24 = arith.constant 0 : index
    %c0_25 = arith.constant 0 : index
    %c0_26 = arith.constant 0 : index
    %21 = vector.load %arg2[%c1_23, %c0_24, %c0_25, %c0_26] : memref<3x3x128x36xf32, #tpu.memory_space<vmem>>, vector<1x1x128x36xf32>
    %22 = vector.shape_cast %21 : vector<1x1x128x36xf32> to vector<128x36xf32>
    %cst_27 = arith.constant dense<0.000000e+00> : vector<128x288xf32>
    %23 = tpu.matmul %22, %20, %cst_27 {dimension_numbers = #tpu.dot_dimension_numbers<[1], [0], [0], [1], [0, 0, 1, 1], [], []>} : vector<128x36xf32>, vector<36x288xf32>, vector<128x288xf32> -> vector<128x288xf32>
    %24 = arith.addf %18, %23 : vector<128x288xf32>
    %c0_28 = arith.constant 0 : index
    %c0_29 = arith.constant 0 : index
    %c19 = arith.constant 19 : index
    %25 = vector.load %arg1[%c0_28, %c0_29, %c19] : memref<1x36x342xf32, #tpu.memory_space<vmem>>, vector<1x36x288xf32>
    %26 = vector.shape_cast %25 : vector<1x36x288xf32> to vector<36x288xf32>
    %c1_30 = arith.constant 1 : index
    %c1_31 = arith.constant 1 : index
    %c0_32 = arith.constant 0 : index
    %c0_33 = arith.constant 0 : index
    %27 = vector.load %arg2[%c1_30, %c1_31, %c0_32, %c0_33] : memref<3x3x128x36xf32, #tpu.memory_space<vmem>>, vector<1x1x128x36xf32>
    %28 = vector.shape_cast %27 : vector<1x1x128x36xf32> to vector<128x36xf32>
    %cst_34 = arith.constant dense<0.000000e+00> : vector<128x288xf32>
    %29 = tpu.matmul %28, %26, %cst_34 {dimension_numbers = #tpu.dot_dimension_numbers<[1], [0], [0], [1], [0, 0, 1, 1], [], []>} : vector<128x36xf32>, vector<36x288xf32>, vector<128x288xf32> -> vector<128x288xf32>
    %30 = arith.addf %24, %29 : vector<128x288xf32>
    %c0_35 = arith.constant 0 : index
    %c0_36 = arith.constant 0 : index
    %c20 = arith.constant 20 : index
    %31 = vector.load %arg1[%c0_35, %c0_36, %c20] : memref<1x36x342xf32, #tpu.memory_space<vmem>>, vector<1x36x288xf32>
    %32 = vector.shape_cast %31 : vector<1x36x288xf32> to vector<36x288xf32>
    %c1_37 = arith.constant 1 : index
    %c2_38 = arith.constant 2 : index
    %c0_39 = arith.constant 0 : index
    %c0_40 = arith.constant 0 : index
    %33 = vector.load %arg2[%c1_37, %c2_38, %c0_39, %c0_40] : memref<3x3x128x36xf32, #tpu.memory_space<vmem>>, vector<1x1x128x36xf32>
    %34 = vector.shape_cast %33 : vector<1x1x128x36xf32> to vector<128x36xf32>
    %cst_41 = arith.constant dense<0.000000e+00> : vector<128x288xf32>
    %35 = tpu.matmul %34, %32, %cst_41 {dimension_numbers = #tpu.dot_dimension_numbers<[1], [0], [0], [1], [0, 0, 1, 1], [], []>} : vector<128x36xf32>, vector<36x288xf32>, vector<128x288xf32> -> vector<128x288xf32>
    %36 = arith.addf %30, %35 : vector<128x288xf32>
    %c0_42 = arith.constant 0 : index
    %c0_43 = arith.constant 0 : index
    %c36 = arith.constant 36 : index
    %37 = vector.load %arg1[%c0_42, %c0_43, %c36] : memref<1x36x342xf32, #tpu.memory_space<vmem>>, vector<1x36x288xf32>
    %38 = vector.shape_cast %37 : vector<1x36x288xf32> to vector<36x288xf32>
    %c2_44 = arith.constant 2 : index
    %c0_45 = arith.constant 0 : index
    %c0_46 = arith.constant 0 : index
    %c0_47 = arith.constant 0 : index
    %39 = vector.load %arg2[%c2_44, %c0_45, %c0_46, %c0_47] : memref<3x3x128x36xf32, #tpu.memory_space<vmem>>, vector<1x1x128x36xf32>
    %40 = vector.shape_cast %39 : vector<1x1x128x36xf32> to vector<128x36xf32>
    %cst_48 = arith.constant dense<0.000000e+00> : vector<128x288xf32>
    %41 = tpu.matmul %40, %38, %cst_48 {dimension_numbers = #tpu.dot_dimension_numbers<[1], [0], [0], [1], [0, 0, 1, 1], [], []>} : vector<128x36xf32>, vector<36x288xf32>, vector<128x288xf32> -> vector<128x288xf32>
    %42 = arith.addf %36, %41 : vector<128x288xf32>
    %c0_49 = arith.constant 0 : index
    %c0_50 = arith.constant 0 : index
    %c37 = arith.constant 37 : index
    %43 = vector.load %arg1[%c0_49, %c0_50, %c37] : memref<1x36x342xf32, #tpu.memory_space<vmem>>, vector<1x36x288xf32>
    %44 = vector.shape_cast %43 : vector<1x36x288xf32> to vector<36x288xf32>
    %c2_51 = arith.constant 2 : index
    %c1_52 = arith.constant 1 : index
    %c0_53 = arith.constant 0 : index
    %c0_54 = arith.constant 0 : index
    %45 = vector.load %arg2[%c2_51, %c1_52, %c0_53, %c0_54] : memref<3x3x128x36xf32, #tpu.memory_space<vmem>>, vector<1x1x128x36xf32>
    %46 = vector.shape_cast %45 : vector<1x1x128x36xf32> to vector<128x36xf32>
    %cst_55 = arith.constant dense<0.000000e+00> : vector<128x288xf32>
    %47 = tpu.matmul %46, %44, %cst_55 {dimension_numbers = #tpu.dot_dimension_numbers<[1], [0], [0], [1], [0, 0, 1, 1], [], []>} : vector<128x36xf32>, vector<36x288xf32>, vector<128x288xf32> -> vector<128x288xf32>
    %48 = arith.addf %42, %47 : vector<128x288xf32>
    %c0_56 = arith.constant 0 : index
    %c0_57 = arith.constant 0 : index
    %c38 = arith.constant 38 : index
    %49 = vector.load %arg1[%c0_56, %c0_57, %c38] : memref<1x36x342xf32, #tpu.memory_space<vmem>>, vector<1x36x288xf32>
    %50 = vector.shape_cast %49 : vector<1x36x288xf32> to vector<36x288xf32>
    %c2_58 = arith.constant 2 : index
    %c2_59 = arith.constant 2 : index
    %c0_60 = arith.constant 0 : index
    %c0_61 = arith.constant 0 : index
    %51 = vector.load %arg2[%c2_58, %c2_59, %c0_60, %c0_61] : memref<3x3x128x36xf32, #tpu.memory_space<vmem>>, vector<1x1x128x36xf32>
    %52 = vector.shape_cast %51 : vector<1x1x128x36xf32> to vector<128x36xf32>
    %cst_62 = arith.constant dense<0.000000e+00> : vector<128x288xf32>
    %53 = tpu.matmul %52, %50, %cst_62 {dimension_numbers = #tpu.dot_dimension_numbers<[1], [0], [0], [1], [0, 0, 1, 1], [], []>} : vector<128x36xf32>, vector<36x288xf32>, vector<128x288xf32> -> vector<128x288xf32>
    %54 = arith.addf %48, %53 : vector<128x288xf32>
    %c0_63 = arith.constant 0 : index
    %c0_64 = arith.constant 0 : index
    %55 = vector.load %arg3[%c0_63, %c0_64] : memref<128x1xf32, #tpu.memory_space<vmem>>, vector<128x1xf32>
    %56 = vector.broadcast %55 : vector<128x1xf32> to vector<128x288xf32>
    %57 = arith.addf %54, %56 : vector<128x288xf32>
    %58 = vector.extract_strided_slice %57 {offsets = [0, 0], sizes = [96, 288], strides = [1, 1]} : vector<128x288xf32> to vector<96x288xf32>
    %59 = arith.negf %58 : vector<96x288xf32>
    %60 = math.exp %59 : vector<96x288xf32>
    %cst_65 = arith.constant 1.000000e+00 : f32
    %61 = vector.broadcast %cst_65 : f32 to vector<96x288xf32>
    %62 = arith.addf %61, %60 : vector<96x288xf32>
    %63 = arith.divf %61, %62 : vector<96x288xf32>
    %64 = vector.extract_strided_slice %63 {offsets = [0, 0], sizes = [32, 288], strides = [1, 1]} : vector<96x288xf32> to vector<32x288xf32>
    %65 = vector.extract_strided_slice %63 {offsets = [32, 0], sizes = [32, 288], strides = [1, 1]} : vector<96x288xf32> to vector<32x288xf32>
    %66 = vector.extract_strided_slice %63 {offsets = [64, 0], sizes = [32, 288], strides = [1, 1]} : vector<96x288xf32> to vector<32x288xf32>
    %67 = vector.extract_strided_slice %57 {offsets = [96, 0], sizes = [32, 288], strides = [1, 1]} : vector<128x288xf32> to vector<32x288xf32>
    %68 = math.tanh %67 : vector<32x288xf32>
    %c0_66 = arith.constant 0 : index
    %c0_67 = arith.constant 0 : index
    %c0_68 = arith.constant 0 : index
    %69 = vector.load %arg4[%c0_66, %c0_67, %c0_68] : memref<1x32x288xf32, #tpu.memory_space<vmem>>, vector<1x32x288xf32>
    %70 = vector.shape_cast %69 : vector<1x32x288xf32> to vector<32x288xf32>
    %71 = arith.mulf %65, %70 : vector<32x288xf32>
    %72 = arith.mulf %64, %68 : vector<32x288xf32>
    %73 = arith.addf %71, %72 : vector<32x288xf32>
    %74 = math.tanh %73 : vector<32x288xf32>
    %75 = arith.mulf %66, %74 : vector<32x288xf32>
    %c0_69 = arith.constant 0 : index
    %c0_70 = arith.constant 0 : index
    %c0_71 = arith.constant 0 : index
    %76 = vector.load %arg5[%c0_69, %c0_70, %c0_71] : memref<1x32x288xf32, #tpu.memory_space<vmem>>, vector<1x32x288xf32>
    %77 = vector.shape_cast %76 : vector<1x32x288xf32> to vector<32x288xf32>
    %78 = vector.shape_cast %75 : vector<32x288xf32> to vector<1x32x288xf32>
    tpu.vector_store %arg5[%c0_69, %c0_70, %c0_71], %78 {strides = array<i32>} : memref<1x32x288xf32, #tpu.memory_space<vmem>>, vector<1x32x288xf32>,
    %c0_72 = arith.constant 0 : index
    %c0_73 = arith.constant 0 : index
    %c0_74 = arith.constant 0 : index
    %79 = vector.load %arg6[%c0_72, %c0_73, %c0_74] : memref<1x32x288xf32, #tpu.memory_space<vmem>>, vector<1x32x288xf32>
    %80 = vector.shape_cast %79 : vector<1x32x288xf32> to vector<32x288xf32>
    %81 = vector.shape_cast %73 : vector<32x288xf32> to vector<1x32x288xf32>
    tpu.vector_store %arg6[%c0_72, %c0_73, %c0_74], %81 {strides = array<i32>} : memref<1x32x288xf32, #tpu.memory_space<vmem>>, vector<1x32x288xf32>,
    return
  }
  func.func @transform_0(%arg0: i32) -> (i32, i32, i32) {
    %c0_i32 = arith.constant 0 : i32
    %c0_i32_0 = arith.constant 0 : i32
    %c0_i32_1 = arith.constant 0 : i32
    return %arg0, %c0_i32, %c0_i32_0 : i32, i32, i32
  }
  func.func @transform_1(%arg0: i32) -> (i32, i32, i32, i32) {
    %c0_i32 = arith.constant 0 : i32
    %c0_i32_0 = arith.constant 0 : i32
    %c0_i32_1 = arith.constant 0 : i32
    %c0_i32_2 = arith.constant 0 : i32
    %c0_i32_3 = arith.constant 0 : i32
    return %c0_i32, %c0_i32_0, %c0_i32_1, %c0_i32_2 : i32, i32, i32, i32
  }
  func.func @transform_2(%arg0: i32) -> (i32, i32) {
    %c0_i32 = arith.constant 0 : i32
    %c0_i32_0 = arith.constant 0 : i32
    %c0_i32_1 = arith.constant 0 : i32
    return %c0_i32, %c0_i32_0 : i32, i32
  }
  func.func @transform_3(%arg0: i32) -> (i32, i32, i32) {
    %c0_i32 = arith.constant 0 : i32
    %c0_i32_0 = arith.constant 0 : i32
    %c0_i32_1 = arith.constant 0 : i32
    return %arg0, %c0_i32, %c0_i32_0 : i32, i32, i32
  }
  func.func @transform_4(%arg0: i32) -> (i32, i32, i32) {
    %c0_i32 = arith.constant 0 : i32
    %c0_i32_0 = arith.constant 0 : i32
    %c0_i32_1 = arith.constant 0 : i32
    return %arg0, %c0_i32, %c0_i32_0 : i32, i32, i32
  }
  func.func @transform_5(%arg0: i32) -> (i32, i32, i32) {
    %c0_i32 = arith.constant 0 : i32
    %c0_i32_0 = arith.constant 0 : i32
    %c0_i32_1 = arith.constant 0 : i32
    return %arg0, %c0_i32, %c0_i32_0 : i32, i32, i32
  }
}

</mosaic_0001>

<bundles_post_ra>
// kernel: conv_lstm_cell.1
= control target key start
LH: loop header
LB: loop body
LE: loop exit
PB: predicated region body
PF: predicated region fallthrough
CT: control target
= control target key end

     0   :  { %s6271_s18 = smov 0   ;;  %s9527_s0 = inlined_call_operand.vmem [shape: f32[2,36,342], index: 0, kind: input, shape index: {}]   ;;  %s9528_s1 = inlined_call_operand.vmem [shape: f32[3,3,128,36], index: 1, kind: input, shape index: {}]   ;;  %s9529_s2 = inlined_call_operand.vmem [shape: f32[128,1], index: 2, kind: input, shape index: {}]   ;;  %s9530_s3 = inlined_call_operand.vmem [shape: f32[2,32,288], index: 3, kind: input, shape index: {}, may-alias: {3,5}]   ;;  %s9531_s4 = inlined_call_operand.vmem [shape: f32[2,32,288], index: 4, kind: output, shape index: {0}]   ;;  %s9532_s5 = inlined_call_operand.vmem [shape: f32[2,32,288], index: 5, kind: output, shape index: {1}, may-alias: {3,5}]  }
   0x1 LB: > { %s5011_s19 = sadd.s32 4294967295, %s6229_s18   ;;  %p5015_p0 = scmp.ge.s32.totalorder %s6229_s18, 1  ;;  %s6229_s18 = sphi %s6271_s18, %s16_s18  }
   0x2   : > { %p200_p1 = scmp.lt.s32.totalorder %s6229_s18, 3 }
   0x4   : > { %p201_p2 = pnand %p5015_p0, %p200_p1 }
   0x6   : > { %204 = sbr.rel (%p201_p2) target bundleno = 856 (0x358), region = 36 }
   0xb   : > { %p238_p3 = scmp.lt.s32.totalorder %s5011_s19, 1  ;;  %s6231_s24 = smov 127   ;;  %v9533_v12 = vmov 0.0   ;;  %vm351_vm0 = vcmask 1039360   ;;  %vm423_vm1 = vcmask 1043456   ;;  %v5020_v40 = vld [vmem:[%s9528_s1 + $0x80] sm:$0xff] }
   0xc   : > { %494 = vmatprep.mubr.f32.mxu0 %v9533_v12  ;;  %566 = vmatprep.mubr.f32.mxu1 %v9533_v12  ;;  %s6233_s25 = smov 126   ;;  %s6234_s26 = smov 110   ;;  %vm374_vm2 = vcmask 293888   ;;  %v6451_v41 = vld [vmem:[%s9528_s1 + $0xe0] sm:$0xff]  ;;  %v5021_v43 = vld [vmem:[%s9528_s1 + $0x88] sm:$0xff]  ;;  %v5022_v45 = vld [vmem:[%s9528_s1 + $0x90] sm:$0xff] }
   0xd   : > { %s9623_s19 = smov (!%p238_p3, %s5011_s19), 1  ;;  %s6235_s27 = smov 109   ;;  %v6474_v44 = vld [vmem:[%s9528_s1 + $0xe8] sm:$0xff]  ;;  %v6490_v46 = vld [vmem:[%s9528_s1 + $0xf0] sm:$0xff]  ;;  %v5023_v48 = vld [vmem:[%s9528_s1 + $0x98] sm:$0xff]  ;;  %vm1143_vm3 = vcmask 1031168  }
   0xe   : > { %s6006_s20 = smul.u32 120, %s9623_s19  ;;  %s6236_s28 = smov 108   ;;  %v6507_v50 = vld [vmem:[%s9528_s1 + $0xf8] sm:$0xff]  ;;  %v5024_v51 = vld [vmem:[%s9528_s1 + $0xa0] sm:$0xff]  ;;  %v5025_v54 = vld [vmem:[%s9528_s1 + $0xa8] sm:$0xff]  ;;  %vm1621_vm4 = vcmask 900096  }
   0xf   : > { %v5026_v56 = vld [vmem:[%s9528_s1 + $0xb0] sm:$0xff]  ;;  %v5027_v58 = vld [vmem:[%s9528_s1 + $0xb8] sm:$0xff]  ;;  %v5028_v60 = vld [vmem:[%s9528_s1 + $0xc0] sm:$0xff]  ;;  %s6237_s15 = smov 92   ;;  %s6238_s9 = smov 91   ;;  %vm2099_vm5 = vcmask 891904  }
  0x10   : > { %s6285_s23 = scalar_lea.vmem %s9527_s0, %s6006_s20  ;;  %v5029_v63 = vld [vmem:[%s9528_s1 + $0xc8] sm:$0xff]  ;;  %s6239_s29 = smov 90   ;;  %vm2577_vm6 = vcmask 883712   ;;  %vm3055_vm7 = vcmask 752640   ;;  %vm3533_vm8 = vcmask 744448   ;;  %vm4011_vm9 = vcmask 736256  }
  0x11   : > { %v6288_v0 = vld [vmem:[%s6285_s23 + $0x68] sm:$0xf]  ;;  %v6291_v1 = vld [vmem:[%s6285_s23 + $0x60] sm:$0xf]  ;;  %v6298_v2 = vld [vmem:[%s6285_s23 + $0x70] sm:$0xf] }
  0x12   : > { %347 = vrot.lane.b32.xlu0 %v6288_v0, %s6231_s24  ;;  %345 = vrot.lane.b32.xlu1 %v6291_v1, %s6231_s24  ;;  %v6301_v3 = vld [vmem:[%s6285_s23 + $0x50] sm:$0xff]  ;;  %v6308_v4 = vld [vmem:[%s6285_s23 + $0x58] sm:$0xff]  ;;  %s9368_s12 = smul.u32 96, %s9623_s19  ;;  %vm4888_vm10 = vcmask 261120  }
  0x13   : > { %v6311_v5 = vld [vmem:[%s6285_s23 + $0x48] sm:$0xff]  ;;  %v6318_v6 = vld [vmem:[%s6285_s23 + $0x40] sm:$0xff]  ;;  %v6321_v7 = vld [vmem:[%s6285_s23 + $0x38] sm:$0xff] }
  0x14   : > { %v6328_v8 = vld [vmem:[%s6285_s23 + $0x30] sm:$0xff]  ;;  %v6331_v9 = vld [vmem:[%s6285_s23 + $0x20] sm:$0xff]  ;;  %v6338_v10 = vld [vmem:[%s6285_s23 + $0x28] sm:$0xff]  ;;  %s9385_s14 = scalar_lea.vmem %s9530_s3, %s9368_s12  ;;  %s9419_s17 = scalar_lea.vmem %s9532_s5, %s9368_s12 }
  0x15   : > { %v6341_v11 = vld [vmem:[%s6285_s23 + $0x18] sm:$0xff]  ;;  %v6350_v13 = vld [vmem:[%s6285_s23 + $0x10] sm:$0xff]  ;;  %v6353_v14 = vld [vmem:[%s6285_s23 + $0x8] sm:$0xff]  ;;  %s9474_s22 = scalar_lea.vmem %s9531_s4, %s9368_s12 }
  0x16   : > { %349 = vrot.lane.b32.xlu0 %v6298_v2, %s6231_s24  ;;  %341 = vrot.lane.b32.xlu1 %v6301_v3, %s6231_s24  ;;  %v6360_v15 = vld [vmem:[%s6285_s23] sm:$0xff] }
  0x1a   : > { %343 = vrot.lane.b32.xlu0 %v6308_v4, %s6231_s24  ;;  %339 = vrot.lane.b32.xlu1 %v6311_v5, %s6231_s24 }
  0x1e   : > { %337 = vrot.lane.b32.xlu1 %v6318_v6, %s6231_s24  ;;  %335 = vrot.lane.b32.xlu0 %v6321_v7, %s6231_s24 }
  0x22   : > { %333 = vrot.lane.b32.xlu0 %v6328_v8, %s6231_s24  ;;  %329 = vrot.lane.b32.xlu1 %v6331_v9, %s6231_s24 }
  0x26   : > { %331 = vrot.lane.b32.xlu0 %v6338_v10, %s6231_s24  ;;  %327 = vrot.lane.b32.xlu1 %v6341_v11, %s6231_s24 }
  0x2a   : > { %325 = vrot.lane.b32.xlu1 %v6350_v13, %s6231_s24  ;;  %323 = vrot.lane.b32.xlu0 %v6353_v14, %s6231_s24 }
  0x2e   : > { %321 = vrot.lane.b32.xlu0 %v6360_v15, %s6231_s24  ;;  %1139 = vrot.lane.b32.xlu1 %v6288_v0, %s6233_s25 }
  0x32   : > { %1141 = vrot.lane.b32.xlu0 %v6298_v2, %s6233_s25  ;;  %1137 = vrot.lane.b32.xlu1 %v6291_v1, %s6233_s25 }
  0x36   : > { %1133 = vrot.lane.b32.xlu0 %v6301_v3, %s6233_s25  ;;  %1135 = vrot.lane.b32.xlu1 %v6308_v4, %s6233_s25 }
  0x3a   : > { %1131 = vrot.lane.b32.xlu0 %v6311_v5, %s6233_s25  ;;  %1127 = vrot.lane.b32.xlu1 %v6321_v7, %s6233_s25 }
  0x3e   : > { %1129 = vrot.lane.b32.xlu0 %v6318_v6, %s6233_s25  ;;  %1125 = vrot.lane.b32.xlu1 %v6328_v8, %s6233_s25 }
  0x42   : > { %1121 = vrot.lane.b32.xlu0 %v6331_v9, %s6233_s25  ;;  %1123 = vrot.lane.b32.xlu1 %v6338_v10, %s6233_s25 }
  0x46   : > { %1119 = vrot.lane.b32.xlu0 %v6341_v11, %s6233_s25  ;;  %1115 = vrot.lane.b32.xlu1 %v6353_v14, %s6233_s25 }
  0x4a   : > { %1117 = vrot.lane.b32.xlu0 %v6350_v13, %s6233_s25  ;;  %1113 = vrot.lane.b32.xlu1 %v6360_v15, %s6233_s25 }
  0x4e   : > { %1619 = vrot.lane.b32.xlu1 %v6298_v2, %s6234_s26  ;;  %1617 = vrot.lane.b32.xlu0 %v6288_v0, %s6234_s26 }
  0x52   : > { %1615 = vrot.lane.b32.xlu0 %v6291_v1, %s6234_s26  ;;  %1611 = vrot.lane.b32.xlu1 %v6301_v3, %s6234_s26 }
  0x56   : > { %1613 = vrot.lane.b32.xlu0 %v6308_v4, %s6234_s26  ;;  %1609 = vrot.lane.b32.xlu1 %v6311_v5, %s6234_s26 }
  0x5a   : > { %1607 = vrot.lane.b32.xlu1 %v6318_v6, %s6234_s26  ;;  %1605 = vrot.lane.b32.xlu0 %v6321_v7, %s6234_s26 }
  0x5e   : > { %1603 = vrot.lane.b32.xlu0 %v6328_v8, %s6234_s26  ;;  %1599 = vrot.lane.b32.xlu1 %v6331_v9, %s6234_s26 }
  0x62   : > { %1601 = vrot.lane.b32.xlu0 %v6338_v10, %s6234_s26  ;;  %1597 = vrot.lane.b32.xlu1 %v6341_v11, %s6234_s26 }
  0x66   : > { %1593 = vrot.lane.b32.xlu0 %v6353_v14, %s6234_s26  ;;  %1595 = vrot.lane.b32.xlu1 %v6350_v13, %s6234_s26 }
  0x6a   : > { %1591 = vrot.lane.b32.xlu0 %v6360_v15, %s6234_s26  ;;  %2095 = vrot.lane.b32.xlu1 %v6288_v0, %s6235_s27 }
  0x6e   : > { %2097 = vrot.lane.b32.xlu0 %v6298_v2, %s6235_s27  ;;  %2093 = vrot.lane.b32.xlu1 %v6291_v1, %s6235_s27 }
  0x72   : > { %2089 = vrot.lane.b32.xlu0 %v6301_v3, %s6235_s27  ;;  %2091 = vrot.lane.b32.xlu1 %v6308_v4, %s6235_s27 }
  0x76   : > { %2087 = vrot.lane.b32.xlu0 %v6311_v5, %s6235_s27  ;;  %2083 = vrot.lane.b32.xlu1 %v6321_v7, %s6235_s27 }
  0x7a   : > { %2085 = vrot.lane.b32.xlu0 %v6318_v6, %s6235_s27  ;;  %2081 = vrot.lane.b32.xlu1 %v6328_v8, %s6235_s27 }
  0x7e   : > { %2077 = vrot.lane.b32.xlu0 %v6331_v9, %s6235_s27  ;;  %2079 = vrot.lane.b32.xlu1 %v6338_v10, %s6235_s27 }
  0x82   : > { %2075 = vrot.lane.b32.xlu0 %v6341_v11, %s6235_s27  ;;  %2071 = vrot.lane.b32.xlu1 %v6353_v14, %s6235_s27 }
  0x84   : > { %v348_v16 = vpop.permute.xlu0 %347  ;;  %v346_v17 = vpop.permute.xlu1 %345 }
  0x85   : > { %v360_v21 = vsel %vm351_vm0, %v346_v17, %v348_v16 }
  0x86   : > { %2073 = vrot.lane.b32.xlu0 %v6350_v13, %s6235_s27  ;;  %2069 = vrot.lane.b32.xlu1 %v6360_v15, %s6235_s27 }
  0x88   : > { %v6409_v18 = vpop.permute.xlu0 %349  ;;  %v342_v19 = vpop.permute.xlu1 %341 }
  0x89   : > { %v361_v20 = vsel %vm351_vm0, %v348_v16, %v6409_v18  ;;  %v5030_v16 = vld [vmem:[%s9528_s1 + $0xd0] sm:$0xff] }
  0x8a   : > { %5036 = vmatprep.subr.msk.mxu0 %vm423_vm1, %v361_v20  ;;  %5996 = vmatprep.subr.msk.mxu1 %vm423_vm1, %v361_v20 }
  0x8b   : > { %5037 = vmatpush1.msk.msra.mxu0 %vm423_vm1, %v360_v21  ;;  %6001 = vmatpush1.msk.msra.mxu1 %vm423_vm1, %v360_v21 }
  0x8c   : > { %v344_v22 = vpop.permute.xlu0 %343  ;;  %v340_v23 = vpop.permute.xlu1 %339  ;;  %2575 = vrot.lane.b32.xlu1 %v6298_v2, %s6236_s28  ;;  %2573 = vrot.lane.b32.xlu0 %v6288_v0, %s6236_s28 }
  0x8d   : > { %v359_v24 = vsel %vm351_vm0, %v342_v19, %v344_v22  ;;  %v358_v25 = vsel %vm351_vm0, %v340_v23, %v342_v19  ;;  %v5031_v19 = vld [vmem:[%s9528_s1 + $0xd8] sm:$0xff] }
  0x8e   : > { %454 = vmatprep.subr.mxu0 %v359_v24  ;;  %5997 = vmatprep.subr.mxu1 %v359_v24  ;;  %v274_v24 = vld [vmem:[%s9528_s1 + $0x8] sm:$0xff] }
  0x8f   : > { %455 = vmatpush1.msra.mxu0 %v358_v25  ;;  %6002 = vmatpush1.msra.mxu1 %v358_v25 }
  0x90   : > { %v338_v26 = vpop.permute.xlu1 %337  ;;  %v336_v27 = vpop.permute.xlu0 %335  ;;  %2571 = vrot.lane.b32.xlu0 %v6291_v1, %s6236_s28  ;;  %2567 = vrot.lane.b32.xlu1 %v6301_v3, %s6236_s28 }
  0x91   : > { %v357_v28 = vsel %vm351_vm0, %v336_v27, %v338_v26 }
  0x92   : > { %456 = vmatprep.subr.mxu0 %v357_v28  ;;  %5998 = vmatprep.subr.mxu1 %v357_v28  ;;  %v275_v28 = vld [vmem:[%s9528_s1 + $0x10] sm:$0xff] }
  0x94   : > { %v334_v29 = vpop.permute.xlu0 %333  ;;  %v330_v30 = vpop.permute.xlu1 %329  ;;  %2569 = vrot.lane.b32.xlu0 %v6308_v4, %s6236_s28  ;;  %2565 = vrot.lane.b32.xlu1 %v6311_v5, %s6236_s28 }
  0x95   : > { %v356_v31 = vsel %vm351_vm0, %v334_v29, %v336_v27 }
  0x96   : > { %457 = vmatpush1.msra.mxu0 %v356_v31  ;;  %6003 = vmatpush1.msra.mxu1 %v356_v31 }
  0x98   : > { %v332_v32 = vpop.permute.xlu0 %331  ;;  %v328_v33 = vpop.permute.xlu1 %327  ;;  %2563 = vrot.lane.b32.xlu1 %v6318_v6, %s6236_s28  ;;  %2561 = vrot.lane.b32.xlu0 %v6321_v7, %s6236_s28 }
  0x99   : > { %v355_v34 = vsel %vm351_vm0, %v330_v30, %v332_v32  ;;  %v354_v35 = vsel %vm351_vm0, %v328_v33, %v330_v30  ;;  %v276_v30 = vld [vmem:[%s9528_s1 + $0x18] sm:$0xff] }
  0x9a   : > { %458 = vmatprep.subr.mxu0 %v355_v34  ;;  %5999 = vmatprep.subr.mxu1 %v355_v34 }
  0x9b   : > { %459 = vmatpush1.msra.mxu0 %v354_v35  ;;  %6004 = vmatpush1.msra.mxu1 %v354_v35  ;;  %v278_v35 = vld [vmem:[%s9528_s1 + $0x28] sm:$0xff] }
  0x9c   : > { %v326_v36 = vpop.permute.xlu1 %325  ;;  %v324_v37 = vpop.permute.xlu0 %323  ;;  %2559 = vrot.lane.b32.xlu0 %v6328_v8, %s6236_s28  ;;  %2555 = vrot.lane.b32.xlu1 %v6331_v9, %s6236_s28 }
  0x9d   : > { %v353_v38 = vsel %vm351_vm0, %v324_v37, %v326_v36 }
  0x9e   : > { %460 = vmatprep.subr.mxu0 %v353_v38  ;;  %6000 = vmatprep.subr.mxu1 %v353_v38 }
  0xa0   : > { %v322_v39 = vpop.permute.xlu0 %321  ;;  %2557 = vrot.lane.b32.xlu0 %v6338_v10, %s6236_s28  ;;  %2553 = vrot.lane.b32.xlu1 %v6341_v11, %s6236_s28  ;;  %v6501_v49 = vpop.permute.xlu1 %1139 }
  0xa1   : > { %v352_v42 = vsel %vm351_vm0, %v322_v39, %v324_v37  ;;  %v279_v37 = vld [vmem:[%s9528_s1 + $0x30] sm:$0xff] }
  0xa2   : > { %461 = vmatpush1.msra.mxu0 %v352_v42  ;;  %6005 = vmatpush1.msra.mxu1 %v352_v42  ;;  %v281_v42 = vld [vmem:[%s9528_s1 + $0x40] sm:$0xff] }
  0xa3   : > { %5038 = vmatmul.mubr.msk.f32.vlgmr.msra.gmra.mxu0 %vm374_vm2, %v5020_v40  ;;  %5050 = vmatmul.mubr.msk.f32.vlgmr.msra.gmra.mxu1 %vm374_vm2, %v6451_v41 }
  0xa4   : > { %5690 = vmatprep.subr.msk.mxu1 %vm423_vm1, %v6409_v18  ;;  %5724 = vmatprep.subr.msk.mxu0 %vm423_vm1, %v6298_v2  ;;  %v6493_v47 = vpop.permute.xlu0 %1141  ;;  %v6525_v53 = vpop.permute.xlu1 %1137 }
  0xa5   : > { %5691 = vmatpush3.msk.msra.mxu1 %vm423_vm1, %v6409_v18  ;;  %500 = vmatprep.mubr.f32.mxu0 %v9533_v12  ;;  %v1153_v61 = vsel %vm1143_vm3, %v6501_v49, %v6493_v47 }
  0xa6   : > { %5692 = vmatprep.subr.mxu1 %v344_v22  ;;  %572 = vmatprep.mubr.f32.mxu1 %v9533_v12 }
  0xa7   : > { %5693 = vmatpush3.msra.mxu1 %v344_v22  ;;  %5725 = vmatpush3.msk.msra.mxu0 %vm423_vm1, %v6298_v2  ;;  %v273_v22 = vld [vmem:[%s9528_s1] sm:$0xff] }
  0xa8   : > { %5039 = vmatmul.mubr.msk.f32.gmra.mxu0 %vm374_vm2, %v5021_v43  ;;  %5051 = vmatmul.mubr.msk.f32.gmra.mxu1 %vm374_vm2, %v6474_v44  ;;  %v6520_v52 = vpop.permute.xlu0 %1133  ;;  %v6550_v57 = vpop.permute.xlu1 %1135 }
  0xa9   : > { %5694 = vmatprep.subr.mxu1 %v338_v26  ;;  %506 = vmatprep.mubr.f32.mxu0 %v9533_v12  ;;  %v1151_v29 = vsel %vm1143_vm3, %v6520_v52, %v6550_v57 }
  0xaa   : > { %5695 = vmatpush3.msra.mxu1 %v338_v26  ;;  %578 = vmatprep.mubr.f32.mxu1 %v9533_v12  ;;  %v1152_v26 = vsel %vm1143_vm3, %v6525_v53, %v6501_v49  ;;  %v6751_v53 = vld [vmem:[%s9528_s1 + $0x60] sm:$0xff] }
  0xab   : > { %5696 = vmatprep.subr.mxu1 %v332_v32  ;;  %5726 = vmatprep.subr.mxu0 %v6308_v4 }
  0xac   : > { %5697 = vmatpush3.msra.mxu1 %v332_v32  ;;  %5040 = vmatmul.mubr.msk.f32.gmra.mxu0 %vm374_vm2, %v5022_v45  ;;  %v6541_v55 = vpop.permute.xlu0 %1131  ;;  %v6575_v62 = vpop.permute.xlu1 %1127  ;;  %v277_v32 = vld [vmem:[%s9528_s1 + $0x20] sm:$0xff] }
  0xad   : > { %5052 = vmatmul.mubr.msk.f32.gmra.mxu1 %vm374_vm2, %v6490_v46  ;;  %5698 = vmatprep.subr.mxu1 %v326_v36  ;;  %v1150_v31 = vsel %vm1143_vm3, %v6541_v55, %v6520_v52  ;;  %v6767_v55 = vld [vmem:[%s9528_s1 + $0x68] sm:$0xff] }
  0xae   : > { %5699 = vmatpush3.msra.mxu1 %v326_v36  ;;  %512 = vmatprep.mubr.f32.mxu0 %v9533_v12 }
  0xaf   : > { %584 = vmatprep.mubr.f32.mxu1 %v9533_v12  ;;  %5727 = vmatpush3.msra.mxu0 %v6308_v4 }
  0xb0   : > { %5041 = vmatmul.mubr.msk.f32.gmra.mxu0 %vm374_vm2, %v5023_v48  ;;  %5071 = vmatprep.subr.msk.mxu1 %vm423_vm1, %v6288_v0  ;;  %v6563_v59 = vpop.permute.xlu0 %1129  ;;  %v1126_v18 = vpop.permute.xlu1 %1125 }
  0xb1   : > { %5053 = vmatmul.mubr.msk.f32.gmra.mxu1 %vm374_vm2, %v6507_v50  ;;  %518 = vmatprep.mubr.f32.mxu0 %v9533_v12  ;;  %v1149_v34 = vsel %vm1143_vm3, %v6575_v62, %v6563_v59  ;;  %v1148_v38 = vsel %vm1143_vm3, %v1126_v18, %v6575_v62 }
  0xb2   : > { %5700 = vmatprep.mubr.msk.f32.mxu1 %vm374_vm2, %v5020_v40  ;;  %5728 = vmatprep.subr.mxu0 %v6318_v6 }
  0xb3   : > { %5729 = vmatpush3.msra.mxu0 %v6318_v6  ;;  %2549 = vrot.lane.b32.xlu0 %v6353_v14, %s6236_s28 }
  0xb4   : > { %5042 = vmatmul.mubr.msk.f32.gmra.mxu0 %vm374_vm2, %v5024_v51  ;;  %5730 = vmatprep.subr.mxu0 %v6338_v10  ;;  %v6591_v17 = vpop.permute.xlu0 %1121  ;;  %v6613_v21 = vpop.permute.xlu1 %1123 }
  0xb5   : > { %5701 = vmatmul.mubr.msk.f32.vlgmr.msra.gmra.mxu1 %vm374_vm2, %v5021_v43  ;;  %524 = vmatprep.mubr.f32.mxu0 %v9533_v12  ;;  %v1147_v40 = vsel %vm1143_vm3, %v6591_v17, %v6613_v21 }
  0xb6   : > { %5072 = vmatpush1.msk.msra.mxu1 %vm423_vm1, %v6291_v1  ;;  %5703 = vmatprep.mubr.msk.f32.mxu1 %vm374_vm2, %v5022_v45 }
  0xb7   : > { %814 = vmatprep.subr.mxu1 %v6301_v3  ;;  %5731 = vmatpush3.msra.mxu0 %v6338_v10 }
  0xb8   : > { %5043 = vmatmul.mubr.msk.f32.gmra.mxu0 %vm374_vm2, %v5025_v54  ;;  %815 = vmatpush1.msra.mxu1 %v6311_v5  ;;  %v1120_v20 = vpop.permute.xlu0 %1119  ;;  %v1116_v25 = vpop.permute.xlu1 %1115 }
  0xb9   : > { %5704 = vmatmul.mubr.msk.f32.gmra.mxu1 %vm374_vm2, %v5023_v48  ;;  %530 = vmatprep.mubr.f32.mxu0 %v9533_v12  ;;  %v1146_v43 = vsel %vm1143_vm3, %v1120_v20, %v6591_v17  ;;  %v6728_v48 = vld [vmem:[%s9528_s1 + $0x50] sm:$0xff] }
  0xba   : > { %5706 = vmatprep.mubr.msk.f32.mxu1 %vm374_vm2, %v5024_v51  ;;  %816 = vmatprep.subr.mxu1 %v6321_v7  ;;  %v6842_v17 = vld [vmem:[%s9528_s1 + $0x110] sm:$0xff] }
  0xbb   : > { %817 = vmatpush1.msra.mxu1 %v6328_v8  ;;  %5732 = vmatprep.subr.mxu0 %v6350_v13 }
  0xbc   : > { %5044 = vmatmul.mubr.msk.f32.gmra.mxu0 %vm374_vm2, %v5026_v56  ;;  %818 = vmatprep.subr.mxu1 %v6331_v9  ;;  %v6628_v23 = vpop.permute.xlu0 %1117  ;;  %v1114_v33 = vpop.permute.xlu1 %1113 }
  0xbd   : > { %5707 = vmatmul.mubr.msk.f32.gmra.mxu1 %vm374_vm2, %v5025_v54  ;;  %536 = vmatprep.mubr.f32.mxu0 %v9533_v12  ;;  %v1145_v45 = vsel %vm1143_vm3, %v1116_v25, %v6628_v23  ;;  %v1144_v49 = vsel %vm1143_vm3, %v1114_v33, %v1116_v25 }
  0xbe   : > { %5709 = vmatprep.mubr.msk.f32.mxu1 %vm374_vm2, %v5026_v56  ;;  %819 = vmatpush1.msra.mxu1 %v6341_v11  ;;  %v6773_v56 = vld [vmem:[%s9528_s1 + $0x70] sm:$0xff] }
  0xbf   : > { %820 = vmatprep.subr.mxu1 %v6353_v14  ;;  %5733 = vmatpush3.msra.mxu0 %v6350_v13 }
  0xc0   : > { %5045 = vmatmul.mubr.msk.f32.gmra.mxu0 %vm374_vm2, %v5027_v58  ;;  %821 = vmatpush1.msra.mxu1 %v6360_v15  ;;  %v6645_v27 = vpop.permute.xlu0 %1617  ;;  %v6692_v39 = vpop.permute.xlu1 %1619 }
  0xc1   : > { %5710 = vmatmul.mubr.msk.f32.gmra.mxu1 %vm374_vm2, %v5027_v58  ;;  %542 = vmatprep.mubr.f32.mxu0 %v9533_v12  ;;  %v1631_v51 = vsel %vm1621_vm4, %v6645_v27, %v6692_v39  ;;  %v6789_v58 = vld [vmem:[%s9528_s1 + $0x78] sm:$0xff] }
  0xc2   : > { %5712 = vmatprep.mubr.msk.f32.mxu1 %vm374_vm2, %v5028_v60  ;;  %5122 = vmatprep.subr.msk.mxu0 %vm423_vm1, %v1153_v61 }
  0xc3   : > { %5758 = vmatprep.subr.msk.mxu1 %vm423_vm1, %v6493_v47  ;;  %2551 = vrot.lane.b32.xlu1 %v6350_v13, %s6236_s28 }
  0xc4   : > { %5046 = vmatmul.mubr.msk.f32.gmra.mxu0 %vm374_vm2, %v5028_v60  ;;  %2547 = vrot.lane.b32.xlu0 %v6360_v15, %s6236_s28  ;;  %v6682_v36 = vpop.permute.xlu0 %1615  ;;  %v6805_v60 = vld [vmem:[%s9528_s1 + $0x100] sm:$0xff] }
  0xc5   : > { %5713 = vmatmul.mubr.msk.f32.gmra.mxu1 %vm374_vm2, %v5029_v63  ;;  %548 = vmatprep.mubr.f32.mxu0 %v9533_v12 }
  0xc6   : > { %5715 = vmatprep.mubr.msk.f32.mxu1 %vm374_vm2, %v5030_v16 }
  0xc7   : > { %3051 = vrot.lane.b32.xlu1 %v6288_v0, %s6237_s15 }
  0xc8   : > { %5047 = vmatmul.mubr.msk.f32.gmra.mxu0 %vm374_vm2, %v5029_v63  ;;  %3053 = vrot.lane.b32.xlu0 %v6298_v2, %s6237_s15  ;;  %v6824_v63 = vld [vmem:[%s9528_s1 + $0x108] sm:$0xff] }
  0xc9   : > { %5716 = vmatmul.mubr.msk.f32.gmra.mxu1 %vm374_vm2, %v5031_v19  ;;  %554 = vmatprep.mubr.f32.mxu0 %v9533_v12 }
  0xca   : > { %5718 = vmatprep.mubr.msk.f32.mxu1 %vm374_vm2, %v6451_v41  ;;  %v280_v41 = vld [vmem:[%s9528_s1 + $0x38] sm:$0xff] }
  0xcb   : > { %3049 = vrot.lane.b32.xlu1 %v6291_v1, %s6237_s15 }
  0xcc   : > { %5048 = vmatmul.mubr.msk.f32.gmra.mxu0 %vm374_vm2, %v5030_v16  ;;  %3045 = vrot.lane.b32.xlu0 %v6301_v3, %s6237_s15 }
  0xcd   : > { %5719 = vmatmul.mubr.msk.f32.gmra.mxu1 %vm374_vm2, %v6474_v44  ;;  %560 = vmatprep.mubr.f32.mxu0 %v9533_v12  ;;  %v6711_v44 = vpop.permute.xlu0 %1613 }
  0xce   : > { %5721 = vmatprep.mubr.msk.f32.mxu1 %vm374_vm2, %v6490_v46  ;;  %v282_v46 = vld [vmem:[%s9528_s1 + $0x48] sm:$0xff] }
  0xcf   : > { %3047 = vrot.lane.b32.xlu1 %v6308_v4, %s6237_s15 }
  0xd0   : > { %5049 = vmatmul.mubr.msk.f32.gmra.mxu0 %vm374_vm2, %v5031_v19  ;;  %3043 = vrot.lane.b32.xlu0 %v6311_v5, %s6237_s15  ;;  %v6861_v19 = vld [vmem:[%s9528_s1 + $0x118] sm:$0xff] }
  0xd1   : > { %5722 = vmatmul.mubr.msk.f32.gmra.mxu1 %vm374_vm2, %v6507_v50  ;;  %5734 = vmatprep.mubr.msk.f32.mxu0 %vm374_vm2, %v273_v22  ;;  %v6740_v50 = vld [vmem:[%s9528_s1 + $0x58] sm:$0xff]  ;;  %v6745_v52 = vpop.permute.xlu0 %1605 }
  0xd2   : > { %854 = vmatprep.mubr.f32.mxu1 %v9533_v12 }
  0xd3   : > { %3039 = vrot.lane.b32.xlu1 %v6321_v7, %s6237_s15 }
  0xd4   : > { %5735 = vmatmul.mubr.msk.f32.vlgmr.msra.gmra.mxu0 %vm374_vm2, %v274_v24  ;;  %3041 = vrot.lane.b32.xlu0 %v6318_v6, %s6237_s15 }
  0xd5   : > { %5073 = vmatmul.mubr.msk.f32.vlgmr.msra.gmra.mxu1 %vm374_vm2, %v273_v22  ;;  %5123 = vmatpush1.msk.msra.mxu0 %vm423_vm1, %v1152_v26  ;;  %v6882_v22 = vld [vmem:[%s9528_s1 + $0x120] sm:$0xff]  ;;  %v5111_v26 = vld [vmem:[%s9528_s1 + $0x128] sm:$0xff] }
  0xd6   : > { %5759 = vmatpush3.msk.msra.mxu1 %vm423_vm1, %v6493_v47  ;;  %860 = vmatprep.mubr.f32.mxu1 %v9533_v12  ;;  %v6722_v47 = vpop.permute.xlu1 %1611 }
  0xd7   : > { %5737 = vmatprep.mubr.msk.f32.mxu0 %vm374_vm2, %v275_v28  ;;  %1244 = vmatprep.subr.mxu0 %v1151_v29  ;;  %v5113_v29 = vld [vmem:[%s9528_s1 + $0x138] sm:$0xff]  ;;  %v1629_v33 = vsel %vm1621_vm4, %v6722_v47, %v6711_v44 }
  0xd8   : > { %5738 = vmatmul.mubr.msk.f32.gmra.mxu0 %vm374_vm2, %v276_v30  ;;  %5760 = vmatprep.subr.mxu1 %v6550_v57 }
  0xd9   : > { %5074 = vmatmul.mubr.msk.f32.gmra.mxu1 %vm374_vm2, %v274_v24  ;;  %1245 = vmatpush1.msra.mxu0 %v1150_v31 }
  0xda   : > { %866 = vmatprep.mubr.f32.mxu1 %v9533_v12  ;;  %5740 = vmatprep.mubr.msk.f32.mxu0 %vm374_vm2, %v277_v32  ;;  %v6756_v54 = vpop.permute.xlu1 %1609 }
  0xdb   : > { %5761 = vmatpush3.msra.mxu1 %v6550_v57  ;;  %1246 = vmatprep.subr.mxu0 %v1149_v34  ;;  %v6777_v57 = vpop.permute.xlu0 %1603  ;;  %v1628_v34 = vsel %vm1621_vm4, %v6756_v54, %v6722_v47  ;;  %v5162_v54 = vld [vmem:[%s9528_s1 + $0x1a8] sm:$0xff] }
  0xdc   : > { %5741 = vmatmul.mubr.msk.f32.gmra.mxu0 %vm374_vm2, %v278_v35  ;;  %5762 = vmatprep.subr.mxu1 %v6563_v59 }
  0xdd   : > { %5075 = vmatmul.mubr.msk.f32.gmra.mxu1 %vm374_vm2, %v275_v28  ;;  %5743 = vmatprep.mubr.msk.f32.mxu0 %vm374_vm2, %v279_v37  ;;  %v5112_v28 = vld [vmem:[%s9528_s1 + $0x130] sm:$0xff] }
  0xde   : > { %872 = vmatprep.mubr.f32.mxu1 %v9533_v12  ;;  %1247 = vmatpush1.msra.mxu0 %v1148_v38  ;;  %v5116_v38 = vld [vmem:[%s9528_s1 + $0x150] sm:$0xff] }
  0xdf   : > { %5763 = vmatpush3.msra.mxu1 %v6563_v59  ;;  %1248 = vmatprep.subr.mxu0 %v1147_v40  ;;  %v6791_v59 = vpop.permute.xlu1 %1607  ;;  %v6807_v61 = vpop.permute.xlu0 %1601 }
  0xe0   : > { %5744 = vmatmul.mubr.msk.f32.gmra.mxu0 %vm374_vm2, %v280_v41  ;;  %5764 = vmatprep.subr.mxu1 %v6613_v21 }
  0xe1   : > { %5076 = vmatmul.mubr.msk.f32.gmra.mxu1 %vm374_vm2, %v276_v30  ;;  %5746 = vmatprep.mubr.msk.f32.mxu0 %vm374_vm2, %v281_v42  ;;  %v5114_v30 = vld [vmem:[%s9528_s1 + $0x140] sm:$0xff] }
  0xe2   : > { %878 = vmatprep.mubr.f32.mxu1 %v9533_v12  ;;  %1249 = vmatpush1.msra.mxu0 %v1146_v43 }
  0xe3   : > { %5765 = vmatpush3.msra.mxu1 %v6613_v21  ;;  %1250 = vmatprep.subr.mxu0 %v1145_v45  ;;  %v6812_v62 = vpop.permute.xlu1 %1599  ;;  %v6829_v16 = vpop.permute.xlu0 %1593 }
  0xe4   : > { %5747 = vmatmul.mubr.msk.f32.gmra.mxu0 %vm374_vm2, %v282_v46  ;;  %5766 = vmatprep.subr.mxu1 %v6628_v23 }
  0xe5   : > { %5077 = vmatmul.mubr.msk.f32.gmra.mxu1 %vm374_vm2, %v277_v32  ;;  %5749 = vmatprep.mubr.msk.f32.mxu0 %vm374_vm2, %v6728_v48 }
  0xe6   : > { %884 = vmatprep.mubr.f32.mxu1 %v9533_v12  ;;  %1251 = vmatpush1.msra.mxu0 %v1144_v49  ;;  %v5159_v49 = vld [vmem:[%s9528_s1 + $0x190] sm:$0xff] }
  0xe7   : > { %5767 = vmatpush3.msra.mxu1 %v6628_v23  ;;  %5792 = vmatprep.subr.msk.mxu0 %vm423_vm1, %v6692_v39  ;;  %v6844_v18 = vpop.permute.xlu1 %1597  ;;  %v6863_v20 = vpop.permute.xlu0 %1591 }
  0xe8   : > { %5750 = vmatmul.mubr.msk.f32.gmra.mxu0 %vm374_vm2, %v6740_v50  ;;  %5173 = vmatprep.subr.msk.mxu1 %vm423_vm1, %v1631_v51  ;;  %v1622_v40 = vsel %vm1621_vm4, %v6863_v20, %v6829_v16 }
  0xe9   : > { %5078 = vmatmul.mubr.msk.f32.gmra.mxu1 %vm374_vm2, %v278_v35  ;;  %5752 = vmatprep.mubr.msk.f32.mxu0 %vm374_vm2, %v6751_v53 }
  0xea   : > { %890 = vmatprep.mubr.f32.mxu1 %v9533_v12  ;;  %3037 = vrot.lane.b32.xlu1 %v6328_v8, %s6237_s15 }
  0xeb   : > { %3033 = vrot.lane.b32.xlu0 %v6331_v9, %s6237_s15  ;;  %v6868_v21 = vpop.permute.xlu1 %1595  ;;  %v6884_v23 = vpop.permute.xlu0 %2097 }
  0xec   : > { %5753 = vmatmul.mubr.msk.f32.gmra.mxu0 %vm374_vm2, %v6767_v55 }
  0xed   : > { %5079 = vmatmul.mubr.msk.f32.gmra.mxu1 %vm374_vm2, %v279_v37  ;;  %5755 = vmatprep.mubr.msk.f32.mxu0 %vm374_vm2, %v6773_v56 }
  0xee   : > { %896 = vmatprep.mubr.f32.mxu1 %v9533_v12  ;;  %3035 = vrot.lane.b32.xlu1 %v6338_v10, %s6237_s15 }
  0xef   : > { %3031 = vrot.lane.b32.xlu0 %v6341_v11, %s6237_s15  ;;  %v6889_v24 = vpop.permute.xlu1 %2095  ;;  %v6944_v31 = vpop.permute.xlu0 %2089 }
  0xf0   : > { %5756 = vmatmul.mubr.msk.f32.gmra.mxu0 %vm374_vm2, %v6789_v58  ;;  %v2109_v25 = vsel %vm2099_vm5, %v6889_v24, %v6884_v23 }
  0xf1   : > { %5080 = vmatmul.mubr.msk.f32.gmra.mxu1 %vm374_vm2, %v280_v41  ;;  %1284 = vmatprep.mubr.f32.mxu0 %v9533_v12  ;;  %v5117_v41 = vld [vmem:[%s9528_s1 + $0x158] sm:$0xff] }
  0xf2   : > { %902 = vmatprep.mubr.f32.mxu1 %v9533_v12  ;;  %3027 = vrot.lane.b32.xlu1 %v6353_v14, %s6237_s15 }
  0xf3   : > { %3029 = vrot.lane.b32.xlu0 %v6350_v13, %s6237_s15  ;;  %v6948_v32 = vpop.permute.xlu1 %2093  ;;  %v6979_v35 = vpop.permute.xlu0 %2087 }
  0xf4   : > { %5124 = vmatmul.mubr.msk.f32.vlgmr.msra.gmra.mxu0 %vm374_vm2, %v6805_v60 }
  0xf5   : > { %5081 = vmatmul.mubr.msk.f32.gmra.mxu1 %vm374_vm2, %v281_v42  ;;  %5793 = vmatpush3.msk.msra.mxu0 %vm423_vm1, %v6692_v39  ;;  %v1623_v39 = vsel %vm1621_vm4, %v6829_v16, %v6868_v21 }
  0xf6   : > { %908 = vmatprep.mubr.f32.mxu1 %v9533_v12  ;;  %1290 = vmatprep.mubr.f32.mxu0 %v9533_v12 }
  0xf7   : > { %5794 = vmatprep.subr.mxu0 %v6711_v44  ;;  %3025 = vrot.lane.b32.xlu1 %v6360_v15, %s6237_s15  ;;  %v6987_v37 = vpop.permute.xlu1 %2091  ;;  %v7012_v42 = vpop.permute.xlu0 %2085 }
  0xf8   : > { %5125 = vmatmul.mubr.msk.f32.gmra.mxu0 %vm374_vm2, %v6824_v63  ;;  %3529 = vrot.lane.b32.xlu0 %v6288_v0, %s6238_s9 }
  0xf9   : > { %5082 = vmatmul.mubr.msk.f32.gmra.mxu1 %vm374_vm2, %v282_v46  ;;  %1296 = vmatprep.mubr.f32.mxu0 %v9533_v12  ;;  %v5119_v46 = vld [vmem:[%s9528_s1 + $0x168] sm:$0xff] }
  0xfa   : > { %914 = vmatprep.mubr.f32.mxu1 %v9533_v12  ;;  %5795 = vmatpush3.msra.mxu0 %v6711_v44  ;;  %v5118_v44 = vld [vmem:[%s9528_s1 + $0x160] sm:$0xff] }
  0xfb   : > { %5796 = vmatprep.subr.mxu0 %v6791_v59  ;;  %3531 = vrot.lane.b32.xlu1 %v6298_v2, %s6238_s9  ;;  %v7015_v43 = vpop.permute.xlu1 %2083  ;;  %v7030_v45 = vpop.permute.xlu0 %2077 }
  0xfc   : > { %5126 = vmatmul.mubr.msk.f32.gmra.mxu0 %vm374_vm2, %v6842_v17  ;;  %3527 = vrot.lane.b32.xlu0 %v6291_v1, %s6238_s9 }
  0xfd   : > { %5083 = vmatmul.mubr.msk.f32.gmra.mxu1 %vm374_vm2, %v6728_v48  ;;  %1302 = vmatprep.mubr.f32.mxu0 %v9533_v12  ;;  %v5158_v48 = vld [vmem:[%s9528_s1 + $0x188] sm:$0xff] }
  0xfe   : > { %920 = vmatprep.mubr.f32.mxu1 %v9533_v12  ;;  %5797 = vmatpush3.msra.mxu0 %v6791_v59 }
  0xff   : > { %5798 = vmatprep.subr.mxu0 %v6807_v61  ;;  %3523 = vrot.lane.b32.xlu1 %v6301_v3, %s6238_s9 }
 0x100   : > { %5127 = vmatmul.mubr.msk.f32.gmra.mxu0 %vm374_vm2, %v6861_v19  ;;  %3525 = vrot.lane.b32.xlu0 %v6308_v4, %s6238_s9 }
 0x101   : > { %5084 = vmatmul.mubr.msk.f32.gmra.mxu1 %vm374_vm2, %v6740_v50  ;;  %1308 = vmatprep.mubr.f32.mxu0 %v9533_v12  ;;  %v2107_v50 = vsel %vm2099_vm5, %v6944_v31, %v6987_v37 }
 0x102   : > { %926 = vmatprep.mubr.f32.mxu1 %v9533_v12  ;;  %5799 = vmatpush3.msra.mxu0 %v6807_v61 }
 0x103   : > { %5800 = vmatprep.subr.mxu0 %v6868_v21  ;;  %3521 = vrot.lane.b32.xlu1 %v6311_v5, %s6238_s9 }
 0x104   : > { %5128 = vmatmul.mubr.msk.f32.gmra.mxu0 %vm374_vm2, %v6882_v22  ;;  %3517 = vrot.lane.b32.xlu0 %v6321_v7, %s6238_s9 }
 0x105   : > { %5085 = vmatmul.mubr.msk.f32.gmra.mxu1 %vm374_vm2, %v6751_v53  ;;  %1314 = vmatprep.mubr.f32.mxu0 %v9533_v12  ;;  %v2105_v53 = vsel %vm2099_vm5, %v7015_v43, %v7012_v42 }
 0x106   : > { %932 = vmatprep.mubr.f32.mxu1 %v9533_v12  ;;  %5801 = vmatpush3.msra.mxu0 %v6868_v21  ;;  %v5168_v21 = vld [vmem:[%s9528_s1 + $0x1d8] sm:$0xff] }
 0x107   : > { %5224 = vmatprep.subr.msk.mxu0 %vm423_vm1, %v2109_v25  ;;  %3519 = vrot.lane.b32.xlu1 %v6318_v6, %s6238_s9 }
 0x108   : > { %5129 = vmatmul.mubr.msk.f32.gmra.mxu0 %vm374_vm2, %v5111_v26  ;;  %3515 = vrot.lane.b32.xlu0 %v6328_v8, %s6238_s9 }
 0x109   : > { %5086 = vmatmul.mubr.msk.f32.gmra.mxu1 %vm374_vm2, %v6767_v55  ;;  %1320 = vmatprep.mubr.f32.mxu0 %v9533_v12 }
 0x10a   : > { %938 = vmatprep.mubr.f32.mxu1 %v9533_v12 }
 0x10b   : > { %3511 = vrot.lane.b32.xlu1 %v6331_v9, %s6238_s9 }
 0x10c   : > { %5130 = vmatmul.mubr.msk.f32.gmra.mxu0 %vm374_vm2, %v5112_v28  ;;  %3513 = vrot.lane.b32.xlu0 %v6338_v10, %s6238_s9 }
 0x10d   : > { %5087 = vmatmul.mubr.msk.f32.gmra.mxu1 %vm374_vm2, %v6773_v56  ;;  %1326 = vmatprep.mubr.f32.mxu0 %v9533_v12  ;;  %v5163_v56 = vld [vmem:[%s9528_s1 + $0x1b0] sm:$0xff] }
 0x10e   : > { %944 = vmatprep.mubr.f32.mxu1 %v9533_v12 }
 0x10f   : > { %3509 = vrot.lane.b32.xlu1 %v6341_v11, %s6238_s9 }
 0x110   : > { %5131 = vmatmul.mubr.msk.f32.gmra.mxu0 %vm374_vm2, %v5113_v29  ;;  %3505 = vrot.lane.b32.xlu0 %v6353_v14, %s6238_s9  ;;  %v1630_v14 = vsel %vm1621_vm4, %v6682_v36, %v6645_v27  ;;  %v1626_v27 = vsel %vm1621_vm4, %v6777_v57, %v6745_v52  ;;  %v1625_v36 = vsel %vm1621_vm4, %v6812_v62, %v6807_v61  ;;  %v5165_v61 = vld [vmem:[%s9528_s1 + $0x1c0] sm:$0xff] }
 0x111   : > { %5088 = vmatmul.mubr.msk.f32.gmra.mxu1 %vm374_vm2, %v6789_v58  ;;  %1332 = vmatprep.mubr.f32.mxu0 %v9533_v12 }
 0x112   : > { %5768 = vmatprep.mubr.msk.f32.mxu1 %vm374_vm2, %v6805_v60  ;;  %v5164_v60 = vld [vmem:[%s9528_s1 + $0x1b8] sm:$0xff] }
 0x113   : > { %3507 = vrot.lane.b32.xlu1 %v6350_v13, %s6238_s9  ;;  %v5115_v13 = vld [vmem:[%s9528_s1 + $0x148] sm:$0xff] }
 0x114   : > { %5132 = vmatmul.mubr.msk.f32.gmra.mxu0 %vm374_vm2, %v5114_v30  ;;  %3503 = vrot.lane.b32.xlu0 %v6360_v15, %s6238_s9  ;;  %v1627_v15 = vsel %vm1621_vm4, %v6745_v52, %v6791_v59  ;;  %v5161_v52 = vld [vmem:[%s9528_s1 + $0x1a0] sm:$0xff] }
 0x115   : > { %5769 = vmatmul.mubr.msk.f32.vlgmr.msra.gmra.mxu1 %vm374_vm2, %v6824_v63  ;;  %1338 = vmatprep.mubr.f32.mxu0 %v9533_v12 }
 0x116   : > { %5174 = vmatpush1.msk.msra.mxu1 %vm423_vm1, %v1630_v14  ;;  %5771 = vmatprep.mubr.msk.f32.mxu1 %vm374_vm2, %v6842_v17  ;;  %v7227_v14 = vld [vmem:[%s9528_s1 + $0x1f8] sm:$0xff] }
 0x117   : > { %1722 = vmatprep.subr.mxu1 %v1629_v33  ;;  %4007 = vrot.lane.b32.xlu1 %v6288_v0, %s6239_s29  ;;  %v1624_v0 = vsel %vm1621_vm4, %v6844_v18, %v6812_v62  ;;  %v5166_v18 = vld [vmem:[%s9528_s1 + $0x1c8] sm:$0xff]  ;;  %v6222_v33 = vld [vmem:[%s6285_s23] sm:$0xff] }
 0x118   : > { %1723 = vmatpush1.msra.mxu1 %v1628_v34  ;;  %5133 = vmatmul.mubr.msk.f32.gmra.mxu0 %vm374_vm2, %v5115_v13  ;;  %v7239_v34 = vld [vmem:[%s9528_s1 + $0x200] sm:$0xff] }
 0x119   : > { %1724 = vmatprep.subr.mxu1 %v1627_v15  ;;  %5772 = vmatmul.mubr.msk.f32.gmra.mxu1 %vm374_vm2, %v6861_v19  ;;  %v7167_v19 = vld [vmem:[%s9528_s1 + $0x1d0] sm:$0xff] }
 0x11a   : > { %1725 = vmatpush1.msra.mxu1 %v1626_v27  ;;  %1344 = vmatprep.mubr.f32.mxu0 %v9533_v12  ;;  %v7254_v27 = vld [vmem:[%s9528_s1 + $0x208] sm:$0xff] }
 0x11b   : > { %5774 = vmatprep.mubr.msk.f32.mxu1 %vm374_vm2, %v6882_v22  ;;  %1726 = vmatprep.subr.mxu1 %v1625_v36 }
 0x11c   : > { %5134 = vmatmul.mubr.msk.f32.gmra.mxu0 %vm374_vm2, %v5116_v38  ;;  %1727 = vmatpush1.msra.mxu1 %v1624_v0 }
 0x11d   : > { %5775 = vmatmul.mubr.msk.f32.gmra.mxu1 %vm374_vm2, %v5111_v26  ;;  %1350 = vmatprep.mubr.f32.mxu0 %v9533_v12  ;;  %v7203_v26 = vld [vmem:[%s9528_s1 + $0x1e8] sm:$0xff] }
 0x11e   : > { %5777 = vmatprep.mubr.msk.f32.mxu1 %vm374_vm2, %v5112_v28  ;;  %1728 = vmatprep.subr.mxu1 %v1623_v39  ;;  %v7209_v28 = vld [vmem:[%s9528_s1 + $0x1f0] sm:$0xff] }
 0x11f   : > { %1729 = vmatpush1.msra.mxu1 %v1622_v40  ;;  %4009 = vrot.lane.b32.xlu0 %v6298_v2, %s6239_s29  ;;  %v2082_v2 = vpop.permute.xlu1 %2081  ;;  %v7299_v40 = vld [vmem:[%s9528_s1 + $0x220] sm:$0xff] }
 0x120   : > { %5135 = vmatmul.mubr.msk.f32.gmra.mxu0 %vm374_vm2, %v5117_v41  ;;  %5826 = vmatprep.subr.msk.mxu1 %vm423_vm1, %v6884_v23  ;;  %v2104_v58 = vsel %vm2099_vm5, %v2082_v2, %v7015_v43 }
 0x121   : > { %5778 = vmatmul.mubr.msk.f32.gmra.mxu1 %vm374_vm2, %v5113_v29  ;;  %1356 = vmatprep.mubr.f32.mxu0 %v9533_v12  ;;  %v6220_v29 = vld [vmem:[%s6285_s23 + $0x8] sm:$0xff] }
 0x122   : > { %5780 = vmatprep.mubr.msk.f32.mxu1 %vm374_vm2, %v5114_v30  ;;  %4005 = vrot.lane.b32.xlu1 %v6291_v1, %s6239_s29  ;;  %v5120_v1 = vld [vmem:[%s9528_s1 + $0x170] sm:$0xff] }
 0x123   : > { %4001 = vrot.lane.b32.xlu0 %v6301_v3, %s6239_s29  ;;  %v2076_v3 = vpop.permute.xlu0 %2075  ;;  %v7052_v47 = vpop.permute.xlu1 %2079 }
 0x124   : > { %5136 = vmatmul.mubr.msk.f32.gmra.mxu0 %vm374_vm2, %v5118_v44  ;;  %v2103_v59 = vsel %vm2099_vm5, %v7030_v45, %v7052_v47  ;;  %v2102_v62 = vsel %vm2099_vm5, %v2076_v3, %v7030_v45 }
 0x125   : > { %5781 = vmatmul.mubr.msk.f32.gmra.mxu1 %vm374_vm2, %v5115_v13  ;;  %1362 = vmatprep.mubr.f32.mxu0 %v9533_v12 }
 0x126   : > { %5783 = vmatprep.mubr.msk.f32.mxu1 %vm374_vm2, %v5116_v38  ;;  %4003 = vrot.lane.b32.xlu1 %v6308_v4, %s6239_s29  ;;  %v5121_v4 = vld [vmem:[%s9528_s1 + $0x178] sm:$0xff] }
 0x127   : > { %3999 = vrot.lane.b32.xlu0 %v6311_v5, %s6239_s29  ;;  %v5157_v5 = vld [vmem:[%s9528_s1 + $0x180] sm:$0xff]  ;;  %v7283_v38 = vld [vmem:[%s9528_s1 + $0x218] sm:$0xff] }
 0x128   : > { %5137 = vmatmul.mubr.msk.f32.gmra.mxu0 %vm374_vm2, %v5119_v46 }
 0x129   : > { %5784 = vmatmul.mubr.msk.f32.gmra.mxu1 %vm374_vm2, %v5117_v41  ;;  %1368 = vmatprep.mubr.f32.mxu0 %v9533_v12 }
 0x12a   : > { %5786 = vmatprep.mubr.msk.f32.mxu1 %vm374_vm2, %v5118_v44  ;;  %3995 = vrot.lane.b32.xlu1 %v6321_v7, %s6239_s29  ;;  %v2072_v7 = vpop.permute.xlu1 %2071 }
 0x12b   : > { %3997 = vrot.lane.b32.xlu0 %v6318_v6, %s6239_s29  ;;  %v7070_v6 = vpop.permute.xlu0 %2073 }
 0x12c   : > { %5138 = vmatmul.mubr.msk.f32.gmra.mxu0 %vm374_vm2, %v5120_v1  ;;  %v2101_v16 = vsel %vm2099_vm5, %v2072_v7, %v7070_v6 }
 0x12d   : > { %5787 = vmatmul.mubr.msk.f32.gmra.mxu1 %vm374_vm2, %v5119_v46  ;;  %1374 = vmatprep.mubr.f32.mxu0 %v9533_v12 }
 0x12e   : > { %5789 = vmatprep.mubr.msk.f32.mxu1 %vm374_vm2, %v5120_v1  ;;  %3993 = vrot.lane.b32.xlu1 %v6328_v8, %s6239_s29  ;;  %v2108_v8 = vsel %vm2099_vm5, %v6948_v32, %v6889_v24  ;;  %v2070_v51 = vpop.permute.xlu1 %2069  ;;  %v7188_v24 = vld [vmem:[%s9528_s1 + $0x1e0] sm:$0xff]  ;;  %v7327_v1 = vld [vmem:[%s9528_s1 + $0x228] sm:$0xff] }
 0x12f   : > { %3989 = vrot.lane.b32.xlu0 %v6331_v9, %s6239_s29  ;;  %v7086_v9 = vpop.permute.xlu0 %2573  ;;  %v2100_v20 = vsel %vm2099_vm5, %v2070_v51, %v2072_v7  ;;  %v7382_v51 = vld [vmem:[%s9528_s1 + $0x240] sm:$0xff] }
 0x130   : > { %5139 = vmatmul.mubr.msk.f32.gmra.mxu0 %vm374_vm2, %v5121_v4 }
 0x131   : > { %5790 = vmatmul.mubr.msk.f32.gmra.mxu1 %vm374_vm2, %v5121_v4  ;;  %5802 = vmatprep.mubr.msk.f32.mxu0 %vm374_vm2, %v5157_v5  ;;  %v7344_v4 = vld [vmem:[%s9528_s1 + $0x230] sm:$0xff] }
 0x132   : > { %1762 = vmatprep.mubr.f32.mxu1 %v9533_v12  ;;  %3991 = vrot.lane.b32.xlu1 %v6338_v10, %s6239_s29  ;;  %v5160_v10 = vld [vmem:[%s9528_s1 + $0x198] sm:$0xff]  ;;  %v7128_v57 = vpop.permute.xlu1 %2575 }
 0x133   : > { %3987 = vrot.lane.b32.xlu0 %v6341_v11, %s6239_s29  ;;  %v2106_v11 = vsel %vm2099_vm5, %v6979_v35, %v6944_v31  ;;  %v7121_v55 = vpop.permute.xlu0 %2571  ;;  %v2587_v22 = vsel %vm2577_vm6, %v7086_v9, %v7128_v57  ;;  %v6221_v31 = vld [vmem:[%s6285_s23 + $0x10] sm:$0xff] }
 0x134   : > { %5803 = vmatmul.mubr.msk.f32.vlgmr.msra.gmra.mxu0 %vm374_vm2, %v5158_v48 }
 0x135   : > { %5175 = vmatmul.mubr.msk.f32.vlgmr.msra.gmra.mxu1 %vm374_vm2, %v5157_v5  ;;  %5225 = vmatpush1.msk.msra.mxu0 %vm423_vm1, %v2108_v8  ;;  %v7363_v8 = vld [vmem:[%s9528_s1 + $0x238] sm:$0xff] }
 0x136   : > { %5827 = vmatpush3.msk.msra.mxu1 %vm423_vm1, %v6884_v23  ;;  %1768 = vmatprep.mubr.f32.mxu1 %v9533_v12  ;;  %v7156_v17 = vpop.permute.xlu1 %2567 }
 0x137   : > { %5805 = vmatprep.mubr.msk.f32.mxu0 %vm374_vm2, %v5159_v49  ;;  %2200 = vmatprep.subr.mxu0 %v2107_v50  ;;  %v7150_v63 = vpop.permute.xlu0 %2569 }
 0x138   : > { %5806 = vmatmul.mubr.msk.f32.gmra.mxu0 %vm374_vm2, %v5160_v10  ;;  %5828 = vmatprep.subr.mxu1 %v6987_v37 }
 0x139   : > { %5176 = vmatmul.mubr.msk.f32.gmra.mxu1 %vm374_vm2, %v5158_v48  ;;  %2201 = vmatpush1.msra.mxu0 %v2106_v11 }
 0x13a   : > { %1774 = vmatprep.mubr.f32.mxu1 %v9533_v12  ;;  %5808 = vmatprep.mubr.msk.f32.mxu0 %vm374_vm2, %v5161_v52  ;;  %v7190_v25 = vpop.permute.xlu1 %2565 }
 0x13b   : > { %5829 = vmatpush3.msra.mxu1 %v6987_v37  ;;  %2202 = vmatprep.subr.mxu0 %v2105_v53  ;;  %v7182_v23 = vpop.permute.xlu0 %2561  ;;  %v7270_v37 = vld [vmem:[%s9528_s1 + $0x210] sm:$0xff] }
 0x13c   : > { %5809 = vmatmul.mubr.msk.f32.gmra.mxu0 %vm374_vm2, %v5162_v54  ;;  %5830 = vmatprep.subr.mxu1 %v7012_v42 }
 0x13d   : > { %5177 = vmatmul.mubr.msk.f32.gmra.mxu1 %vm374_vm2, %v5159_v49  ;;  %5811 = vmatprep.mubr.msk.f32.mxu0 %vm374_vm2, %v5163_v56 }
 0x13e   : > { %1780 = vmatprep.mubr.f32.mxu1 %v9533_v12  ;;  %2203 = vmatpush1.msra.mxu0 %v2104_v58  ;;  %v7219_v32 = vpop.permute.xlu1 %2563 }
 0x13f   : > { %5831 = vmatpush3.msra.mxu1 %v7012_v42  ;;  %2204 = vmatprep.subr.mxu0 %v2103_v59  ;;  %v7213_v30 = vpop.permute.xlu0 %2559  ;;  %v2585_v59 = vsel %vm2577_vm6, %v7156_v17, %v7150_v63 }
 0x140   : > { %5812 = vmatmul.mubr.msk.f32.gmra.mxu0 %vm374_vm2, %v5164_v60  ;;  %5832 = vmatprep.subr.mxu1 %v7052_v47 }
 0x141   : > { %5178 = vmatmul.mubr.msk.f32.gmra.mxu1 %vm374_vm2, %v5160_v10  ;;  %5814 = vmatprep.mubr.msk.f32.mxu0 %vm374_vm2, %v5165_v61 }
 0x142   : > { %1786 = vmatprep.mubr.f32.mxu1 %v9533_v12  ;;  %2205 = vmatpush1.msra.mxu0 %v2102_v62  ;;  %v7244_v15 = vpop.permute.xlu1 %2555  ;;  %v2583_v62 = vsel %vm2577_vm6, %v7182_v23, %v7219_v32 }
 0x143   : > { %5833 = vmatpush3.msra.mxu1 %v7052_v47  ;;  %2206 = vmatprep.subr.mxu0 %v2101_v16  ;;  %v7241_v13 = vpop.permute.xlu0 %2557 }
 0x144   : > { %5815 = vmatmul.mubr.msk.f32.gmra.mxu0 %vm374_vm2, %v5166_v18  ;;  %5834 = vmatprep.subr.mxu1 %v7070_v6 }
 0x145   : > { %5179 = vmatmul.mubr.msk.f32.gmra.mxu1 %vm374_vm2, %v5161_v52  ;;  %5817 = vmatprep.mubr.msk.f32.mxu0 %vm374_vm2, %v7167_v19 }
 0x146   : > { %1792 = vmatprep.mubr.f32.mxu1 %v9533_v12  ;;  %2207 = vmatpush1.msra.mxu0 %v2100_v20  ;;  %v7263_v36 = vpop.permute.xlu1 %2553 }
 0x147   : > { %5835 = vmatpush3.msra.mxu1 %v7070_v6  ;;  %5860 = vmatprep.subr.msk.mxu0 %vm423_vm1, %v7128_v57  ;;  %v7259_v35 = vpop.permute.xlu0 %2549 }
 0x148   : > { %5818 = vmatmul.mubr.msk.f32.gmra.mxu0 %vm374_vm2, %v5168_v21  ;;  %5275 = vmatprep.subr.msk.mxu1 %vm423_vm1, %v2587_v22  ;;  %v2580_v22 = vsel %vm2577_vm6, %v7263_v36, %v7244_v15 }
 0x149   : > { %5180 = vmatmul.mubr.msk.f32.gmra.mxu1 %vm374_vm2, %v5162_v54  ;;  %5820 = vmatprep.mubr.msk.f32.mxu0 %vm374_vm2, %v7188_v24  ;;  %v2586_v54 = vsel %vm2577_vm6, %v7121_v55, %v7086_v9  ;;  %v5217_v9 = vld [vmem:[%s9528_s1 + $0x248] sm:$0xff] }
 0x14a   : > { %1798 = vmatprep.mubr.f32.mxu1 %v9533_v12  ;;  %3983 = vrot.lane.b32.xlu1 %v6220_v29, %s6239_s29  ;;  %v7289_v39 = vpop.permute.xlu1 %2551 }
 0x14b   : > { %3985 = vrot.lane.b32.xlu0 %v6221_v31, %s6239_s29  ;;  %v7285_v0 = vpop.permute.xlu0 %2547  ;;  %v5219_v31 = vld [vmem:[%s9528_s1 + $0x258] sm:$0xff] }
 0x14c   : > { %5821 = vmatmul.mubr.msk.f32.gmra.mxu0 %vm374_vm2, %v7203_v26  ;;  %v2578_v29 = vsel %vm2577_vm6, %v7285_v0, %v7259_v35 }
 0x14d   : > { %5181 = vmatmul.mubr.msk.f32.gmra.mxu1 %vm374_vm2, %v5163_v56  ;;  %5823 = vmatprep.mubr.msk.f32.mxu0 %vm374_vm2, %v7209_v28 }
 0x14e   : > { %1804 = vmatprep.mubr.f32.mxu1 %v9533_v12  ;;  %3981 = vrot.lane.b32.xlu1 %v6222_v33, %s6239_s29  ;;  %v7305_v42 = vpop.permute.xlu1 %3051 }
 0x14f   : > { %v7301_v41 = vpop.permute.xlu0 %3053 }
 0x150   : > { %5824 = vmatmul.mubr.msk.f32.gmra.mxu0 %vm374_vm2, %v7227_v14  ;;  %v3065_v45 = vsel %vm3055_vm7, %v7305_v42, %v7301_v41 }
 0x151   : > { %5182 = vmatmul.mubr.msk.f32.gmra.mxu1 %vm374_vm2, %v5164_v60  ;;  %2240 = vmatprep.mubr.f32.mxu0 %v9533_v12  ;;  %v2584_v60 = vsel %vm2577_vm6, %v7190_v25, %v7156_v17 }
 0x152   : > { %1810 = vmatprep.mubr.f32.mxu1 %v9533_v12 }
 0x153   : > { %v7384_v52 = vpop.permute.xlu0 %3045 }
 0x154   : > { %5226 = vmatmul.mubr.msk.f32.vlgmr.msra.gmra.mxu0 %vm374_vm2, %v7239_v34 }
 0x155   : > { %5183 = vmatmul.mubr.msk.f32.gmra.mxu1 %vm374_vm2, %v5165_v61  ;;  %5861 = vmatpush3.msk.msra.mxu0 %vm423_vm1, %v7128_v57  ;;  %v7395_v57 = vpop.permute.xlu1 %3049 }
 0x156   : > { %1816 = vmatprep.mubr.f32.mxu1 %v9533_v12  ;;  %2246 = vmatprep.mubr.f32.mxu0 %v9533_v12 }
 0x157   : > { %5862 = vmatprep.subr.mxu0 %v7150_v63  ;;  %v7428_v17 = vpop.permute.xlu0 %3043 }
 0x158   : > { %5227 = vmatmul.mubr.msk.f32.gmra.mxu0 %vm374_vm2, %v7254_v27 }
 0x159   : > { %5184 = vmatmul.mubr.msk.f32.gmra.mxu1 %vm374_vm2, %v5166_v18  ;;  %2252 = vmatprep.mubr.f32.mxu0 %v9533_v12 }
 0x15a   : > { %1822 = vmatprep.mubr.f32.mxu1 %v9533_v12  ;;  %5863 = vmatpush3.msra.mxu0 %v7150_v63  ;;  %v2582_v63 = vsel %vm2577_vm6, %v7213_v30, %v7182_v23  ;;  %v7446_v23 = vpop.permute.xlu1 %3047 }
 0x15b   : > { %5864 = vmatprep.subr.mxu0 %v7219_v32 }
 0x15c   : > { %5228 = vmatmul.mubr.msk.f32.gmra.mxu0 %vm374_vm2, %v7270_v37 }
 0x15d   : > { %5185 = vmatmul.mubr.msk.f32.gmra.mxu1 %vm374_vm2, %v7167_v19  ;;  %2258 = vmatprep.mubr.f32.mxu0 %v9533_v12  ;;  %v2581_v19 = vsel %vm2577_vm6, %v7244_v15, %v7241_v13 }
 0x15e   : > { %1828 = vmatprep.mubr.f32.mxu1 %v9533_v12  ;;  %5865 = vmatpush3.msra.mxu0 %v7219_v32  ;;  %v7472_v32 = vpop.permute.xlu0 %3041 }
 0x15f   : > { %5866 = vmatprep.subr.mxu0 %v7241_v13 }
 0x160   : > { %5229 = vmatmul.mubr.msk.f32.gmra.mxu0 %vm374_vm2, %v7283_v38 }
 0x161   : > { %5186 = vmatmul.mubr.msk.f32.gmra.mxu1 %vm374_vm2, %v5168_v21  ;;  %2264 = vmatprep.mubr.f32.mxu0 %v9533_v12  ;;  %v5218_v21 = vld [vmem:[%s9528_s1 + $0x250] sm:$0xff] }
 0x162   : > { %1834 = vmatprep.mubr.f32.mxu1 %v9533_v12  ;;  %5867 = vmatpush3.msra.mxu0 %v7241_v13 }
 0x163   : > { %v7307_v43 = vpop.f32.mrf.mxu0  ;;  %v7309_v44 = vpop.f32.mrf.mxu1  ;;  %5868 = vmatprep.subr.mxu0 %v7289_v39 }
 0x164   : > { %9535 = vst [vmem:[#allocation2_spill] sm:$0xff] %v7309_v44  ;;  %5230 = vmatmul.mubr.msk.f32.gmra.mxu0 %vm374_vm2, %v7299_v40 }
 0x165   : > { %5187 = vmatmul.mubr.msk.f32.gmra.mxu1 %vm374_vm2, %v7188_v24  ;;  %v7319_v2 = vpop.f32.mrf.mxu0  ;;  %v7321_v46 = vpop.f32.mrf.mxu1  ;;  %2270 = vmatprep.mubr.f32.mxu0 %v9533_v12 }
 0x166   : > { %9536 = vst [vmem:[#allocation3_spill] sm:$0xff] %v7321_v46  ;;  %1840 = vmatprep.mubr.f32.mxu1 %v9533_v12  ;;  %5869 = vmatpush3.msra.mxu0 %v7289_v39  ;;  %v5262_v46 = vld [vmem:[%s9528_s1 + $0x298] sm:$0xff] }
 0x167   : > { %5326 = vmatprep.subr.msk.mxu0 %vm423_vm1, %v3065_v45 }
 0x168   : > { %v7332_v3 = vpop.f32.mrf.mxu0  ;;  %v7334_v47 = vpop.f32.mrf.mxu1  ;;  %5231 = vmatmul.mubr.msk.f32.gmra.mxu0 %vm374_vm2, %v7327_v1 }
 0x169   : > { %9537 = vst [vmem:[#allocation4_spill] sm:$0xff] %v7334_v47  ;;  %5188 = vmatmul.mubr.msk.f32.gmra.mxu1 %vm374_vm2, %v7203_v26  ;;  %2276 = vmatprep.mubr.f32.mxu0 %v9533_v12  ;;  %v2579_v26 = vsel %vm2577_vm6, %v7259_v35, %v7289_v39  ;;  %v5221_v39 = vld [vmem:[%s9528_s1 + $0x268] sm:$0xff]  ;;  %v3063_v47 = vsel %vm3055_vm7, %v7384_v52, %v7446_v23 }
 0x16a   : > { %v7346_v5 = vpop.f32.mrf.mxu0  ;;  %v7348_v6 = vpop.f32.mrf.mxu1  ;;  %1846 = vmatprep.mubr.f32.mxu1 %v9533_v12 }
 0x16b   : > { %9538 = vst [vmem:[#allocation5_spill] sm:$0xff] %v7348_v6  ;;  %v5261_v6 = vld [vmem:[%s9528_s1 + $0x290] sm:$0xff] }
 0x16c   : > { %v7351_v7 = vpop.f32.mrf.mxu0  ;;  %5232 = vmatmul.mubr.msk.f32.gmra.mxu0 %vm374_vm2, %v7344_v4 }
 0x16d   : > { %v7355_v48 = vpop.f32.mrf.mxu1  ;;  %5189 = vmatmul.mubr.msk.f32.gmra.mxu1 %vm374_vm2, %v7209_v28  ;;  %2282 = vmatprep.mubr.f32.mxu0 %v9533_v12 }
 0x16e   : > { %9539 = vst [vmem:[#allocation6_spill] sm:$0xff] %v7355_v48  ;;  %v7365_v49 = vpop.f32.mrf.mxu0  ;;  %1852 = vmatprep.mubr.f32.mxu1 %v9533_v12 }
 0x16f   : > { %v7368_v50 = vpop.f32.mrf.mxu1 }
 0x170   : > { %9540 = vst [vmem:[#allocation7_spill] sm:$0xff] %v7368_v50  ;;  %v7370_v10 = vpop.f32.mrf.mxu0  ;;  %5233 = vmatmul.mubr.msk.f32.gmra.mxu0 %vm374_vm2, %v7363_v8 }
 0x171   : > { %v7374_v11 = vpop.f32.mrf.mxu1  ;;  %5190 = vmatmul.mubr.msk.f32.gmra.mxu1 %vm374_vm2, %v7227_v14  ;;  %2288 = vmatprep.mubr.f32.mxu0 %v9533_v12 }
 0x172   : > { %9541 = vst [vmem:[#allocation8_spill] sm:$0xff] %v7374_v11  ;;  %v7386_v53 = vpop.f32.mrf.mxu0  ;;  %5836 = vmatprep.mubr.msk.f32.mxu1 %vm374_vm2, %v7239_v34  ;;  %v7480_v34 = vpop.permute.xlu1 %3039  ;;  %v9544_v11 = vmov 0.0  }
 0x173   : > { %v7393_v56 = vpop.f32.mrf.mxu1 }
 0x174   : > { %9542 = vst [vmem:[#allocation9_spill] sm:$0xff] %v7393_v56  ;;  %v7397_v58 = vpop.f32.mrf.mxu0  ;;  %5234 = vmatmul.mubr.msk.f32.gmra.mxu0 %vm374_vm2, %v7382_v51 }
 0x175   : > { %v7407_v61 = vpop.f32.mrf.mxu1  ;;  %5837 = vmatmul.mubr.msk.f32.vlgmr.msra.gmra.mxu1 %vm374_vm2, %v7254_v27  ;;  %2294 = vmatprep.mubr.f32.mxu0 %v9533_v12  ;;  %v5220_v27 = vld [vmem:[%s9528_s1 + $0x260] sm:$0xff] }
 0x176   : > { %5276 = vmatpush1.msk.msra.mxu1 %vm423_vm1, %v2586_v54  ;;  %v7416_v55 = vpop.f32.mrf.mxu0  ;;  %5839 = vmatprep.mubr.msk.f32.mxu1 %vm374_vm2, %v7270_v37  ;;  %v7501_v37 = vpop.permute.xlu0 %3033 }
 0x177   : > { %2678 = vmatprep.subr.mxu1 %v2585_v59  ;;  %v7426_v16 = vpop.f32.mrf.mxu1 }
 0x178   : > { %2679 = vmatpush1.msra.mxu1 %v2584_v60  ;;  %v7430_v18 = vpop.f32.mrf.mxu0  ;;  %5235 = vmatmul.mubr.msk.f32.gmra.mxu0 %vm374_vm2, %v5217_v9 }
 0x179   : > { %2680 = vmatprep.subr.mxu1 %v2583_v62  ;;  %v7436_v20 = vpop.f32.mrf.mxu1  ;;  %5840 = vmatmul.mubr.msk.f32.gmra.mxu1 %vm374_vm2, %v7283_v38 }
 0x17a   : > { %2681 = vmatpush1.msra.mxu1 %v2582_v63  ;;  %v7448_v24 = vpop.f32.mrf.mxu0  ;;  %2300 = vmatprep.mubr.f32.mxu0 %v9533_v12  ;;  %v7530_v54 = vpop.permute.xlu0 %3031 }
 0x17b   : > { %v7451_v25 = vpop.f32.mrf.mxu1  ;;  %5842 = vmatprep.mubr.msk.f32.mxu1 %vm374_vm2, %v7299_v40  ;;  %2682 = vmatprep.subr.mxu1 %v2581_v19  ;;  %v7513_v40 = vpop.permute.xlu1 %3037  ;;  %v5223_v19 = vld [vmem:[%s9528_s1 + $0x278] sm:$0xff] }
 0x17c   : > { %v7458_v28 = vpop.f32.mrf.mxu0  ;;  %5236 = vmatmul.mubr.msk.f32.gmra.mxu0 %vm374_vm2, %v5218_v21  ;;  %2683 = vmatpush1.msra.mxu1 %v2580_v22  ;;  %v5259_v22 = vld [vmem:[%s9528_s1 + $0x280] sm:$0xff] }
 0x17d   : > { %v7464_v30 = vpop.f32.mrf.mxu1  ;;  %5843 = vmatmul.mubr.msk.f32.gmra.mxu1 %vm374_vm2, %v7327_v1  ;;  %2306 = vmatprep.mubr.f32.mxu0 %v9533_v12 }
 0x17e   : > { %v7474_v14 = vpop.f32.mrf.mxu0  ;;  %5845 = vmatprep.mubr.msk.f32.mxu1 %vm374_vm2, %v7344_v4  ;;  %2684 = vmatprep.subr.mxu1 %v2579_v26 }
 0x17f   : > { %v7478_v33 = vpop.f32.mrf.mxu1  ;;  %2685 = vmatpush1.msra.mxu1 %v2578_v29  ;;  %v7557_v29 = vpop.permute.xlu0 %3029 }
 0x180   : > { %v7482_v13 = vpop.f32.mrf.mxu0  ;;  %5237 = vmatmul.mubr.msk.f32.gmra.mxu0 %vm374_vm2, %v5219_v31  ;;  %5894 = vmatprep.subr.msk.mxu1 %vm423_vm1, %v7301_v41 }
 0x181   : > { %v7487_v15 = vpop.f32.mrf.mxu1  ;;  %5846 = vmatmul.mubr.msk.f32.gmra.mxu1 %vm374_vm2, %v7363_v8  ;;  %2312 = vmatprep.mubr.f32.mxu0 %v9533_v12 }
 0x182   : > { %v7495_v35 = vpop.f32.mrf.mxu0  ;;  %5848 = vmatprep.mubr.msk.f32.mxu1 %vm374_vm2, %v7382_v51  ;;  %v5222_v51 = vld [vmem:[%s9528_s1 + $0x270] sm:$0xff] }
 0x183   : > { %v7499_v36 = vpop.f32.mrf.mxu1  ;;  %v7579_v48 = vpop.permute.xlu0 %3529 }
 0x184   : > { %v7503_v38 = vpop.f32.mrf.mxu0  ;;  %5238 = vmatmul.mubr.msk.f32.gmra.mxu0 %vm374_vm2, %v5220_v27 }
 0x185   : > { %v7506_v0 = vpop.f32.mrf.mxu1  ;;  %5849 = vmatmul.mubr.msk.f32.gmra.mxu1 %vm374_vm2, %v5217_v9  ;;  %2318 = vmatprep.mubr.f32.mxu0 %v9533_v12  ;;  %v7537_v9 = vpop.permute.xlu1 %3035 }
 0x186   : > { %v7515_v45 = vpop.f32.mrf.mxu0  ;;  %5851 = vmatprep.mubr.msk.f32.mxu1 %vm374_vm2, %v5218_v21 }
 0x187   : > { %v7518_v1 = vpop.f32.mrf.mxu1 }
 0x188   : > { %v7520_v4 = vpop.f32.mrf.mxu0  ;;  %5239 = vmatmul.mubr.msk.f32.gmra.mxu0 %vm374_vm2, %v5221_v39 }
 0x189   : > { %v7523_v8 = vpop.f32.mrf.mxu1  ;;  %5852 = vmatmul.mubr.msk.f32.gmra.mxu1 %vm374_vm2, %v5219_v31  ;;  %2324 = vmatprep.mubr.f32.mxu0 %v9533_v12 }
 0x18a   : > { %v7532_v59 = vpop.f32.mrf.mxu0  ;;  %5854 = vmatprep.mubr.msk.f32.mxu1 %vm374_vm2, %v5220_v27 }
 0x18b   : > { %v7535_v60 = vpop.f32.mrf.mxu1 }
 0x18c   : > { %v7539_v62 = vpop.f32.mrf.mxu0  ;;  %5240 = vmatmul.mubr.msk.f32.gmra.mxu0 %vm374_vm2, %v5222_v51 }
 0x18d   : > { %v7542_v63 = vpop.f32.mrf.mxu1  ;;  %5855 = vmatmul.mubr.msk.f32.gmra.mxu1 %vm374_vm2, %v5221_v39  ;;  %2330 = vmatprep.mubr.f32.mxu0 %v9533_v12  ;;  %v5260_v39 = vld [vmem:[%s9528_s1 + $0x288] sm:$0xff]  ;;  %v3064_v12 = vsel %vm3055_vm7, %v7395_v57, %v7305_v42 }
 0x18e   : > { %v7549_v21 = vpop.f32.mrf.mxu0  ;;  %5857 = vmatprep.mubr.msk.f32.mxu1 %vm374_vm2, %v5222_v51  ;;  %v7569_v51 = vpop.permute.xlu1 %3027 }
 0x18f   : > { %v7555_v26 = vpop.f32.mrf.mxu1 }
 0x190   : > { %v7559_v31 = vpop.f32.mrf.mxu0  ;;  %5241 = vmatmul.mubr.msk.f32.gmra.mxu0 %vm374_vm2, %v5223_v19 }
 0x191   : > { %v7562_v27 = vpop.f32.mrf.mxu1  ;;  %5858 = vmatmul.mubr.msk.f32.gmra.mxu1 %vm374_vm2, %v5223_v19  ;;  %5870 = vmatprep.mubr.msk.f32.mxu0 %vm374_vm2, %v5259_v22 }
 0x192   : > { %v7574_v56 = vpop.f32.mrf.mxu0  ;;  %2718 = vmatprep.mubr.f32.mxu1 %v9544_v11 }
 0x193   : > { %9543 = vst [vmem:[#allocation10_spill] sm:$0xff] %v7574_v56  ;;  %v7577_v50 = vpop.f32.mrf.mxu1 }
 0x194   : > { %v5736_v19 = vpop.f32.mrf.mxu0  ;;  %5871 = vmatmul.mubr.msk.f32.vlgmr.msra.gmra.mxu0 %vm374_vm2, %v5260_v39 }
 0x195   : > { %v856_v42 = vpop.f32.mrf.mxu1  ;;  %v7589_v57 = vadd.f32 %v5736_v19, %v7407_v61  ;;  %5277 = vmatmul.mubr.msk.f32.vlgmr.msra.gmra.mxu1 %vm374_vm2, %v5259_v22  ;;  %5327 = vmatpush1.msk.msra.mxu0 %vm423_vm1, %v3064_v12  ;;  %v3062_v61 = vsel %vm3055_vm7, %v7428_v17, %v7384_v52  ;;  %v3061_v52 = vsel %vm3055_vm7, %v7480_v34, %v7472_v32 }
 0x196   : > { %v7597_v44 = vadd.f32 %v856_v42, %v7307_v43  ;;  %5895 = vmatpush3.msk.msra.mxu1 %vm423_vm1, %v7301_v41  ;;  %v1017_v56 = vpop.f32.mrf.mxu0  ;;  %2724 = vmatprep.mubr.f32.mxu1 %v9544_v11  ;;  %v7612_v43 = vld [vmem:[%s9528_s1 + $0x2a0] sm:$0xff]  ;;  %v7614_v41 = vpop.permute.xlu1 %3025 }
 0x197   : > { %v858_v22 = vpop.f32.mrf.mxu1  ;;  %v7606_v12 = vadd.f32 %v1017_v56, %v7426_v16  ;;  %5873 = vmatprep.mubr.msk.f32.mxu0 %vm374_vm2, %v5261_v6  ;;  %3156 = vmatprep.subr.mxu0 %v3063_v47  ;;  %v7633_v16 = vpop.permute.xlu0 %3527 }
 0x198   : > { %v7617_v19 = vadd.f32 %v858_v22, %v7319_v2  ;;  %v5739_v42 = vpop.f32.mrf.mxu0  ;;  %5874 = vmatmul.mubr.msk.f32.gmra.mxu0 %vm374_vm2, %v5262_v46  ;;  %5896 = vmatprep.subr.mxu1 %v7446_v23  ;;  %v7631_v2 = vld [vmem:[%s9528_s1 + $0x2a8] sm:$0xff] }
 0x199   : > { %v862_v47 = vpop.f32.mrf.mxu1  ;;  %v7625_v56 = vadd.f32 %v5739_v42, %v7436_v20  ;;  %5278 = vmatmul.mubr.msk.f32.gmra.mxu1 %vm374_vm2, %v5260_v39  ;;  %3157 = vmatpush1.msra.mxu0 %v3062_v61  ;;  %v7644_v20 = vld [vmem:[%s9528_s1 + $0x2b0] sm:$0xff] }
 0x19a   : > { %v7636_v17 = vadd.f32 %v862_v47, %v7332_v3  ;;  %v1027_v22 = vpop.f32.mrf.mxu0  ;;  %2730 = vmatprep.mubr.f32.mxu1 %v9544_v11  ;;  %5876 = vmatprep.mubr.msk.f32.mxu0 %vm374_vm2, %v7612_v43  ;;  %v3060_v3 = vsel %vm3055_vm7, %v7513_v40, %v7480_v34  ;;  %v7653_v42 = vpop.permute.xlu1 %3531 }
 0x19b   : > { %9545 = vst [vmem:[#allocation11_spill] sm:$0xff] %v7625_v56  ;;  %v864_v39 = vpop.f32.mrf.mxu1  ;;  %v7647_v61 = vadd.f32 %v1027_v22, %v7451_v25  ;;  %5897 = vmatpush3.msra.mxu1 %v7446_v23  ;;  %3158 = vmatprep.subr.mxu0 %v3061_v52  ;;  %v3059_v23 = vsel %vm3055_vm7, %v7501_v37, %v7537_v9 }
 0x19c   : > { %v7656_v47 = vadd.f32 %v864_v39, %v7346_v5  ;;  %v5742_v56 = vpop.f32.mrf.mxu0  ;;  %5877 = vmatmul.mubr.msk.f32.gmra.mxu0 %vm374_vm2, %v7631_v2  ;;  %5898 = vmatprep.subr.mxu1 %v7472_v32  ;;  %v7673_v5 = vld [vmem:[%s9528_s1 + $0x2b8] sm:$0xff] }
 0x19d   : > { %v868_v25 = vpop.f32.mrf.mxu1  ;;  %v7665_v22 = vadd.f32 %v5742_v56, %v7464_v30  ;;  %5279 = vmatmul.mubr.msk.f32.gmra.mxu1 %vm374_vm2, %v5261_v6  ;;  %5879 = vmatprep.mubr.msk.f32.mxu0 %vm374_vm2, %v7644_v20  ;;  %v7682_v30 = vld [vmem:[%s9528_s1 + $0x2c0] sm:$0xff]  ;;  %v7691_v56 = vpop.permute.xlu0 %3525 }
 0x19e   : > { %v7676_v34 = vadd.f32 %v868_v25, %v7351_v7  ;;  %v1037_v40 = vpop.f32.mrf.mxu0  ;;  %2736 = vmatprep.mubr.f32.mxu1 %v9544_v11  ;;  %3159 = vmatpush1.msra.mxu0 %v3060_v3  ;;  %v3058_v7 = vsel %vm3055_vm7, %v7530_v54, %v7501_v37  ;;  %v7713_v37 = vpop.permute.xlu1 %3523 }
 0x19f   : > { %v870_v6 = vpop.f32.mrf.mxu1  ;;  %v7685_v52 = vadd.f32 %v1037_v40, %v7478_v33  ;;  %5899 = vmatpush3.msra.mxu1 %v7472_v32  ;;  %3160 = vmatprep.subr.mxu0 %v3059_v23  ;;  %v3057_v32 = vsel %vm3055_vm7, %v7569_v51, %v7557_v29 }
 0x1a0   : > { %v7694_v39 = vadd.f32 %v870_v6, %v7365_v49  ;;  %v5745_v3 = vpop.f32.mrf.mxu0  ;;  %5880 = vmatmul.mubr.msk.f32.gmra.mxu0 %vm374_vm2, %v7673_v5  ;;  %5900 = vmatprep.subr.mxu1 %v7537_v9  ;;  %v7711_v49 = vld [vmem:[%s9528_s1 + $0x2c8] sm:$0xff] }
 0x1a1   : > { %v874_v33 = vpop.f32.mrf.mxu1  ;;  %v7703_v25 = vadd.f32 %v5745_v3, %v7487_v15  ;;  %5280 = vmatmul.mubr.msk.f32.gmra.mxu1 %vm374_vm2, %v5262_v46  ;;  %5882 = vmatprep.mubr.msk.f32.mxu0 %vm374_vm2, %v7682_v30  ;;  %v7722_v46 = vld [vmem:[%s9528_s1 + $0x2d0] sm:$0xff] }
 0x1a2   : > { %v7716_v54 = vadd.f32 %v874_v33, %v7370_v10  ;;  %v1047_v23 = vpop.f32.mrf.mxu0  ;;  %2742 = vmatprep.mubr.f32.mxu1 %v9544_v11  ;;  %3161 = vmatpush1.msra.mxu0 %v3058_v7  ;;  %v3056_v10 = vsel %vm3055_vm7, %v7614_v41, %v7569_v51  ;;  %v7752_v51 = vpop.permute.xlu0 %3517 }
 0x1a3   : > { %v876_v15 = vpop.f32.mrf.mxu1  ;;  %v7725_v40 = vadd.f32 %v1047_v23, %v7499_v36  ;;  %5901 = vmatpush3.msra.mxu1 %v7537_v9  ;;  %3162 = vmatprep.subr.mxu0 %v3057_v32  ;;  %v3543_v9 = vsel %vm3533_vm8, %v7579_v48, %v7653_v42 }
 0x1a4   : > { %v7732_v6 = vadd.f32 %v876_v15, %v7386_v53  ;;  %v5748_v3 = vpop.f32.mrf.mxu0  ;;  %5883 = vmatmul.mubr.msk.f32.gmra.mxu0 %vm374_vm2, %v7711_v49  ;;  %5902 = vmatprep.subr.mxu1 %v7557_v29  ;;  %v7747_v53 = vld [vmem:[%s9528_s1 + $0x2d8] sm:$0xff] }
 0x1a5   : > { %v880_v7 = vpop.f32.mrf.mxu1  ;;  %v7738_v36 = vadd.f32 %v5748_v3, %v7506_v0  ;;  %5281 = vmatmul.mubr.msk.f32.gmra.mxu1 %vm374_vm2, %v7612_v43  ;;  %5885 = vmatprep.mubr.msk.f32.mxu0 %vm374_vm2, %v7722_v46  ;;  %v7761_v43 = vld [vmem:[%s9528_s1 + $0x2e0] sm:$0xff] }
 0x1a6   : > { %v7755_v0 = vadd.f32 %v880_v7, %v7397_v58  ;;  %v1057_v41 = vpop.f32.mrf.mxu0  ;;  %2748 = vmatprep.mubr.f32.mxu1 %v9544_v11  ;;  %3163 = vmatpush1.msra.mxu0 %v3056_v10  ;;  %v7769_v58 = vpop.permute.xlu1 %3521 }
 0x1a7   : > { %v882_v32 = vpop.f32.mrf.mxu1  ;;  %v7764_v33 = vadd.f32 %v1057_v41, %v7518_v1  ;;  %5903 = vmatpush3.msra.mxu1 %v7557_v29  ;;  %5928 = vmatprep.subr.msk.mxu0 %vm423_vm1, %v7653_v42 }
 0x1a8   : > { %v7772_v23 = vadd.f32 %v882_v32, %v7416_v55  ;;  %v5751_v15 = vpop.f32.mrf.mxu0  ;;  %5886 = vmatmul.mubr.msk.f32.gmra.mxu0 %vm374_vm2, %v7747_v53  ;;  %5377 = vmatprep.subr.msk.mxu1 %vm423_vm1, %v3543_v9  ;;  %v7787_v55 = vld [vmem:[%s9528_s1 + $0x2e8] sm:$0xff]  ;;  %v7801_v9 = vpop.permute.xlu0 %3515 }
 0x1a9   : > { %v886_v10 = vpop.f32.mrf.mxu1  ;;  %v7778_v1 = vadd.f32 %v5751_v15, %v7523_v8  ;;  %5282 = vmatmul.mubr.msk.f32.gmra.mxu1 %vm374_vm2, %v7631_v2  ;;  %5888 = vmatprep.mubr.msk.f32.mxu0 %vm374_vm2, %v7761_v43  ;;  %v7796_v8 = vld [vmem:[%s9528_s1 + $0x2f0] sm:$0xff] }
 0x1aa   : > { %v7790_v29 = vadd.f32 %v886_v10, %v7430_v18  ;;  %v1067_v3 = vpop.f32.mrf.mxu0  ;;  %2754 = vmatprep.mubr.f32.mxu1 %v9544_v11 }
 0x1ab   : > { %v888_v2 = vpop.f32.mrf.mxu1  ;;  %v7799_v7 = vadd.f32 %v1067_v3, %v7535_v60  ;;  %v7818_v60 = vld [vmem:[%s9528_s1 + $0x2f8] sm:$0xff] }
 0x1ac   : > { %v7804_v41 = vadd.f32 %v888_v2, %v7448_v24  ;;  %v5754_v32 = vpop.f32.mrf.mxu0  ;;  %5889 = vmatmul.mubr.msk.f32.gmra.mxu0 %vm374_vm2, %v7787_v55  ;;  %v7820_v24 = vpop.permute.xlu1 %3519 }
 0x1ad   : > { %9546 = vst [vmem:[#allocation12_spill] sm:$0xff] %v7799_v7  ;;  %v892_v18 = vpop.f32.mrf.mxu1  ;;  %v7809_v15 = vadd.f32 %v5754_v32, %v7542_v63  ;;  %5283 = vmatmul.mubr.msk.f32.gmra.mxu1 %vm374_vm2, %v7644_v20  ;;  %5891 = vmatprep.mubr.msk.f32.mxu0 %vm374_vm2, %v7796_v8 }
 0x1ae   : > { %v7823_v10 = vadd.f32 %v892_v18, %v7458_v28  ;;  %v1077_v3 = vpop.f32.mrf.mxu0  ;;  %2760 = vmatprep.mubr.f32.mxu1 %v9544_v11  ;;  %v7843_v28 = vld [vmem:[%s9528_s1 + $0x300] sm:$0xff] }
 0x1af   : > { %9547 = vst [vmem:[#allocation13_spill] sm:$0xff] %v7809_v15  ;;  %v894_v63 = vpop.f32.mrf.mxu1  ;;  %v7827_v2 = vadd.f32 %v1077_v3, %v7555_v26 }
 0x1b0   : > { %v7830_v20 = vadd.f32 %v894_v63, %v7474_v14  ;;  %v5757_v32 = vpop.f32.mrf.mxu0  ;;  %5892 = vmatmul.mubr.msk.f32.gmra.mxu0 %vm374_vm2, %v7818_v60  ;;  %v7845_v14 = vpop.permute.xlu0 %3513 }
 0x1b1   : > { %v898_v15 = vpop.f32.mrf.mxu1  ;;  %v7835_v7 = vadd.f32 %v5757_v32, %v7562_v27  ;;  %5284 = vmatmul.mubr.msk.f32.gmra.mxu1 %vm374_vm2, %v7673_v5  ;;  %3196 = vmatprep.mubr.f32.mxu0 %v9544_v11  ;;  %v7854_v5 = vpop.permute.xlu1 %3511 }
 0x1b2   : > { %v7848_v26 = vadd.f32 %v898_v15, %v7482_v13  ;;  %v1087_v18 = vpop.f32.mrf.mxu0  ;;  %2766 = vmatprep.mubr.f32.mxu1 %v9544_v11 }
 0x1b3   : > { %9548 = vst [vmem:[#allocation14_spill] sm:$0xff] %v7835_v7  ;;  %v900_v27 = vpop.f32.mrf.mxu1  ;;  %v7852_v3 = vadd.f32 %v1087_v18, %v7577_v50  ;;  %v7871_v50 = vld [vmem:[%s9528_s1 + $0x308] sm:$0xff] }
 0x1b4   : > { %v7857_v63 = vadd.f32 %v900_v27, %v7495_v35  ;;  %v1286_v32 = vpop.f32.mrf.mxu0  ;;  %5328 = vmatmul.mubr.msk.f32.vlgmr.msra.gmra.mxu0 %vm374_vm2, %v7843_v28 }
 0x1b5   : > { %v904_v7 = vpop.f32.mrf.mxu1  ;;  %v7862_v13 = vadd.f32 %v1286_v32, %v7597_v44  ;;  %5285 = vmatmul.mubr.msk.f32.gmra.mxu1 %vm374_vm2, %v7682_v30  ;;  %5929 = vmatpush3.msk.msra.mxu0 %vm423_vm1, %v7653_v42  ;;  %v7882_v42 = vpop.permute.xlu0 %3505 }
 0x1b6   : > { %v7874_v35 = vadd.f32 %v904_v7, %v7503_v38  ;;  %v1288_v15 = vpop.f32.mrf.mxu0  ;;  %2772 = vmatprep.mubr.f32.mxu1 %v9544_v11  ;;  %3202 = vmatprep.mubr.f32.mxu0 %v9544_v11 }
 0x1b7   : > { %v906_v44 = vpop.f32.mrf.mxu1  ;;  %v7879_v18 = vadd.f32 %v1288_v15, %v7617_v19  ;;  %5930 = vmatprep.subr.mxu0 %v7691_v56  ;;  %v7898_v19 = vld [vmem:[%s9528_s1 + $0x310] sm:$0xff] }
 0x1b8   : > { %v7885_v30 = vadd.f32 %v906_v44, %v7515_v45  ;;  %v1292_v27 = vpop.f32.mrf.mxu0  ;;  %5329 = vmatmul.mubr.msk.f32.gmra.mxu0 %vm374_vm2, %v7871_v50  ;;  %v7900_v45 = vpop.permute.xlu1 %3509 }
 0x1b9   : > { %v910_v38 = vpop.f32.mrf.mxu1  ;;  %v7890_v7 = vadd.f32 %v1292_v27, %v7636_v17  ;;  %5286 = vmatmul.mubr.msk.f32.gmra.mxu1 %vm374_vm2, %v7711_v49  ;;  %3208 = vmatprep.mubr.f32.mxu0 %v9544_v11 }
 0x1ba   : > { %v7903_v32 = vadd.f32 %v910_v38, %v7520_v4  ;;  %v1294_v15 = vpop.f32.mrf.mxu0  ;;  %2778 = vmatprep.mubr.f32.mxu1 %v9544_v11  ;;  %5931 = vmatpush3.msra.mxu0 %v7691_v56 }
 0x1bb   : > { %9549 = vst [vmem:[#allocation15_spill] sm:$0xff] %v7890_v7  ;;  %v912_v17 = vpop.f32.mrf.mxu1  ;;  %v7908_v49 = vadd.f32 %v1294_v15, %v7656_v47  ;;  %5932 = vmatprep.subr.mxu0 %v7820_v24  ;;  %v7925_v47 = vld [vmem:[%s9528_s1 + $0x318] sm:$0xff] }
 0x1bc   : > { %v7912_v44 = vadd.f32 %v912_v17, %v7532_v59  ;;  %v1298_v27 = vpop.f32.mrf.mxu0  ;;  %5330 = vmatmul.mubr.msk.f32.gmra.mxu0 %vm374_vm2, %v7898_v19  ;;  %v7927_v59 = vpop.permute.xlu0 %3503 }
 0x1bd   : > { %9550 = vst [vmem:[#allocation16_spill] sm:$0xff] %v7908_v49  ;;  %v916_v4 = vpop.f32.mrf.mxu1  ;;  %v7917_v38 = vadd.f32 %v1298_v27, %v7676_v34  ;;  %5287 = vmatmul.mubr.msk.f32.gmra.mxu1 %vm374_vm2, %v7722_v46  ;;  %3214 = vmatprep.mubr.f32.mxu0 %v9544_v11  ;;  %v7938_v27 = vpop.permute.xlu1 %3507 }
 0x1be   : > { %v7930_v15 = vadd.f32 %v916_v4, %v7539_v62  ;;  %v1300_v17 = vpop.f32.mrf.mxu0  ;;  %2784 = vmatprep.mubr.f32.mxu1 %v9544_v11  ;;  %5933 = vmatpush3.msra.mxu0 %v7820_v24 }
 0x1bf   : > { %9551 = vst [vmem:[#allocation17_spill] sm:$0xff] %v7917_v38  ;;  %v918_v34 = vpop.f32.mrf.mxu1  ;;  %v7935_v46 = vadd.f32 %v1300_v17, %v7694_v39  ;;  %5934 = vmatprep.subr.mxu0 %v7845_v14  ;;  %v7954_v39 = vld [vmem:[%s9528_s1 + $0x320] sm:$0xff] }
 0x1c0   : > { %v7941_v38 = vadd.f32 %v918_v34, %v7549_v21  ;;  %v1304_v49 = vpop.f32.mrf.mxu0  ;;  %5331 = vmatmul.mubr.msk.f32.gmra.mxu0 %vm374_vm2, %v7925_v47  ;;  %v7956_v21 = vpop.permute.xlu0 %4009 }
 0x1c1   : > { %9552 = vst [vmem:[#allocation18_spill] sm:$0xff] %v7935_v46  ;;  %v922_v62 = vpop.f32.mrf.mxu1  ;;  %v7946_v4 = vadd.f32 %v1304_v49, %v7716_v54  ;;  %5288 = vmatmul.mubr.msk.f32.gmra.mxu1 %vm374_vm2, %v7747_v53  ;;  %3220 = vmatprep.mubr.f32.mxu0 %v9544_v11  ;;  %v7967_v49 = vpop.permute.xlu1 %4007 }
 0x1c2   : > { %v7959_v17 = vadd.f32 %v922_v62, %v7559_v31  ;;  %v1306_v34 = vpop.f32.mrf.mxu0  ;;  %2790 = vmatprep.mubr.f32.mxu1 %v9544_v11  ;;  %5935 = vmatpush3.msra.mxu0 %v7845_v14  ;;  %v4021_v31 = vsel %vm4011_vm9, %v7967_v49, %v7956_v21 }
 0x1c3   : > { %9553 = vst [vmem:[#allocation19_spill] sm:$0xff] %v7946_v4  ;;  %v924_v54 = vpop.f32.mrf.mxu1  ;;  %v7964_v53 = vadd.f32 %v1306_v34, %v7732_v6  ;;  %5936 = vmatprep.subr.mxu0 %v7938_v27  ;;  %v9554_v4 = vld [vmem:[#allocation10_spill] sm:$0xff] }
 0x1c4   : > { %v7970_v46 = vadd.f32 %v924_v54, %v9554_v4  ;;  %v1310_v7 = vpop.f32.mrf.mxu0  ;;  %5332 = vmatmul.mubr.msk.f32.gmra.mxu0 %vm374_vm2, %v7954_v39  ;;  %v7988_v4 = vld [vmem:[%s9528_s1 + $0x328] sm:$0xff] }
 0x1c5   : > { %v7977_v62 = vpop.f32.mrf.mxu1  ;;  %v7980_v6 = vadd.f32 %v1310_v7, %v7755_v0  ;;  %5289 = vmatmul.mubr.msk.f32.gmra.mxu1 %vm374_vm2, %v7761_v43  ;;  %3226 = vmatprep.mubr.f32.mxu0 %v9544_v11 }
 0x1c6   : > { %v1312_v34 = vpop.f32.mrf.mxu0  ;;  %2796 = vmatprep.mubr.f32.mxu1 %v9544_v11  ;;  %5937 = vmatpush3.msra.mxu0 %v7938_v27 }
 0x1c7   : > { %9555 = vst [vmem:[#allocation10_spill] sm:$0xff] %v7980_v6  ;;  %v7992_v54 = vpop.f32.mrf.mxu1  ;;  %v7995_v0 = vadd.f32 %v1312_v34, %v7772_v23  ;;  %5428 = vmatprep.subr.msk.mxu0 %vm423_vm1, %v4021_v31  ;;  %v8011_v23 = vld [vmem:[%s9528_s1 + $0x330] sm:$0xff] }
 0x1c8   : > { %v1316_v43 = vpop.f32.mrf.mxu0  ;;  %5333 = vmatmul.mubr.msk.f32.gmra.mxu0 %vm374_vm2, %v7988_v4 }
 0x1c9   : > { %9556 = vst [vmem:[#allocation20_spill] sm:$0xff] %v7995_v0  ;;  %v8000_v7 = vpop.f32.mrf.mxu1  ;;  %v8003_v6 = vadd.f32 %v1316_v43, %v7790_v29  ;;  %5290 = vmatmul.mubr.msk.f32.gmra.mxu1 %vm374_vm2, %v7787_v55  ;;  %3232 = vmatprep.mubr.f32.mxu0 %v9544_v11 }
 0x1ca   : > { %v1318_v31 = vpop.f32.mrf.mxu0  ;;  %2802 = vmatprep.mubr.f32.mxu1 %v9544_v11 }
 0x1cb   : > { %9557 = vst [vmem:[#allocation21_spill] sm:$0xff] %v8003_v6  ;;  %v8014_v34 = vpop.f32.mrf.mxu1  ;;  %v8017_v0 = vadd.f32 %v1318_v31, %v7804_v41  ;;  %v8032_v6 = vld [vmem:[%s9528_s1 + $0x338] sm:$0xff] }
 0x1cc   : > { %v1322_v29 = vpop.f32.mrf.mxu0  ;;  %5334 = vmatmul.mubr.msk.f32.gmra.mxu0 %vm374_vm2, %v8011_v23 }
 0x1cd   : > { %9558 = vst [vmem:[#allocation22_spill] sm:$0xff] %v8017_v0  ;;  %v8021_v55 = vpop.f32.mrf.mxu1  ;;  %v8024_v43 = vadd.f32 %v1322_v29, %v7823_v10  ;;  %5291 = vmatmul.mubr.msk.f32.gmra.mxu1 %vm374_vm2, %v7796_v8  ;;  %3238 = vmatprep.mubr.f32.mxu0 %v9544_v11 }
 0x1ce   : > { %v1324_v41 = vpop.f32.mrf.mxu0  ;;  %2808 = vmatprep.mubr.f32.mxu1 %v9544_v11 }
 0x1cf   : > { %9559 = vst [vmem:[#allocation23_spill] sm:$0xff] %v8024_v43  ;;  %v8035_v31 = vpop.f32.mrf.mxu1  ;;  %v8038_v0 = vadd.f32 %v1324_v41, %v7830_v20  ;;  %v8053_v43 = vld [vmem:[%s9528_s1 + $0x340] sm:$0xff]  ;;  %v3542_v41 = vsel %vm3533_vm8, %v7633_v16, %v7579_v48  ;;  %v8082_v16 = vld [vmem:[%s9528_s1 + $0x348] sm:$0xff] }
 0x1d0   : > { %v1328_v10 = vpop.f32.mrf.mxu0  ;;  %5335 = vmatmul.mubr.msk.f32.gmra.mxu0 %vm374_vm2, %v8032_v6 }
 0x1d1   : > { %9560 = vst [vmem:[#allocation24_spill] sm:$0xff] %v8038_v0  ;;  %v8042_v8 = vpop.f32.mrf.mxu1  ;;  %v8045_v29 = vadd.f32 %v1328_v10, %v7848_v26  ;;  %5292 = vmatmul.mubr.msk.f32.gmra.mxu1 %vm374_vm2, %v7818_v60  ;;  %3244 = vmatprep.mubr.f32.mxu0 %v9544_v11 }
 0x1d2   : > { %v1330_v20 = vpop.f32.mrf.mxu0  ;;  %5904 = vmatprep.mubr.msk.f32.mxu1 %vm374_vm2, %v7843_v28  ;;  %v3540_v28 = vsel %vm3533_vm8, %v7769_v58, %v7713_v37  ;;  %v3539_v58 = vsel %vm3533_vm8, %v7752_v51, %v7820_v24  ;;  %v3537_v24 = vsel %vm3533_vm8, %v7854_v5, %v7845_v14 }
 0x1d3   : > { %9561 = vst [vmem:[#allocation25_spill] sm:$0xff] %v8045_v29  ;;  %v8060_v26 = vpop.f32.mrf.mxu1  ;;  %v8063_v10 = vadd.f32 %v1330_v20, %v7857_v63  ;;  %v3541_v29 = vsel %vm3533_vm8, %v7713_v37, %v7691_v56  ;;  %v3538_v63 = vsel %vm3533_vm8, %v7801_v9, %v7752_v51 }
 0x1d4   : > { %v1334_v60 = vpop.f32.mrf.mxu0  ;;  %5336 = vmatmul.mubr.msk.f32.gmra.mxu0 %vm374_vm2, %v8053_v43 }
 0x1d5   : > { %v8074_v0 = vadd.f32 %v1334_v60, %v7874_v35  ;;  %v5770_v48 = vpop.f32.mrf.mxu1  ;;  %5905 = vmatmul.mubr.msk.f32.vlgmr.msra.gmra.mxu1 %vm374_vm2, %v7871_v50  ;;  %3250 = vmatprep.mubr.f32.mxu0 %v9544_v11  ;;  %v8140_v60 = vpop.permute.xlu1 %4005 }
 0x1d6   : > { %v8085_v56 = vadd.f32 %v5770_v48, %v7589_v57  ;;  %5378 = vmatpush1.msk.msra.mxu1 %vm423_vm1, %v3542_v41  ;;  %v1336_v37 = vpop.f32.mrf.mxu0  ;;  %5907 = vmatprep.mubr.msk.f32.mxu1 %vm374_vm2, %v7898_v19  ;;  %v9562_v19 = vld [vmem:[#allocation11_spill] sm:$0xff]  ;;  %v3535_v41 = vsel %vm3533_vm8, %v7882_v42, %v7938_v27 }
 0x1d7   : > { %3634 = vmatprep.subr.mxu1 %v3541_v29  ;;  %v8097_v50 = vadd.f32 %v1336_v37, %v7885_v30  ;;  %v1447_v57 = vpop.f32.mrf.mxu1  ;;  %v3536_v30 = vsel %vm3533_vm8, %v7900_v45, %v7854_v5  ;;  %v4442_v37 = vld [vmem:[%s9529_s2] sm:$0xff] }
 0x1d8   : > { %v8100_v35 = vadd.f32 %v1447_v57, %v7606_v12  ;;  %3635 = vmatpush1.msra.mxu1 %v3540_v28  ;;  %v1340_v20 = vpop.f32.mrf.mxu0  ;;  %5337 = vmatmul.mubr.msk.f32.gmra.mxu0 %vm374_vm2, %v8082_v16  ;;  %v8115_v12 = vld [vmem:[%s9528_s1 + $0x350] sm:$0xff] }
 0x1d9   : > { %3636 = vmatprep.subr.mxu1 %v3539_v58  ;;  %v8108_v51 = vadd.f32 %v1340_v20, %v7903_v32  ;;  %v5773_v9 = vpop.f32.mrf.mxu1  ;;  %5908 = vmatmul.mubr.msk.f32.gmra.mxu1 %vm374_vm2, %v7925_v47 }
 0x1da   : > { %v8121_v29 = vadd.f32 %v5773_v9, %v9562_v19  ;;  %3637 = vmatpush1.msra.mxu1 %v3538_v63  ;;  %v1342_v14 = vpop.f32.mrf.mxu0  ;;  %3256 = vmatprep.mubr.f32.mxu0 %v9544_v11  ;;  %v4443_v63 = vld [vmem:[%s9529_s2 + $0x8] sm:$0xff] }
 0x1db   : > { %v8125_v32 = vadd.f32 %v1342_v14, %v7912_v44  ;;  %v1457_v47 = vpop.f32.mrf.mxu1  ;;  %5910 = vmatprep.mubr.msk.f32.mxu1 %vm374_vm2, %v7954_v39  ;;  %3638 = vmatprep.subr.mxu1 %v3537_v24  ;;  %v3534_v44 = vsel %vm3533_vm8, %v7927_v59, %v7882_v42  ;;  %v9564_v14 = vld [vmem:[#allocation3_spill] sm:$0xff] }
 0x1dc   : > { %v8133_v5 = vadd.f32 %v1457_v47, %v7647_v61  ;;  %v1346_v45 = vpop.f32.mrf.mxu0  ;;  %5338 = vmatmul.mubr.msk.f32.gmra.mxu0 %vm374_vm2, %v8115_v12  ;;  %3639 = vmatpush1.msra.mxu1 %v3536_v30  ;;  %v5321_v61 = vld [vmem:[%s9528_s1 + $0x358] sm:$0xff] }
 0x1dd   : > { %v8143_v39 = vadd.f32 %v1346_v45, %v7930_v15  ;;  %v5776_v28 = vpop.f32.mrf.mxu1  ;;  %5911 = vmatmul.mubr.msk.f32.gmra.mxu1 %vm374_vm2, %v7988_v4  ;;  %3262 = vmatprep.mubr.f32.mxu0 %v9544_v11  ;;  %v8159_v15 = vpop.permute.xlu0 %4001  ;;  %v6240_v4 = vmov 0  }
 0x1de   : > { %v8152_v27 = vadd.f32 %v5776_v28, %v7665_v22  ;;  %v1348_v48 = vpop.f32.mrf.mxu0  ;;  %5913 = vmatprep.mubr.msk.f32.mxu1 %vm374_vm2, %v8011_v23  ;;  %3640 = vmatprep.subr.mxu1 %v3535_v41 }
 0x1df   : > { %v8157_v42 = vadd.f32 %v1348_v48, %v7941_v38  ;;  %v1467_v59 = vpop.f32.mrf.mxu1  ;;  %3641 = vmatpush1.msra.mxu1 %v3534_v44  ;;  %6026 = vset.pattern.permute.xlu0 %v6240_v4  ;;  %v9565_v44 = vld [vmem:[#allocation4_spill] sm:$0xff] }
 0x1e0   : > { %v8165_v22 = vadd.f32 %v1467_v59, %v7685_v52  ;;  %v1352_v58 = vpop.f32.mrf.mxu0  ;;  %5339 = vmatmul.mubr.msk.f32.gmra.mxu0 %vm374_vm2, %v5321_v61  ;;  %5962 = vmatprep.subr.msk.mxu1 %vm423_vm1, %v7956_v21  ;;  %v5322_v52 = vld [vmem:[%s9528_s1 + $0x360] sm:$0xff]  ;;  %v935_v28 = vadd.f32 %v8000_v7, %v9565_v44  ;;  %v4448_v44 = vld [vmem:[%s9529_s2 + $0x30] sm:$0xff] }
 0x1e1   : > { %v8171_v38 = vadd.f32 %v1352_v58, %v7959_v17  ;;  %v5779_v23 = vpop.f32.mrf.mxu1  ;;  %5914 = vmatmul.mubr.msk.f32.gmra.mxu1 %vm374_vm2, %v8032_v6  ;;  %3268 = vmatprep.mubr.f32.mxu0 %v9544_v11  ;;  %v8187_v17 = vpop.permute.xlu1 %4003  ;;  %v9563_v6 = vld [vmem:[#allocation2_spill] sm:$0xff] }
 0x1e2   : > { %v8183_v57 = vadd.f32 %v5779_v23, %v7703_v25  ;;  %v1354_v20 = vpop.f32.mrf.mxu0  ;;  %5916 = vmatprep.mubr.msk.f32.mxu1 %vm374_vm2, %v8053_v43  ;;  %4460 = vperm.xlu0 %6026, %v4442_v37   ;;  %v929_v24 = vadd.f32 %v7977_v62, %v9563_v6  ;;  %v931_v43 = vadd.f32 %v7992_v54, %v9564_v14  ;;  %v4444_v62 = vld [vmem:[%s9529_s2 + $0x10] sm:$0xff]  ;;  %v4445_v54 = vld [vmem:[%s9529_s2 + $0x18] sm:$0xff]  ;;  %v4446_v7 = vld [vmem:[%s9529_s2 + $0x20] sm:$0xff] }
 0x1e3   : > { %v8192_v9 = vadd.f32 %v1354_v20, %v7970_v46  ;;  %v1477_v30 = vpop.f32.mrf.mxu1  ;;  %6027 = vset.pattern.permute.xlu1 %v6240_v4  ;;  %v8208_v46 = vpop.permute.xlu0 %3999  ;;  %v4447_v20 = vld [vmem:[%s9529_s2 + $0x28] sm:$0xff] }
 0x1e4   : > { %v8195_v19 = vadd.f32 %v1477_v30, %v7725_v40  ;;  %v1358_v25 = vpop.f32.mrf.mxu0  ;;  %5340 = vmatmul.mubr.msk.f32.gmra.mxu0 %vm374_vm2, %v5322_v52  ;;  %4465 = vperm.xlu1 %6027, %v4443_v63   ;;  %v5323_v40 = vld [vmem:[%s9528_s1 + $0x368] sm:$0xff] }
 0x1e5   : > { %v8200_v47 = vadd.f32 %v1358_v25, %v929_v24  ;;  %v5782_v41 = vpop.f32.mrf.mxu1  ;;  %5917 = vmatmul.mubr.msk.f32.gmra.mxu1 %vm374_vm2, %v8082_v16  ;;  %3274 = vmatprep.mubr.f32.mxu0 %v9544_v11  ;;  %v8229_v58 = vpop.permute.xlu1 %3995 }
 0x1e6   : > { %v8217_v45 = vadd.f32 %v5782_v41, %v7738_v36  ;;  %v1360_v16 = vpop.f32.mrf.mxu0  ;;  %5919 = vmatprep.mubr.msk.f32.mxu1 %vm374_vm2, %v8115_v12  ;;  %4475 = vperm.xlu0 %6026, %v4445_v54   ;;  %v9566_v36 = vld [vmem:[#allocation5_spill] sm:$0xff] }
 0x1e7   : > { %v8223_v48 = vadd.f32 %v1360_v16, %v931_v43  ;;  %v1487_v59 = vpop.f32.mrf.mxu1  ;;  %v937_v23 = vadd.f32 %v8014_v34, %v9566_v36  ;;  %v8254_v14 = vpop.permute.xlu0 %3997  ;;  %v9568_v43 = vld [vmem:[#allocation12_spill] sm:$0xff] }
 0x1e8   : > { %v8226_v4 = vadd.f32 %v1487_v59, %v7764_v33  ;;  %v1364_v37 = vpop.f32.mrf.mxu0  ;;  %5341 = vmatmul.mubr.msk.f32.gmra.mxu0 %vm374_vm2, %v5323_v40  ;;  %4470 = vperm.xlu1 %6027, %v4444_v62   ;;  %v5324_v33 = vld [vmem:[%s9528_s1 + $0x370] sm:$0xff] }
 0x1e9   : > { %v8233_v12 = vadd.f32 %v1364_v37, %v935_v28  ;;  %v5785_v63 = vpop.f32.mrf.mxu1  ;;  %5920 = vmatmul.mubr.msk.f32.gmra.mxu1 %vm374_vm2, %v5321_v61  ;;  %3280 = vmatprep.mubr.f32.mxu0 %v9544_v11  ;;  %v9567_v61 = vld [vmem:[#allocation6_spill] sm:$0xff]  ;;  %v4449_v28 = vld [vmem:[%s9529_s2 + $0x38] sm:$0xff]  ;;  %v8282_v36 = vpop.permute.xlu1 %3993 }
 0x1ea   : > { %v8247_v34 = vadd.f32 %v5785_v63, %v7778_v1  ;;  %v1366_v6 = vpop.f32.mrf.mxu0  ;;  %5922 = vmatprep.mubr.msk.f32.mxu1 %vm374_vm2, %v5322_v52  ;;  %4485 = vperm.xlu0 %6026, %v4447_v20   ;;  %v941_v24 = vadd.f32 %v8021_v55, %v9567_v61  ;;  %v9569_v1 = vld [vmem:[#allocation7_spill] sm:$0xff]  ;;  %v5325_v55 = vld [vmem:[%s9528_s1 + $0x378] sm:$0xff] }
 0x1eb   : > { %v8252_v30 = vadd.f32 %v1366_v6, %v937_v23  ;;  %v1497_v25 = vpop.f32.mrf.mxu1  ;;  %v943_v54 = vadd.f32 %v8035_v31, %v9569_v1  ;;  %v9570_v31 = vld [vmem:[#allocation13_spill] sm:$0xff]  ;;  %v9571_v23 = vld [vmem:[#allocation8_spill] sm:$0xff]  ;;  %v9573_v1 = vld [vmem:[#allocation14_spill] sm:$0xff] }
 0x1ec   : > { %v8257_v41 = vadd.f32 %v1497_v25, %v9568_v43  ;;  %v1370_v62 = vpop.f32.mrf.mxu0  ;;  %5342 = vmatmul.mubr.msk.f32.gmra.mxu0 %vm374_vm2, %v5324_v33  ;;  %4480 = vperm.xlu1 %6027, %v4446_v7   ;;  %v947_v63 = vadd.f32 %v8042_v8, %v9571_v23  ;;  %v5362_v8 = vld [vmem:[%s9528_s1 + $0x388] sm:$0xff]  ;;  %v5363_v23 = vld [vmem:[%s9528_s1 + $0x390] sm:$0xff] }
 0x1ed   : > { %v8262_v52 = vadd.f32 %v1370_v62, %v941_v24  ;;  %v5788_v16 = vpop.f32.mrf.mxu1  ;;  %5923 = vmatmul.mubr.msk.f32.gmra.mxu1 %vm374_vm2, %v5323_v40  ;;  %3286 = vmatprep.mubr.f32.mxu0 %v9544_v11  ;;  %v5361_v40 = vld [vmem:[%s9528_s1 + $0x380] sm:$0xff] }
 0x1ee   : > { %v8276_v59 = vadd.f32 %v5788_v16, %v9570_v31  ;;  %v1372_v37 = vpop.f32.mrf.mxu0  ;;  %5925 = vmatprep.mubr.msk.f32.mxu1 %vm374_vm2, %v5324_v33  ;;  %4495 = vperm.xlu0 %6026, %v4449_v28   ;;  %v9572_v33 = vld [vmem:[#allocation9_spill] sm:$0xff]  ;;  %v4450_v62 = vld [vmem:[%s9529_s2 + $0x40] sm:$0xff]  ;;  %v4020_v16 = vsel %vm4011_vm9, %v8140_v60, %v7967_v49  ;;  %v4019_v49 = vsel %vm4011_vm9, %v8159_v15, %v8187_v17  ;;  %v8328_v60 = vpop.permute.xlu1 %3991 }
 0x1ef   : > { %v8286_v7 = vadd.f32 %v1372_v37, %v943_v54  ;;  %v1507_v20 = vpop.f32.mrf.mxu1  ;;  %v949_v24 = vadd.f32 %v8060_v26, %v9572_v33  ;;  %v4451_v26 = vld [vmem:[%s9529_s2 + $0x48] sm:$0xff] }
 0x1f0   : > { %v8289_v6 = vadd.f32 %v1507_v20, %v7827_v2  ;;  %v1376_v61 = vpop.f32.mrf.mxu0  ;;  %5343 = vmatmul.mubr.msk.f32.gmra.mxu0 %vm374_vm2, %v5325_v55  ;;  %4490 = vperm.xlu1 %6027, %v4448_v44   ;;  %v8301_v2 = vpop.permute.xlu0 %3989 }
 0x1f1   : > { %v8294_v25 = vadd.f32 %v1376_v61, %v947_v63  ;;  %v5791_v43 = vpop.f32.mrf.mxu1  ;;  %5926 = vmatmul.mubr.msk.f32.gmra.mxu1 %vm374_vm2, %v5325_v55  ;;  %5938 = vmatprep.mubr.msk.f32.mxu0 %vm374_vm2, %v5361_v40 }
 0x1f2   : > { %v8310_v54 = vadd.f32 %v5791_v43, %v9573_v1  ;;  %v1378_v55 = vpop.f32.mrf.mxu0  ;;  %3674 = vmatprep.mubr.f32.mxu1 %v9544_v11  ;;  %4505 = vperm.xlu0 %6026, %v4451_v26   ;;  %v9574_v26 = vld [vmem:[#allocation15_spill] sm:$0xff] }
 0x1f3   : > { %v8316_v44 = vadd.f32 %v1378_v55, %v949_v24  ;;  %v1517_v28 = vpop.f32.mrf.mxu1 }
 0x1f4   : > { %v8319_v31 = vadd.f32 %v1517_v28, %v7852_v3  ;;  %v5804_v37 = vpop.f32.mrf.mxu0  ;;  %5939 = vmatmul.mubr.msk.f32.vlgmr.msra.gmra.mxu0 %vm374_vm2, %v5362_v8  ;;  %4500 = vperm.xlu1 %6027, %v4450_v62   ;;  %v5364_v3 = vld [vmem:[%s9528_s1 + $0x398] sm:$0xff] }
 0x1f5   : > { %v1764_v63 = vpop.f32.mrf.mxu1  ;;  %v8331_v20 = vadd.f32 %v5804_v37, %v8085_v56  ;;  %5379 = vmatmul.mubr.msk.f32.vlgmr.msra.gmra.mxu1 %vm374_vm2, %v5361_v40  ;;  %5429 = vmatpush1.msk.msra.mxu0 %vm423_vm1, %v4020_v16  ;;  %v4018_v56 = vsel %vm4011_vm9, %v8208_v46, %v8159_v15  ;;  %v4016_v37 = vsel %vm4011_vm9, %v8282_v36, %v8229_v58 }
 0x1f6   : > { %v8339_v61 = vadd.f32 %v1764_v63, %v7862_v13  ;;  %5963 = vmatpush3.msk.msra.mxu1 %vm423_vm1, %v7956_v21  ;;  %v1925_v33 = vpop.f32.mrf.mxu0  ;;  %3680 = vmatprep.mubr.f32.mxu1 %v9544_v11  ;;  %v8354_v13 = vld [vmem:[%s9528_s1 + $0x3a0] sm:$0xff]  ;;  %v3988_v21 = vpop.permute.xlu0 %3987 }
 0x1f7   : > { %v1766_v40 = vpop.f32.mrf.mxu1  ;;  %v8348_v24 = vadd.f32 %v1925_v33, %v8100_v35  ;;  %5941 = vmatprep.mubr.msk.f32.mxu0 %vm374_vm2, %v5363_v23  ;;  %4112 = vmatprep.subr.mxu0 %v4019_v49  ;;  %v4017_v35 = vsel %vm4011_vm9, %v8229_v58, %v8254_v14  ;;  %v9575_v49 = vld [vmem:[#allocation16_spill] sm:$0xff]  ;;  %v8409_v58 = vld [vmem:[%s9528_s1 + $0x3b8] sm:$0xff] }
 0x1f8   : > { %v8357_v43 = vadd.f32 %v1766_v40, %v7879_v18  ;;  %v5807_v62 = vpop.f32.mrf.mxu0  ;;  %5942 = vmatmul.mubr.msk.f32.gmra.mxu0 %vm374_vm2, %v5364_v3  ;;  %5964 = vmatprep.subr.mxu1 %v8187_v17  ;;  %v8371_v18 = vld [vmem:[%s9528_s1 + $0x3a8] sm:$0xff]  ;;  %v9576_v40 = vld [vmem:[#allocation17_spill] sm:$0xff] }
 0x1f9   : > { %v1770_v15 = vpop.f32.mrf.mxu1  ;;  %v8365_v46 = vadd.f32 %v5807_v62, %v8121_v29  ;;  %5380 = vmatmul.mubr.msk.f32.gmra.mxu1 %vm374_vm2, %v5362_v8  ;;  %4113 = vmatpush1.msra.mxu0 %v4018_v56  ;;  %v8382_v29 = vld [vmem:[%s9528_s1 + $0x3b0] sm:$0xff]  ;;  %v3984_v8 = vpop.permute.xlu1 %3983 }
 0x1fa   : > { %v8374_v1 = vadd.f32 %v1770_v15, %v9574_v26  ;;  %v1935_v16 = vpop.f32.mrf.mxu0  ;;  %3686 = vmatprep.mubr.f32.mxu1 %v9544_v11  ;;  %5944 = vmatprep.mubr.msk.f32.mxu0 %vm374_vm2, %v8354_v13  ;;  %v3986_v36 = vpop.permute.xlu0 %3985  ;;  %v4014_v26 = vsel %vm4011_vm9, %v3988_v21, %v8301_v2 }
 0x1fb   : > { %v1772_v55 = vpop.f32.mrf.mxu1  ;;  %v8385_v28 = vadd.f32 %v1935_v16, %v8133_v5  ;;  %5965 = vmatpush3.msra.mxu1 %v8187_v17  ;;  %4114 = vmatprep.subr.mxu0 %v4017_v35  ;;  %v4015_v5 = vsel %vm4011_vm9, %v8301_v2, %v8328_v60  ;;  %v9577_v16 = vld [vmem:[#allocation18_spill] sm:$0xff]  ;;  %v9578_v2 = vld [vmem:[#allocation19_spill] sm:$0xff] }
 0x1fc   : > { %v8392_v63 = vadd.f32 %v1772_v55, %v9575_v49  ;;  %v5810_v33 = vpop.f32.mrf.mxu0  ;;  %5945 = vmatmul.mubr.msk.f32.gmra.mxu0 %vm374_vm2, %v8371_v18  ;;  %5966 = vmatprep.subr.mxu1 %v8254_v14 }
 0x1fd   : > { %v1776_v56 = vpop.f32.mrf.mxu1  ;;  %v8401_v17 = vadd.f32 %v5810_v33, %v8152_v27  ;;  %5381 = vmatmul.mubr.msk.f32.gmra.mxu1 %vm374_vm2, %v5363_v23  ;;  %5947 = vmatprep.mubr.msk.f32.mxu0 %vm374_vm2, %v8382_v29  ;;  %v8418_v27 = vld [vmem:[%s9528_s1 + $0x3c0] sm:$0xff]  ;;  %v4013_v33 = vsel %vm4011_vm9, %v3984_v8, %v3986_v36 }
 0x1fe   : > { %v8412_v62 = vadd.f32 %v1776_v56, %v9576_v40  ;;  %v1945_v35 = vpop.f32.mrf.mxu0  ;;  %3692 = vmatprep.mubr.f32.mxu1 %v9544_v11  ;;  %4115 = vmatpush1.msra.mxu0 %v4016_v37  ;;  %v3982_v37 = vpop.permute.xlu1 %3981 }
 0x1ff   : > { %v1778_v23 = vpop.f32.mrf.mxu1  ;;  %v8421_v15 = vadd.f32 %v1945_v35, %v8165_v22  ;;  %5967 = vmatpush3.msra.mxu1 %v8254_v14  ;;  %4116 = vmatprep.subr.mxu0 %v4015_v5  ;;  %v8442_v14 = vld [vmem:[%s9528_s1 + $0x3c8] sm:$0xff]  ;;  %v4012_v35 = vsel %vm4011_vm9, %v3982_v37, %v3984_v8  ;;  %v9579_v8 = vld [vmem:[#allocation10_spill] sm:$0xff] }
 0x200   : > { %v8427_v55 = vadd.f32 %v1778_v23, %v9577_v16  ;;  %v5813_v49 = vpop.f32.mrf.mxu0  ;;  %5948 = vmatmul.mubr.msk.f32.gmra.mxu0 %vm374_vm2, %v8409_v58  ;;  %5968 = vmatprep.subr.mxu1 %v8328_v60 }
 0x201   : > { %v1782_v22 = vpop.f32.mrf.mxu1  ;;  %v8434_v56 = vadd.f32 %v5813_v49, %v8183_v57  ;;  %5382 = vmatmul.mubr.msk.f32.gmra.mxu1 %vm374_vm2, %v5364_v3  ;;  %5950 = vmatprep.mubr.msk.f32.mxu0 %vm374_vm2, %v8418_v27  ;;  %v8451_v57 = vld [vmem:[%s9528_s1 + $0x3d0] sm:$0xff] }
 0x202   : > { %v8445_v21 = vadd.f32 %v1782_v22, %v9578_v2  ;;  %v1955_v5 = vpop.f32.mrf.mxu0  ;;  %3698 = vmatprep.mubr.f32.mxu1 %v9544_v11  ;;  %4117 = vmatpush1.msra.mxu0 %v4014_v26  ;;  %v4452_v26 = vld [vmem:[%s9529_s2 + $0x50] sm:$0xff] }
 0x203   : > { %v1784_v3 = vpop.f32.mrf.mxu1  ;;  %v8454_v40 = vadd.f32 %v1955_v5, %v8195_v19  ;;  %5969 = vmatpush3.msra.mxu1 %v8328_v60  ;;  %4118 = vmatprep.subr.mxu0 %v4013_v33  ;;  %v4453_v60 = vld [vmem:[%s9529_s2 + $0x58] sm:$0xff]  ;;  %v9580_v2 = vld [vmem:[#allocation20_spill] sm:$0xff] }
 0x204   : > { %v8459_v23 = vadd.f32 %v1784_v3, %v7964_v53  ;;  %v5816_v16 = vpop.f32.mrf.mxu0  ;;  %5951 = vmatmul.mubr.msk.f32.gmra.mxu0 %vm374_vm2, %v8442_v14  ;;  %5970 = vmatprep.subr.mxu1 %v3986_v36  ;;  %v8476_v53 = vld [vmem:[%s9528_s1 + $0x3d8] sm:$0xff] }
 0x205   : > { %v1788_v49 = vpop.f32.mrf.mxu1  ;;  %v8467_v19 = vadd.f32 %v5816_v16, %v8217_v45  ;;  %5383 = vmatmul.mubr.msk.f32.gmra.mxu1 %vm374_vm2, %v8354_v13  ;;  %5953 = vmatprep.mubr.msk.f32.mxu0 %vm374_vm2, %v8451_v57  ;;  %v8488_v13 = vld [vmem:[%s9528_s1 + $0x3e0] sm:$0xff] }
 0x206   : > { %v8482_v37 = vadd.f32 %v1788_v49, %v9579_v8  ;;  %v1965_v45 = vpop.f32.mrf.mxu0  ;;  %3704 = vmatprep.mubr.f32.mxu1 %v9544_v11  ;;  %4119 = vmatpush1.msra.mxu0 %v4012_v35  ;;  %v4454_v16 = vld [vmem:[%s9529_s2 + $0x60] sm:$0xff] }
 0x207   : > { %v1790_v33 = vpop.f32.mrf.mxu1  ;;  %v8491_v22 = vadd.f32 %v1965_v45, %v8226_v4  ;;  %5971 = vmatpush3.msra.mxu1 %v3986_v36  ;;  %4510 = vperm.xlu1 %6027, %v4452_v26   ;;  %v8511_v4 = vld [vmem:[%s9528_s1 + $0x3e8] sm:$0xff]  ;;  %v9582_v26 = vld [vmem:[#allocation21_spill] sm:$0xff] }
 0x208   : > { %v8494_v5 = vadd.f32 %v1790_v33, %v9580_v2  ;;  %v5819_v3 = vpop.f32.mrf.mxu0  ;;  %5954 = vmatmul.mubr.msk.f32.gmra.mxu0 %vm374_vm2, %v8476_v53  ;;  %4515 = vperm.xlu0 %6026, %v4453_v60   ;;  %v4455_v36 = vld [vmem:[%s9529_s2 + $0x68] sm:$0xff]  ;;  %v9584_v33 = vld [vmem:[#allocation22_spill] sm:$0xff] }
 0x209   : > { %v1794_v49 = vpop.f32.mrf.mxu1  ;;  %v8502_v35 = vadd.f32 %v5819_v3, %v8247_v34  ;;  %5384 = vmatmul.mubr.msk.f32.gmra.mxu1 %vm374_vm2, %v8371_v18  ;;  %5956 = vmatprep.mubr.msk.f32.mxu0 %vm374_vm2, %v8488_v13  ;;  %v8523_v18 = vld [vmem:[%s9528_s1 + $0x3f0] sm:$0xff] }
 0x20a   : > { %v8517_v60 = vadd.f32 %v1794_v49, %v9582_v26  ;;  %v1975_v34 = vpop.f32.mrf.mxu0  ;;  %3710 = vmatprep.mubr.f32.mxu1 %v9544_v11  ;;  %v4456_v49 = vld [vmem:[%s9529_s2 + $0x70] sm:$0xff] }
 0x20b   : > { %9581 = vst [vmem:[#allocation11_spill] sm:$0xff] %v8502_v35  ;;  %v1796_v8 = vpop.f32.mrf.mxu1  ;;  %v8526_v45 = vadd.f32 %v1975_v34, %v8257_v41  ;;  %4520 = vperm.xlu1 %6027, %v4454_v16   ;;  %v8546_v41 = vld [vmem:[%s9528_s1 + $0x3f8] sm:$0xff] }
 0x20c   : > { %v8529_v2 = vadd.f32 %v1796_v8, %v9584_v33  ;;  %v5822_v3 = vpop.f32.mrf.mxu0  ;;  %5957 = vmatmul.mubr.msk.f32.gmra.mxu0 %vm374_vm2, %v8511_v4  ;;  %4525 = vperm.xlu0 %6026, %v4455_v36   ;;  %v4457_v16 = vld [vmem:[%s9529_s2 + $0x78] sm:$0xff]  ;;  %v9586_v36 = vld [vmem:[#allocation23_spill] sm:$0xff]  ;;  %v9587_v33 = vld [vmem:[#allocation24_spill] sm:$0xff] }
 0x20d   : > { %9583 = vst [vmem:[#allocation2_spill] sm:$0xff] %v8526_v45  ;;  %v1800_v26 = vpop.f32.mrf.mxu1  ;;  %v8537_v35 = vadd.f32 %v5822_v3, %v8276_v59  ;;  %5385 = vmatmul.mubr.msk.f32.gmra.mxu1 %vm374_vm2, %v8382_v29  ;;  %5959 = vmatprep.mubr.msk.f32.mxu0 %vm374_vm2, %v8523_v18 }
 0x20e   : > { %v8552_v34 = vadd.f32 %v1800_v26, %v9586_v36  ;;  %v1985_v59 = vpop.f32.mrf.mxu0  ;;  %3716 = vmatprep.mubr.f32.mxu1 %v9544_v11 }
 0x20f   : > { %9585 = vst [vmem:[#allocation3_spill] sm:$0xff] %v8537_v35  ;;  %v1802_v8 = vpop.f32.mrf.mxu1  ;;  %v8556_v29 = vadd.f32 %v1985_v59, %v8289_v6  ;;  %4530 = vperm.xlu1 %6027, %v4456_v49   ;;  %v8572_v6 = vld [vmem:[%s9528_s1 + $0x400] sm:$0xff]  ;;  %v9588_v49 = vld [vmem:[#allocation25_spill] sm:$0xff] }
 0x210   : > { %v8559_v3 = vadd.f32 %v1802_v8, %v9587_v33  ;;  %v5825_v35 = vpop.f32.mrf.mxu0  ;;  %5960 = vmatmul.mubr.msk.f32.gmra.mxu0 %vm374_vm2, %v8546_v41  ;;  %4535 = vperm.xlu0 %6026, %v4457_v16  }
 0x211   : > { %v1806_v45 = vpop.f32.mrf.mxu1  ;;  %v8564_v26 = vadd.f32 %v5825_v35, %v8310_v54  ;;  %5386 = vmatmul.mubr.msk.f32.gmra.mxu1 %vm374_vm2, %v8409_v58  ;;  %4152 = vmatprep.mubr.f32.mxu0 %v9544_v11 }
 0x212   : > { %v8575_v36 = vadd.f32 %v1806_v45, %v9588_v49  ;;  %v1995_v59 = vpop.f32.mrf.mxu0  ;;  %3722 = vmatprep.mubr.f32.mxu1 %v9544_v11 }
 0x213   : > { %v1808_v16 = vpop.f32.mrf.mxu1  ;;  %v8579_v54 = vadd.f32 %v1995_v59, %v8319_v31  ;;  %v8595_v31 = vld [vmem:[%s9528_s1 + $0x408] sm:$0xff] }
 0x214   : > { %v8582_v35 = vadd.f32 %v1808_v16, %v8063_v10  ;;  %v2242_v58 = vpop.f32.mrf.mxu0  ;;  %5430 = vmatmul.mubr.msk.f32.vlgmr.msra.gmra.mxu0 %vm374_vm2, %v8572_v6 }
 0x215   : > { %v1812_v8 = vpop.f32.mrf.mxu1  ;;  %v8587_v33 = vadd.f32 %v2242_v58, %v8339_v61  ;;  %5387 = vmatmul.mubr.msk.f32.gmra.mxu1 %vm374_vm2, %v8418_v27  ;;  %4158 = vmatprep.mubr.f32.mxu0 %v9544_v11 }
 0x216   : > { %v8598_v10 = vadd.f32 %v1812_v8, %v8074_v0  ;;  %v2244_v45 = vpop.f32.mrf.mxu0  ;;  %3728 = vmatprep.mubr.f32.mxu1 %v9544_v11  ;;  %v8618_v0 = vld [vmem:[%s9528_s1 + $0x410] sm:$0xff] }
 0x217   : > { %v1814_v49 = vpop.f32.mrf.mxu1  ;;  %v8602_v61 = vadd.f32 %v2244_v45, %v8357_v43 }
 0x218   : > { %v8605_v59 = vadd.f32 %v1814_v49, %v8097_v50  ;;  %v2248_v27 = vpop.f32.mrf.mxu0  ;;  %5431 = vmatmul.mubr.msk.f32.gmra.mxu0 %vm374_vm2, %v8595_v31 }
 0x219   : > { %v1818_v16 = vpop.f32.mrf.mxu1  ;;  %v8610_v58 = vadd.f32 %v2248_v27, %v8374_v1  ;;  %5388 = vmatmul.mubr.msk.f32.gmra.mxu1 %vm374_vm2, %v8442_v14  ;;  %4164 = vmatprep.mubr.f32.mxu0 %v9544_v11 }
 0x21a   : > { %v8621_v50 = vadd.f32 %v1818_v16, %v8108_v51  ;;  %v2250_v43 = vpop.f32.mrf.mxu0  ;;  %3734 = vmatprep.mubr.f32.mxu1 %v9544_v11  ;;  %v8641_v51 = vld [vmem:[%s9528_s1 + $0x418] sm:$0xff] }
 0x21b   : > { %v1820_v8 = vpop.f32.mrf.mxu1  ;;  %v8625_v1 = vadd.f32 %v2250_v43, %v8392_v63 }
 0x21c   : > { %v8628_v45 = vadd.f32 %v1820_v8, %v8125_v32  ;;  %v2254_v14 = vpop.f32.mrf.mxu0  ;;  %5432 = vmatmul.mubr.msk.f32.gmra.mxu0 %vm374_vm2, %v8618_v0 }
 0x21d   : > { %v1824_v49 = vpop.f32.mrf.mxu1  ;;  %v8633_v27 = vadd.f32 %v2254_v14, %v8412_v62  ;;  %5389 = vmatmul.mubr.msk.f32.gmra.mxu1 %vm374_vm2, %v8451_v57  ;;  %4170 = vmatprep.mubr.f32.mxu0 %v9544_v11 }
 0x21e   : > { %v8644_v32 = vadd.f32 %v1824_v49, %v8143_v39  ;;  %v2256_v63 = vpop.f32.mrf.mxu0  ;;  %3740 = vmatprep.mubr.f32.mxu1 %v9544_v11  ;;  %v8664_v39 = vld [vmem:[%s9528_s1 + $0x420] sm:$0xff] }
 0x21f   : > { %v1826_v16 = vpop.f32.mrf.mxu1  ;;  %v8648_v62 = vadd.f32 %v2256_v63, %v8427_v55 }
 0x220   : > { %v8651_v43 = vadd.f32 %v1826_v16, %v8157_v42  ;;  %v2260_v57 = vpop.f32.mrf.mxu0  ;;  %5433 = vmatmul.mubr.msk.f32.gmra.mxu0 %vm374_vm2, %v8641_v51 }
 0x221   : > { %v1830_v8 = vpop.f32.mrf.mxu1  ;;  %v8656_v14 = vadd.f32 %v2260_v57, %v8445_v21  ;;  %5390 = vmatmul.mubr.msk.f32.gmra.mxu1 %vm374_vm2, %v8476_v53  ;;  %4176 = vmatprep.mubr.f32.mxu0 %v9544_v11 }
 0x222   : > { %v8667_v42 = vadd.f32 %v1830_v8, %v8171_v38  ;;  %v2262_v55 = vpop.f32.mrf.mxu0  ;;  %3746 = vmatprep.mubr.f32.mxu1 %v9544_v11  ;;  %v8687_v38 = vld [vmem:[%s9528_s1 + $0x428] sm:$0xff] }
 0x223   : > { %v1832_v49 = vpop.f32.mrf.mxu1  ;;  %v8671_v21 = vadd.f32 %v2262_v55, %v8459_v23 }
 0x224   : > { %v8674_v63 = vadd.f32 %v1832_v49, %v8192_v9  ;;  %v2266_v53 = vpop.f32.mrf.mxu0  ;;  %5434 = vmatmul.mubr.msk.f32.gmra.mxu0 %vm374_vm2, %v8664_v39 }
 0x225   : > { %v1836_v16 = vpop.f32.mrf.mxu1  ;;  %v8679_v57 = vadd.f32 %v2266_v53, %v8482_v37  ;;  %5391 = vmatmul.mubr.msk.f32.gmra.mxu1 %vm374_vm2, %v8488_v13  ;;  %4182 = vmatprep.mubr.f32.mxu0 %v9544_v11 }
 0x226   : > { %v8690_v9 = vadd.f32 %v1836_v16, %v8200_v47  ;;  %v2268_v23 = vpop.f32.mrf.mxu0  ;;  %3752 = vmatprep.mubr.f32.mxu1 %v9544_v11  ;;  %v8710_v47 = vld [vmem:[%s9528_s1 + $0x430] sm:$0xff] }
 0x227   : > { %v1838_v8 = vpop.f32.mrf.mxu1  ;;  %v8694_v37 = vadd.f32 %v2268_v23, %v8494_v5 }
 0x228   : > { %v8697_v55 = vadd.f32 %v1838_v8, %v8223_v48  ;;  %v2272_v13 = vpop.f32.mrf.mxu0  ;;  %5435 = vmatmul.mubr.msk.f32.gmra.mxu0 %vm374_vm2, %v8687_v38 }
 0x229   : > { %v1842_v49 = vpop.f32.mrf.mxu1  ;;  %v8702_v53 = vadd.f32 %v2272_v13, %v8517_v60  ;;  %5392 = vmatmul.mubr.msk.f32.gmra.mxu1 %vm374_vm2, %v8511_v4  ;;  %4188 = vmatprep.mubr.f32.mxu0 %v9544_v11 }
 0x22a   : > { %v8713_v48 = vadd.f32 %v1842_v49, %v8233_v12  ;;  %v2274_v5 = vpop.f32.mrf.mxu0  ;;  %3758 = vmatprep.mubr.f32.mxu1 %v9544_v11  ;;  %v8733_v12 = vld [vmem:[%s9528_s1 + $0x438] sm:$0xff] }
 0x22b   : > { %v1844_v16 = vpop.f32.mrf.mxu1  ;;  %v8717_v60 = vadd.f32 %v2274_v5, %v8529_v2 }
 0x22c   : > { %v8720_v23 = vadd.f32 %v1844_v16, %v8252_v30  ;;  %v2278_v4 = vpop.f32.mrf.mxu0  ;;  %5436 = vmatmul.mubr.msk.f32.gmra.mxu0 %vm374_vm2, %v8710_v47 }
 0x22d   : > { %v1848_v8 = vpop.f32.mrf.mxu1  ;;  %v8725_v13 = vadd.f32 %v2278_v4, %v8552_v34  ;;  %5393 = vmatmul.mubr.msk.f32.gmra.mxu1 %vm374_vm2, %v8523_v18  ;;  %4194 = vmatprep.mubr.f32.mxu0 %v9544_v11 }
 0x22e   : > { %v8736_v30 = vadd.f32 %v1848_v8, %v8262_v52  ;;  %v2280_v2 = vpop.f32.mrf.mxu0  ;;  %3764 = vmatprep.mubr.f32.mxu1 %v9544_v11  ;;  %v5420_v52 = vld [vmem:[%s9528_s1 + $0x440] sm:$0xff] }
 0x22f   : > { %v1850_v49 = vpop.f32.mrf.mxu1  ;;  %v8740_v34 = vadd.f32 %v2280_v2, %v8559_v3 }
 0x230   : > { %v8743_v5 = vadd.f32 %v1850_v49, %v8286_v7  ;;  %v2284_v18 = vpop.f32.mrf.mxu0  ;;  %5437 = vmatmul.mubr.msk.f32.gmra.mxu0 %vm374_vm2, %v8733_v12 }
 0x231   : > { %v1854_v16 = vpop.f32.mrf.mxu1  ;;  %v8748_v4 = vadd.f32 %v2284_v18, %v8575_v36  ;;  %5394 = vmatmul.mubr.msk.f32.gmra.mxu1 %vm374_vm2, %v8546_v41  ;;  %4200 = vmatprep.mubr.f32.mxu0 %v9544_v11 }
 0x232   : > { %v8757_v7 = vadd.f32 %v1854_v16, %v8294_v25  ;;  %v2286_v3 = vpop.f32.mrf.mxu0  ;;  %5972 = vmatprep.mubr.msk.f32.mxu1 %vm374_vm2, %v8572_v6  ;;  %v5421_v25 = vld [vmem:[%s9528_s1 + $0x448] sm:$0xff] }
 0x233   : > { %v1856_v8 = vpop.f32.mrf.mxu1  ;;  %v8762_v36 = vadd.f32 %v2286_v3, %v8582_v35 }
 0x234   : > { %v8765_v2 = vadd.f32 %v1856_v8, %v8316_v44  ;;  %v2290_v41 = vpop.f32.mrf.mxu0  ;;  %5438 = vmatmul.mubr.msk.f32.gmra.mxu0 %vm374_vm2, %v5420_v52 }
 0x235   : > { %v8769_v49 = vadd.f32 %v2290_v41, %v8598_v10  ;;  %v5838_v18 = vpop.f32.mrf.mxu1  ;;  %5973 = vmatmul.mubr.msk.f32.vlgmr.msra.gmra.mxu1 %vm374_vm2, %v8595_v31  ;;  %4206 = vmatprep.mubr.f32.mxu0 %v9544_v11 }
 0x236   : > { %v8778_v6 = vadd.f32 %v5838_v18, %v8331_v20  ;;  %v2292_v44 = vpop.f32.mrf.mxu0  ;;  %5975 = vmatprep.mubr.msk.f32.mxu1 %vm374_vm2, %v8618_v0  ;;  %v5422_v20 = vld [vmem:[%s9528_s1 + $0x450] sm:$0xff] }
 0x237   : > { %v8783_v35 = vadd.f32 %v2292_v44, %v8605_v59  ;;  %v2403_v10 = vpop.f32.mrf.mxu1 }
 0x238   : > { %v8786_v16 = vadd.f32 %v2403_v10, %v8348_v24  ;;  %v2296_v31 = vpop.f32.mrf.mxu0  ;;  %5439 = vmatmul.mubr.msk.f32.gmra.mxu0 %vm374_vm2, %v5421_v25 }
 0x239   : > { %v8790_v3 = vadd.f32 %v2296_v31, %v8621_v50  ;;  %v5841_v8 = vpop.f32.mrf.mxu1  ;;  %5976 = vmatmul.mubr.msk.f32.gmra.mxu1 %vm374_vm2, %v8641_v51  ;;  %4212 = vmatprep.mubr.f32.mxu0 %v9544_v11 }
 0x23a   : > { %v8799_v59 = vadd.f32 %v5841_v8, %v8365_v46  ;;  %v2298_v24 = vpop.f32.mrf.mxu0  ;;  %5978 = vmatprep.mubr.msk.f32.mxu1 %vm374_vm2, %v8664_v39  ;;  %v5423_v46 = vld [vmem:[%s9528_s1 + $0x458] sm:$0xff] }
 0x23b   : > { %v8804_v0 = vadd.f32 %v2298_v24, %v8628_v45  ;;  %v2413_v50 = vpop.f32.mrf.mxu1 }
 0x23c   : > { %v8807_v41 = vadd.f32 %v2413_v50, %v8385_v28  ;;  %v2302_v51 = vpop.f32.mrf.mxu0  ;;  %5440 = vmatmul.mubr.msk.f32.gmra.mxu0 %vm374_vm2, %v5422_v20 }
 0x23d   : > { %v8811_v18 = vadd.f32 %v2302_v51, %v8644_v32  ;;  %v5844_v44 = vpop.f32.mrf.mxu1  ;;  %5979 = vmatmul.mubr.msk.f32.gmra.mxu1 %vm374_vm2, %v8687_v38  ;;  %4218 = vmatprep.mubr.f32.mxu0 %v9544_v11 }
 0x23e   : > { %v8820_v45 = vadd.f32 %v5844_v44, %v8401_v17  ;;  %v2304_v28 = vpop.f32.mrf.mxu0  ;;  %5981 = vmatprep.mubr.msk.f32.mxu1 %vm374_vm2, %v8710_v47  ;;  %v5424_v17 = vld [vmem:[%s9528_s1 + $0x460] sm:$0xff] }
 0x23f   : > { %v8825_v32 = vadd.f32 %v2304_v28, %v8651_v43  ;;  %v2423_v39 = vpop.f32.mrf.mxu1 }
 0x240   : > { %v8828_v10 = vadd.f32 %v2423_v39, %v8421_v15  ;;  %v2308_v38 = vpop.f32.mrf.mxu0  ;;  %5441 = vmatmul.mubr.msk.f32.gmra.mxu0 %vm374_vm2, %v5423_v46 }
 0x241   : > { %v8832_v31 = vadd.f32 %v2308_v38, %v8667_v42  ;;  %v5847_v8 = vpop.f32.mrf.mxu1  ;;  %5982 = vmatmul.mubr.msk.f32.gmra.mxu1 %vm374_vm2, %v8733_v12  ;;  %4224 = vmatprep.mubr.f32.mxu0 %v9544_v11 }
 0x242   : > { %v8841_v43 = vadd.f32 %v5847_v8, %v8434_v56  ;;  %v2310_v15 = vpop.f32.mrf.mxu0  ;;  %5984 = vmatprep.mubr.msk.f32.mxu1 %vm374_vm2, %v5420_v52  ;;  %v5425_v56 = vld [vmem:[%s9528_s1 + $0x468] sm:$0xff]  ;;  %v9590_v8 = vld [vmem:[#allocation2_spill] sm:$0xff] }
 0x243   : > { %v8845_v47 = vadd.f32 %v2310_v15, %v8674_v63  ;;  %v2433_v42 = vpop.f32.mrf.mxu1 }
 0x244   : > { %v8848_v24 = vadd.f32 %v2433_v42, %v8454_v40  ;;  %v2314_v12 = vpop.f32.mrf.mxu0  ;;  %5442 = vmatmul.mubr.msk.f32.gmra.mxu0 %vm374_vm2, %v5424_v17 }
 0x245   : > { %v8852_v50 = vadd.f32 %v2314_v12, %v8690_v9  ;;  %v5850_v51 = vpop.f32.mrf.mxu1  ;;  %5985 = vmatmul.mubr.msk.f32.gmra.mxu1 %vm374_vm2, %v5421_v25  ;;  %4230 = vmatprep.mubr.f32.mxu0 %v9544_v11 }
 0x246   : > { %v8860_v63 = vadd.f32 %v5850_v51, %v8467_v19  ;;  %v2316_v40 = vpop.f32.mrf.mxu0  ;;  %5987 = vmatprep.mubr.msk.f32.mxu1 %vm374_vm2, %v5422_v20  ;;  %v5426_v19 = vld [vmem:[%s9528_s1 + $0x470] sm:$0xff] }
 0x247   : > { %v8864_v52 = vadd.f32 %v2316_v40, %v8697_v55  ;;  %v2443_v9 = vpop.f32.mrf.mxu1  ;;  %v9589_v55 = vld [vmem:[#allocation11_spill] sm:$0xff] }
 0x248   : > { %v8867_v44 = vadd.f32 %v2443_v9, %v8491_v22  ;;  %v2320_v25 = vpop.f32.mrf.mxu0  ;;  %5443 = vmatmul.mubr.msk.f32.gmra.mxu0 %vm374_vm2, %v5425_v56 }
 0x249   : > { %v8871_v28 = vadd.f32 %v2320_v25, %v8713_v48  ;;  %v5853_v39 = vpop.f32.mrf.mxu1  ;;  %5988 = vmatmul.mubr.msk.f32.gmra.mxu1 %vm374_vm2, %v5423_v46  ;;  %4236 = vmatprep.mubr.f32.mxu0 %v9544_v11 }
 0x24a   : > { %v8879_v20 = vadd.f32 %v5853_v39, %v9589_v55  ;;  %v2322_v22 = vpop.f32.mrf.mxu0  ;;  %5990 = vmatprep.mubr.msk.f32.mxu1 %vm374_vm2, %v5424_v17  ;;  %v9591_v17 = vld [vmem:[#allocation3_spill] sm:$0xff] }
 0x24b   : > { %v8883_v38 = vadd.f32 %v2322_v22, %v8720_v23  ;;  %v2453_v48 = vpop.f32.mrf.mxu1  ;;  %v5427_v23 = vld [vmem:[%s9528_s1 + $0x478] sm:$0xff] }
 0x24c   : > { %v8886_v15 = vadd.f32 %v2453_v48, %v9590_v8  ;;  %v2326_v46 = vpop.f32.mrf.mxu0  ;;  %5444 = vmatmul.mubr.msk.f32.gmra.mxu0 %vm374_vm2, %v5426_v19 }
 0x24d   : > { %v8890_v42 = vadd.f32 %v2326_v46, %v8736_v30  ;;  %v5856_v12 = vpop.f32.mrf.mxu1  ;;  %5991 = vmatmul.mubr.msk.f32.gmra.mxu1 %vm374_vm2, %v5425_v56  ;;  %4242 = vmatprep.mubr.f32.mxu0 %v9544_v11 }
 0x24e   : > { %v8898_v51 = vadd.f32 %v5856_v12, %v9591_v17  ;;  %v2328_v40 = vpop.f32.mrf.mxu0  ;;  %5993 = vmatprep.mubr.msk.f32.mxu1 %vm374_vm2, %v5426_v19 }
 0x24f   : > { %v8902_v9 = vadd.f32 %v2328_v40, %v8743_v5  ;;  %v2463_v30 = vpop.f32.mrf.mxu1 }
 0x250   : > { %v8905_v25 = vadd.f32 %v2463_v30, %v8556_v29  ;;  %v2332_v56 = vpop.f32.mrf.mxu0  ;;  %5445 = vmatmul.mubr.msk.f32.gmra.mxu0 %vm374_vm2, %v5427_v23 }
 0x251   : > { %v8909_v11 = vadd.f32 %v2332_v56, %v8757_v7  ;;  %v5859_v39 = vpop.f32.mrf.mxu1  ;;  %5994 = vmatmul.mubr.msk.f32.gmra.mxu1 %vm374_vm2, %v5427_v23 }
 0x252   : > { %v8913_v55 = vadd.f32 %v5859_v39, %v8564_v26  ;;  %v2334_v19 = vpop.f32.mrf.mxu0 }
 0x253   : > { %v8916_v5 = vadd.f32 %v2334_v19, %v8765_v2  ;;  %v2473_v22 = vpop.f32.mrf.mxu1 }
 0x254   : > { %v8919_v29 = vadd.f32 %v2473_v22, %v8579_v54  ;;  %v5872_v48 = vpop.f32.mrf.mxu0 }
 0x255   : > { %v2720_v8 = vpop.f32.mrf.mxu1  ;;  %v8922_v46 = vadd.f32 %v5872_v48, %v8778_v6 }
 0x256   : > { %v8925_v7 = vadd.f32 %v2720_v8, %v8587_v33  ;;  %v2881_v12 = vpop.f32.mrf.mxu0 }
 0x257   : > { %v2722_v23 = vpop.f32.mrf.mxu1  ;;  %v8928_v26 = vadd.f32 %v2881_v12, %v8786_v16 }
 0x258   : > { %v8931_v2 = vadd.f32 %v2722_v23, %v8602_v61  ;;  %v5875_v17 = vpop.f32.mrf.mxu0 }
 0x259   : > { %v2726_v40 = vpop.f32.mrf.mxu1  ;;  %v8934_v54 = vadd.f32 %v5875_v17, %v8799_v59 }
 0x25a   : > { %v8937_v30 = vadd.f32 %v2726_v40, %v8610_v58  ;;  %v2891_v6 = vpop.f32.mrf.mxu0 }
 0x25b   : > { %v2728_v56 = vpop.f32.mrf.mxu1  ;;  %v8940_v33 = vadd.f32 %v2891_v6, %v8807_v41 }
 0x25c   : > { %v8943_v39 = vadd.f32 %v2728_v56, %v8625_v1  ;;  %v5878_v16 = vpop.f32.mrf.mxu0 }
 0x25d   : > { %v2732_v19 = vpop.f32.mrf.mxu1  ;;  %v8946_v61 = vadd.f32 %v5878_v16, %v8820_v45 }
 0x25e   : > { %v8949_v22 = vadd.f32 %v2732_v19, %v8633_v27  ;;  %v2901_v59 = vpop.f32.mrf.mxu0 }
 0x25f   : > { %v2734_v48 = vpop.f32.mrf.mxu1  ;;  %v8952_v58 = vadd.f32 %v2901_v59, %v8828_v10 }
 0x260   : > { %v8955_v8 = vadd.f32 %v2734_v48, %v8648_v62  ;;  %v5881_v41 = vpop.f32.mrf.mxu0 }
 0x261   : > { %v2738_v12 = vpop.f32.mrf.mxu1  ;;  %v8958_v1 = vadd.f32 %v5881_v41, %v8841_v43 }
 0x262   : > { %v8961_v23 = vadd.f32 %v2738_v12, %v8656_v14  ;;  %v2911_v45 = vpop.f32.mrf.mxu0 }
 0x263   : > { %v2740_v17 = vpop.f32.mrf.mxu1  ;;  %v8964_v27 = vadd.f32 %v2911_v45, %v8848_v24 }
 0x264   : > { %v8967_v40 = vadd.f32 %v2740_v17, %v8671_v21  ;;  %v5884_v10 = vpop.f32.mrf.mxu0 }
 0x265   : > { %v2744_v6 = vpop.f32.mrf.mxu1  ;;  %v8970_v62 = vadd.f32 %v5884_v10, %v8860_v63 }
 0x266   : > { %v8973_v56 = vadd.f32 %v2744_v6, %v8679_v57  ;;  %v2921_v43 = vpop.f32.mrf.mxu0 }
 0x267   : > { %v2746_v16 = vpop.f32.mrf.mxu1  ;;  %v8976_v14 = vadd.f32 %v2921_v43, %v8867_v44 }
 0x268   : > { %v8979_v19 = vadd.f32 %v2746_v16, %v8694_v37  ;;  %v5887_v24 = vpop.f32.mrf.mxu0 }
 0x269   : > { %v2750_v59 = vpop.f32.mrf.mxu1  ;;  %v8982_v21 = vadd.f32 %v5887_v24, %v8879_v20 }
 0x26a   : > { %v8985_v48 = vadd.f32 %v2750_v59, %v8702_v53  ;;  %v2931_v63 = vpop.f32.mrf.mxu0 }
 0x26b   : > { %v2752_v41 = vpop.f32.mrf.mxu1  ;;  %v8988_v57 = vadd.f32 %v2931_v63, %v8886_v15 }
 0x26c   : > { %v8991_v12 = vadd.f32 %v2752_v41, %v8717_v60  ;;  %v5890_v44 = vpop.f32.mrf.mxu0 }
 0x26d   : > { %v2756_v45 = vpop.f32.mrf.mxu1  ;;  %v8994_v37 = vadd.f32 %v5890_v44, %v8898_v51 }
 0x26e   : > { %v8997_v17 = vadd.f32 %v2756_v45, %v8725_v13  ;;  %v2941_v20 = vpop.f32.mrf.mxu0 }
 0x26f   : > { %v2758_v10 = vpop.f32.mrf.mxu1  ;;  %v9000_v53 = vadd.f32 %v2941_v20, %v8905_v25 }
 0x270   : > { %v9003_v6 = vadd.f32 %v2758_v10, %v8740_v34  ;;  %v5893_v15 = vpop.f32.mrf.mxu0 }
 0x271   : > { %v2762_v43 = vpop.f32.mrf.mxu1  ;;  %v9006_v60 = vadd.f32 %v5893_v15, %v8913_v55 }
 0x272   : > { %v9009_v16 = vadd.f32 %v2762_v43, %v8748_v4  ;;  %v2951_v51 = vpop.f32.mrf.mxu0 }
 0x273   : > { %v2764_v24 = vpop.f32.mrf.mxu1  ;;  %v9012_v13 = vadd.f32 %v2951_v51, %v8919_v29 }
 0x274   : > { %v9015_v59 = vadd.f32 %v2764_v24, %v8762_v36  ;;  %v3198_v25 = vpop.f32.mrf.mxu0 }
 0x275   : > { %v2768_v63 = vpop.f32.mrf.mxu1  ;;  %v9018_v34 = vadd.f32 %v3198_v25, %v8925_v7 }
 0x276   : > { %v2984_v41 = vadd.f32 %v2768_v63, %v8769_v49  ;;  %v3200_v55 = vpop.f32.mrf.mxu0 }
 0x277   : > { %v2770_v44 = vpop.f32.mrf.mxu1  ;;  %v9022_v4 = vadd.f32 %v3200_v55, %v8931_v2 }
 0x278   : > { %v2985_v45 = vadd.f32 %v2770_v44, %v8783_v35  ;;  %v3204_v20 = vpop.f32.mrf.mxu0 }
 0x279   : > { %v2774_v29 = vpop.f32.mrf.mxu1  ;;  %v9026_v10 = vadd.f32 %v3204_v20, %v8937_v30 }
 0x27a   : > { %v2987_v36 = vadd.f32 %v2774_v29, %v8790_v3  ;;  %v3206_v15 = vpop.f32.mrf.mxu0 }
 0x27b   : > { %v2776_v43 = vpop.f32.mrf.mxu1  ;;  %v9030_v7 = vadd.f32 %v3206_v15, %v8943_v39 }
 0x27c   : > { %v2988_v49 = vadd.f32 %v2776_v43, %v8804_v0  ;;  %v3210_v51 = vpop.f32.mrf.mxu0 }
 0x27d   : > { %v2780_v24 = vpop.f32.mrf.mxu1  ;;  %v9034_v2 = vadd.f32 %v3210_v51, %v8949_v22 }
 0x27e   : > { %v2990_v35 = vadd.f32 %v2780_v24, %v8811_v18  ;;  %v3212_v25 = vpop.f32.mrf.mxu0 }
 0x27f   : > { %v2782_v63 = vpop.f32.mrf.mxu1  ;;  %v9038_v30 = vadd.f32 %v3212_v25, %v8955_v8 }
 0x280   : > { %v2991_v3 = vadd.f32 %v2782_v63, %v8825_v32  ;;  %v3216_v55 = vpop.f32.mrf.mxu0 }
 0x281   : > { %v2786_v44 = vpop.f32.mrf.mxu1  ;;  %v9042_v39 = vadd.f32 %v3216_v55, %v8961_v23 }
 0x282   : > { %v2993_v0 = vadd.f32 %v2786_v44, %v8832_v31  ;;  %v3218_v20 = vpop.f32.mrf.mxu0 }
 0x283   : > { %v2788_v29 = vpop.f32.mrf.mxu1  ;;  %v9046_v22 = vadd.f32 %v3218_v20, %v8967_v40 }
 0x284   : > { %v2994_v18 = vadd.f32 %v2788_v29, %v8845_v47  ;;  %v3222_v15 = vpop.f32.mrf.mxu0 }
 0x285   : > { %v2792_v43 = vpop.f32.mrf.mxu1  ;;  %v9050_v8 = vadd.f32 %v3222_v15, %v8973_v56 }
 0x286   : > { %v2996_v32 = vadd.f32 %v2792_v43, %v8852_v50  ;;  %v3224_v51 = vpop.f32.mrf.mxu0 }
 0x287   : > { %v2794_v24 = vpop.f32.mrf.mxu1  ;;  %v9054_v23 = vadd.f32 %v3224_v51, %v8979_v19 }
 0x288   : > { %v2997_v31 = vadd.f32 %v2794_v24, %v8864_v52  ;;  %v3228_v25 = vpop.f32.mrf.mxu0 }
 0x289   : > { %v2798_v63 = vpop.f32.mrf.mxu1  ;;  %v9058_v40 = vadd.f32 %v3228_v25, %v8985_v48 }
 0x28a   : > { %v2999_v47 = vadd.f32 %v2798_v63, %v8871_v28  ;;  %v3230_v55 = vpop.f32.mrf.mxu0 }
 0x28b   : > { %v2800_v44 = vpop.f32.mrf.mxu1  ;;  %v9062_v56 = vadd.f32 %v3230_v55, %v8991_v12 }
 0x28c   : > { %v3000_v50 = vadd.f32 %v2800_v44, %v8883_v38  ;;  %v3234_v20 = vpop.f32.mrf.mxu0 }
 0x28d   : > { %v2804_v29 = vpop.f32.mrf.mxu1  ;;  %v9066_v19 = vadd.f32 %v3234_v20, %v8997_v17 }
 0x28e   : > { %v3002_v52 = vadd.f32 %v2804_v29, %v8890_v42  ;;  %v3236_v15 = vpop.f32.mrf.mxu0 }
 0x28f   : > { %v2806_v43 = vpop.f32.mrf.mxu1  ;;  %v9070_v48 = vadd.f32 %v3236_v15, %v9003_v6 }
 0x290   : > { %v3003_v28 = vadd.f32 %v2806_v43, %v8902_v9  ;;  %v3240_v51 = vpop.f32.mrf.mxu0 }
 0x291   : > { %v2810_v24 = vpop.f32.mrf.mxu1  ;;  %v9074_v12 = vadd.f32 %v3240_v51, %v9009_v16 }
 0x292   : > { %v3005_v38 = vadd.f32 %v2810_v24, %v8909_v11  ;;  %v3242_v25 = vpop.f32.mrf.mxu0 }
 0x293   : > { %v2812_v63 = vpop.f32.mrf.mxu1  ;;  %v9078_v17 = vadd.f32 %v3242_v25, %v9015_v59 }
 0x294   : > { %v3006_v42 = vadd.f32 %v2812_v63, %v8916_v5  ;;  %v3246_v55 = vpop.f32.mrf.mxu0 }
 0x295   : > { %v9081_v44 = vadd.f32 %v3246_v55, %v2984_v41  ;;  %v5906_v6 = vpop.f32.mrf.mxu1 }
 0x296   : > { %v9084_v9 = vadd.f32 %v5906_v6, %v8922_v46  ;;  %v3248_v20 = vpop.f32.mrf.mxu0 }
 0x297   : > { %v9086_v29 = vadd.f32 %v3248_v20, %v2985_v45  ;;  %v3359_v16 = vpop.f32.mrf.mxu1 }
 0x298   : > { %v3440_v11 = vadd.f32 %v3359_v16, %v8928_v26  ;;  %v3252_v15 = vpop.f32.mrf.mxu0 }
 0x299   : > { %v9089_v43 = vadd.f32 %v3252_v15, %v2987_v36  ;;  %v5909_v59 = vpop.f32.mrf.mxu1 }
 0x29a   : > { %v3449_v51 = vadd.f32 %v5909_v59, %v8934_v54  ;;  %v3254_v5 = vpop.f32.mrf.mxu0 }
 0x29b   : > { %v9092_v24 = vadd.f32 %v3254_v5, %v2988_v49  ;;  %v3369_v41 = vpop.f32.mrf.mxu1 }
 0x29c   : > { %v3446_v25 = vadd.f32 %v3369_v41, %v8940_v33  ;;  %v3258_v46 = vpop.f32.mrf.mxu0 }
 0x29d   : > { %v9095_v63 = vadd.f32 %v3258_v46, %v2990_v35  ;;  %v5912_v45 = vpop.f32.mrf.mxu1 }
 0x29e   : > { %v3455_v55 = vadd.f32 %v5912_v45, %v8946_v61  ;;  %v3260_v6 = vpop.f32.mrf.mxu0 }
 0x29f   : > { %v9098_v26 = vadd.f32 %v3260_v6, %v2991_v3  ;;  %v3379_v36 = vpop.f32.mrf.mxu1 }
 0x2a0   : > { %v3452_v20 = vadd.f32 %v3379_v36, %v8952_v58  ;;  %v3264_v16 = vpop.f32.mrf.mxu0 }
 0x2a1   : > { %v9101_v54 = vadd.f32 %v3264_v16, %v2993_v0  ;;  %v5915_v49 = vpop.f32.mrf.mxu1 }
 0x2a2   : > { %v3461_v15 = vadd.f32 %v5915_v49, %v8958_v1  ;;  %v3266_v59 = vpop.f32.mrf.mxu0 }
 0x2a3   : > { %v9104_v33 = vadd.f32 %v3266_v59, %v2994_v18  ;;  %v3389_v35 = vpop.f32.mrf.mxu1 }
 0x2a4   : > { %v3458_v5 = vadd.f32 %v3389_v35, %v8964_v27  ;;  %v3270_v41 = vpop.f32.mrf.mxu0 }
 0x2a5   : > { %v9107_v61 = vadd.f32 %v3270_v41, %v2996_v32  ;;  %v5918_v3 = vpop.f32.mrf.mxu1 }
 0x2a6   : > { %v3467_v46 = vadd.f32 %v5918_v3, %v8970_v62  ;;  %v3272_v45 = vpop.f32.mrf.mxu0 }
 0x2a7   : > { %v9110_v58 = vadd.f32 %v3272_v45, %v2997_v31  ;;  %v3399_v0 = vpop.f32.mrf.mxu1 }
 0x2a8   : > { %v3464_v6 = vadd.f32 %v3399_v0, %v8976_v14  ;;  %v3276_v36 = vpop.f32.mrf.mxu0 }
 0x2a9   : > { %9592 = vst [vmem:[#allocation4_spill] sm:$0xff] %v9110_v58  ;;  %v9113_v1 = vadd.f32 %v3276_v36, %v2999_v47  ;;  %v5921_v18 = vpop.f32.mrf.mxu1 }
 0x2aa   : > { %v3473_v16 = vadd.f32 %v5921_v18, %v8982_v21  ;;  %v3278_v49 = vpop.f32.mrf.mxu0 }
 0x2ab   : > { %9593 = vst [vmem:[#allocation5_spill] sm:$0xff] %v9113_v1  ;;  %v9116_v27 = vadd.f32 %v3278_v49, %v3000_v50  ;;  %v3409_v32 = vpop.f32.mrf.mxu1 }
 0x2ac   : > { %v3470_v59 = vadd.f32 %v3409_v32, %v8988_v57  ;;  %v3282_v35 = vpop.f32.mrf.mxu0 }
 0x2ad   : > { %9594 = vst [vmem:[#allocation6_spill] sm:$0xff] %v9116_v27  ;;  %v9119_v62 = vadd.f32 %v3282_v35, %v3002_v52  ;;  %v5924_v31 = vpop.f32.mrf.mxu1 }
 0x2ae   : > { %v3479_v41 = vadd.f32 %v5924_v31, %v8994_v37  ;;  %v3284_v3 = vpop.f32.mrf.mxu0 }
 0x2af   : > { %9595 = vst [vmem:[#allocation12_spill] sm:$0xff] %v9119_v62  ;;  %v9122_v14 = vadd.f32 %v3284_v3, %v3003_v28  ;;  %v3419_v47 = vpop.f32.mrf.mxu1 }
 0x2b0   : > { %v3476_v45 = vadd.f32 %v3419_v47, %v9000_v53  ;;  %v3288_v0 = vpop.f32.mrf.mxu0 }
 0x2b1   : > { %9596 = vst [vmem:[#allocation7_spill] sm:$0xff] %v9122_v14  ;;  %v9125_v21 = vadd.f32 %v3288_v0, %v3005_v38  ;;  %v5927_v50 = vpop.f32.mrf.mxu1 }
 0x2b2   : > { %v3485_v36 = vadd.f32 %v5927_v50, %v9006_v60  ;;  %v3290_v18 = vpop.f32.mrf.mxu0 }
 0x2b3   : > { %9597 = vst [vmem:[#allocation13_spill] sm:$0xff] %v9125_v21  ;;  %v9128_v57 = vadd.f32 %v3290_v18, %v3006_v42  ;;  %v3429_v52 = vpop.f32.mrf.mxu1 }
 0x2b4   : > { %v3482_v49 = vadd.f32 %v3429_v52, %v9012_v13  ;;  %v5940_v32 = vpop.f32.mrf.mxu0 }
 0x2b5   : > { %9598 = vst [vmem:[#allocation8_spill] sm:$0xff] %v9128_v57  ;;  %v3676_v37 = vpop.f32.mrf.mxu1  ;;  %v9132_v28 = vadd.f32 %v5940_v32, %v9084_v9 }
 0x2b6   : > { %v3837_v35 = vpop.f32.mrf.mxu0 }
 0x2b7   : > { %v3678_v31 = vpop.f32.mrf.mxu1  ;;  %v9134_v53 = vadd.f32 %v3837_v35, %v3440_v11 }
 0x2b8   : > { %v5943_v38 = vpop.f32.mrf.mxu0 }
 0x2b9   : > { %v3682_v3 = vpop.f32.mrf.mxu1  ;;  %v9136_v47 = vadd.f32 %v5943_v38, %v3449_v51 }
 0x2ba   : > { %v3847_v60 = vpop.f32.mrf.mxu0 }
 0x2bb   : > { %v3684_v0 = vpop.f32.mrf.mxu1  ;;  %v9138_v42 = vadd.f32 %v3847_v60, %v3446_v25 }
 0x2bc   : > { %v5946_v50 = vpop.f32.mrf.mxu0 }
 0x2bd   : > { %v3688_v18 = vpop.f32.mrf.mxu1  ;;  %v9140_v13 = vadd.f32 %v5946_v50, %v3455_v55 }
 0x2be   : > { %v3857_v52 = vpop.f32.mrf.mxu0 }
 0x2bf   : > { %v3690_v57 = vpop.f32.mrf.mxu1  ;;  %v9142_v9 = vadd.f32 %v3857_v52, %v3452_v20 }
 0x2c0   : > { %v5949_v32 = vpop.f32.mrf.mxu0 }
 0x2c1   : > { %v3694_v21 = vpop.f32.mrf.mxu1  ;;  %v9144_v11 = vadd.f32 %v5949_v32, %v3461_v15 }
 0x2c2   : > { %v3867_v35 = vpop.f32.mrf.mxu0 }
 0x2c3   : > { %v3696_v14 = vpop.f32.mrf.mxu1  ;;  %v9146_v51 = vadd.f32 %v3867_v35, %v3458_v5 }
 0x2c4   : > { %v9149_v38 = vadd.f32 %v3696_v14, %v9046_v22  ;;  %v5952_v25 = vpop.f32.mrf.mxu0 }
 0x2c5   : > { %v3700_v60 = vpop.f32.mrf.mxu1  ;;  %v9151_v62 = vadd.f32 %v5952_v25, %v3467_v46 }
 0x2c6   : > { %v3877_v55 = vpop.f32.mrf.mxu0 }
 0x2c7   : > { %9599 = vst [vmem:[#allocation9_spill] sm:$0xff] %v9151_v62  ;;  %v9153_v50 = vpop.f32.mrf.mxu1  ;;  %v9155_v20 = vadd.f32 %v3877_v55, %v3464_v6  ;;  %v3923_v62 = vadd.f32 %v3690_v57, %v9038_v30 }
 0x2c8   : > { %v5955_v52 = vpop.f32.mrf.mxu0 }
 0x2c9   : > { %9600 = vst [vmem:[#allocation14_spill] sm:$0xff] %v9155_v20  ;;  %v9157_v27 = vpop.f32.mrf.mxu1  ;;  %v9159_v15 = vadd.f32 %v5955_v52, %v3473_v16 }
 0x2ca   : > { %v3887_v32 = vpop.f32.mrf.mxu0 }
 0x2cb   : > { %9601 = vst [vmem:[#allocation15_spill] sm:$0xff] %v9159_v15  ;;  %v9161_v5 = vpop.f32.mrf.mxu1  ;;  %v9163_v35 = vadd.f32 %v3887_v32, %v3470_v59  ;;  %v3916_v32 = vadd.f32 %v3676_v37, %v9018_v34 }
 0x2cc   : > { %v5958_v22 = vpop.f32.mrf.mxu0 }
 0x2cd   : > { %9602 = vst [vmem:[#allocation16_spill] sm:$0xff] %v9163_v35  ;;  %v9165_v14 = vpop.f32.mrf.mxu1  ;;  %v9167_v46 = vadd.f32 %v5958_v22, %v3479_v41  ;;  %v3917_v41 = vadd.f32 %v3678_v31, %v9022_v4 }
 0x2ce   : > { %v3897_v25 = vpop.f32.mrf.mxu0 }
 0x2cf   : > { %9603 = vst [vmem:[#allocation17_spill] sm:$0xff] %v9167_v46  ;;  %v9169_v1 = vpop.f32.mrf.mxu1  ;;  %v9171_v6 = vadd.f32 %v3897_v25, %v3476_v45  ;;  %v9185_v25 = vpop.permute.xlu0 %4460 }
 0x2d0   : > { %v5961_v55 = vpop.f32.mrf.mxu0 }
 0x2d1   : > { %9604 = vst [vmem:[#allocation18_spill] sm:$0xff] %v9171_v6  ;;  %v9173_v20 = vpop.f32.mrf.mxu1  ;;  %v9175_v16 = vadd.f32 %v5961_v55, %v3485_v36  ;;  %v9189_v55 = vpop.permute.xlu1 %4465 }
 0x2d2   : > { %v3907_v52 = vpop.f32.mrf.mxu0 }
 0x2d3   : > { %9605 = vst [vmem:[#allocation19_spill] sm:$0xff] %v9175_v16  ;;  %v9177_v15 = vpop.f32.mrf.mxu1  ;;  %v9179_v59 = vadd.f32 %v3907_v52, %v3482_v49  ;;  %v3919_v16 = vadd.f32 %v3682_v3, %v9026_v10  ;;  %v3920_v52 = vadd.f32 %v3684_v0, %v9030_v7 }
 0x2d4   : > { %v4154_v35 = vpop.f32.mrf.mxu0 }
 0x2d5   : > { %9606 = vst [vmem:[#allocation10_spill] sm:$0xff] %v9179_v59  ;;  %v9183_v22 = vpop.f32.mrf.mxu1  ;;  %v4394_v46 = vadd.f32 %v4154_v35, %v3916_v32  ;;  %v3922_v35 = vadd.f32 %v3688_v18, %v9034_v2  ;;  %v9203_v7 = vpop.permute.xlu1 %4470 }
 0x2d6   : > { %v4156_v45 = vpop.f32.mrf.mxu0 }
 0x2d7   : > { %v9187_v6 = vpop.f32.mrf.mxu1  ;;  %v4395_v36 = vadd.f32 %v4156_v45, %v3917_v41  ;;  %v4538_v4 = vadd.f32 %v9185_v25, %v4394_v46 }
 0x2d8   : > { %v4160_v49 = vpop.f32.mrf.mxu0 }
 0x2d9   : > { %v9193_v34 = vpop.f32.mrf.mxu1  ;;  %v4397_v37 = vadd.f32 %v4160_v49, %v3919_v16  ;;  %v4539_v32 = vadd.f32 %v9185_v25, %v4395_v36  ;;  %v5463_v0 = vmul.f32 -1.442695, %v4538_v4  ;;  %v3925_v49 = vadd.f32 %v3694_v21, %v9042_v39  ;;  %v9215_v21 = vpop.permute.xlu0 %4475 }
 0x2da   : > { %v4162_v31 = vpop.f32.mrf.mxu0 }
 0x2db   : > { %v9198_v59 = vpop.f32.mrf.mxu1  ;;  %v4398_v41 = vadd.f32 %v4162_v31, %v3920_v52  ;;  %v4541_v46 = vadd.f32 %v9189_v55, %v4397_v37  ;;  %v5464_v2 = vmul.f32 -1.442695, %v4539_v32  ;;  %6028 = vpow2.f32 %v5463_v0 }
 0x2dc   : > { %v4166_v45 = vpop.f32.mrf.mxu0 }
 0x2dd   : > { %v9201_v10 = vpop.f32.mrf.mxu1  ;;  %v4400_v3 = vadd.f32 %v4166_v45, %v3922_v35  ;;  %v4542_v18 = vadd.f32 %v9189_v55, %v4398_v41  ;;  %v3928_v45 = vadd.f32 %v3700_v60, %v9050_v8  ;;  %v5466_v4 = vmul.f32 -1.442695, %v4541_v46 }
 0x2de   : > { %v4168_v16 = vpop.f32.mrf.mxu0  ;;  %6030 = vpow2.f32 %v5464_v2  ;;  %v3929_v8 = vadd.f32 %v9153_v50, %v9054_v23 }
 0x2df   : > { %v9208_v36 = vpop.f32.mrf.mxu1  ;;  %v4401_v52 = vadd.f32 %v4168_v16, %v3923_v62  ;;  %v4544_v31 = vadd.f32 %v9203_v7, %v4400_v3  ;;  %v5467_v58 = vmul.f32 -1.442695, %v4542_v18  ;;  %6032 = vpow2.f32 %v5466_v4  ;;  %v9226_v18 = vpop.permute.xlu1 %4480 }
 0x2e0   : > { %v4172_v30 = vpop.f32.mrf.mxu0 }
 0x2e1   : > { %v9211_v57 = vpop.f32.mrf.mxu1  ;;  %v4403_v35 = vadd.f32 %v4172_v30, %v3925_v49  ;;  %v4545_v39 = vadd.f32 %v9203_v7, %v4401_v52  ;;  %v5469_v41 = vmul.f32 -1.442695, %v4544_v31  ;;  %6034 = vpow2.f32 %v5467_v58 }
 0x2e2   : > { %v4174_v37 = vpop.f32.mrf.mxu0  ;;  %v3931_v31 = vadd.f32 %v9157_v27, %v9058_v40 }
 0x2e3   : > { %v9217_v32 = vpop.f32.mrf.mxu1  ;;  %v4404_v62 = vadd.f32 %v4174_v37, %v9149_v38  ;;  %v4547_v3 = vadd.f32 %v9215_v21, %v4403_v35  ;;  %v5470_v2 = vmul.f32 -1.442695, %v4545_v39  ;;  %6036 = vpow2.f32 %v5469_v41 }
 0x2e4   : > { %v4178_v16 = vpop.f32.mrf.mxu0  ;;  %v3932_v35 = vadd.f32 %v9161_v5, %v9062_v56  ;;  %v3934_v39 = vadd.f32 %v9165_v14, %v9066_v19  ;;  %v3935_v19 = vadd.f32 %v9169_v1, %v9070_v48  ;;  %v3938_v48 = vadd.f32 %v9177_v15, %v9078_v17 }
 0x2e5   : > { %v9223_v60 = vpop.f32.mrf.mxu1  ;;  %v4406_v0 = vadd.f32 %v4178_v16, %v3928_v45  ;;  %v4548_v46 = vadd.f32 %v9215_v21, %v4404_v62  ;;  %v5472_v30 = vmul.f32 -1.442695, %v4547_v3  ;;  %6038 = vpow2.f32 %v5470_v2  ;;  %v9239_v62 = vpop.permute.xlu0 %4485 }
 0x2e6   : > { %v4180_v49 = vpop.f32.mrf.mxu0 }
 0x2e7   : > { %v9228_v52 = vpop.f32.mrf.mxu1  ;;  %v4407_v38 = vadd.f32 %v4180_v49, %v3929_v8  ;;  %v4550_v23 = vadd.f32 %v9226_v18, %v4406_v0  ;;  %v5473_v58 = vmul.f32 -1.442695, %v4548_v46  ;;  %6040 = vpow2.f32 %v5472_v30 }
 0x2e8   : > { %v4184_v50 = vpop.f32.mrf.mxu0  ;;  %v6029_v46 = vpop.eup %6028  ;;  %v3937_v49 = vadd.f32 %v9173_v20, %v9074_v12 }
 0x2e9   : > { %v9235_v45 = vpop.f32.mrf.mxu1  ;;  %v4409_v4 = vadd.f32 %v4184_v50, %v3931_v31  ;;  %v4551_v40 = vadd.f32 %v9226_v18, %v4407_v38  ;;  %v5475_v3 = vmul.f32 -1.442695, %v4550_v23  ;;  %6042 = vpow2.f32 %v5473_v58  ;;  %v9252_v38 = vpop.permute.xlu1 %4490 }
 0x2ea   : > { %v4186_v37 = vpop.f32.mrf.mxu0  ;;  %v4694_v12 = vadd.f32 1.0, %v6029_v46  ;;  %v9266_v17 = vpop.permute.xlu0 %4495 }
 0x2eb   : > { %v9242_v27 = vpop.f32.mrf.mxu1  ;;  %v4410_v41 = vadd.f32 %v4186_v37, %v3932_v35  ;;  %v4553_v56 = vadd.f32 %v9239_v62, %v4409_v4  ;;  %v5476_v2 = vmul.f32 -1.442695, %v4551_v40  ;;  %v6031_v30 = vpop.eup %6030  ;;  %6044 = vpow2.f32 %v5475_v3 }
 0x2ec   : > { %v4190_v5 = vpop.f32.mrf.mxu0  ;;  %v6033_v40 = vpop.eup %6032 }
 0x2ed   : > { %v4554_v16 = vadd.f32 %v9239_v62, %v4410_v41  ;;  %v9246_v8 = vpop.f32.mrf.mxu1  ;;  %v4412_v0 = vadd.f32 %v4190_v5, %v3934_v39  ;;  %v5478_v23 = vmul.f32 -1.442695, %v4553_v56  ;;  %v4695_v41 = vadd.f32 1.0, %v6031_v30 }
 0x2ee   : > { %v4192_v14 = vpop.f32.mrf.mxu0  ;;  %6046 = vpow2.f32 %v5476_v2  ;;  %v6035_v5 = vpop.eup %6034  ;;  %v4697_v2 = vadd.f32 1.0, %v6033_v40 }
 0x2ef   : > { %v9254_v31 = vpop.f32.mrf.mxu1  ;;  %v4556_v50 = vadd.f32 %v9252_v38, %v4412_v0  ;;  %v4413_v35 = vadd.f32 %v4192_v14, %v3935_v19  ;;  %v5479_v1 = vmul.f32 -1.442695, %v4554_v16  ;;  %v3940_v0 = vadd.f32 %v9183_v22, %v9081_v44 }
 0x2f0   : > { %v4196_v4 = vpop.f32.mrf.mxu0  ;;  %6048 = vpow2.f32 %v5478_v23  ;;  %v6037_v19 = vpop.eup %6036  ;;  %v3941_v44 = vadd.f32 %v9187_v6, %v9086_v29  ;;  %v4698_v22 = vadd.f32 1.0, %v6035_v5 }
 0x2f1   : > { %v9259_v58 = vpop.f32.mrf.mxu1  ;;  %v4415_v37 = vadd.f32 %v4196_v4, %v3937_v49  ;;  %v4557_v20 = vadd.f32 %v9252_v38, %v4413_v35  ;;  %v5481_v15 = vmul.f32 -1.442695, %v4556_v50  ;;  %6050 = vpow2.f32 %v5479_v1 }
 0x2f2   : > { %v4198_v39 = vpop.f32.mrf.mxu0  ;;  %6052 = vrcp.f32 %v4694_v12  ;;  %v4700_v1 = vadd.f32 1.0, %v6037_v19  ;;  %v3943_v19 = vadd.f32 %v9193_v34, %v9089_v43  ;;  %v3944_v43 = vadd.f32 %v9198_v59, %v9092_v24 }
 0x2f3   : > { %v9262_v3 = vpop.f32.mrf.mxu1  ;;  %v4416_v56 = vadd.f32 %v4198_v39, %v3938_v48  ;;  %v5482_v14 = vmul.f32 -1.442695, %v4557_v20  ;;  %v4559_v46 = vadd.f32 %v9266_v17, %v4415_v37  ;;  %6054 = vrcp.f32 %v4695_v41  ;;  %v6039_v48 = vpop.eup %6038 }
 0x2f4   : > { %v4202_v16 = vpop.f32.mrf.mxu0  ;;  %6056 = vpow2.f32 %v5481_v15  ;;  %v9273_v20 = vpop.permute.xlu1 %4500 }
 0x2f5   : > { %v5974_v49 = vpop.f32.mrf.mxu1  ;;  %v4560_v30 = vadd.f32 %v9266_v17, %v4416_v56  ;;  %v4418_v35 = vadd.f32 %v4202_v16, %v3940_v0  ;;  %v6041_v12 = vpop.eup %6040  ;;  %6058 = vpow2.f32 %v5482_v14  ;;  %v5484_v39 = vmul.f32 -1.442695, %v4559_v46 }
 0x2f6   : > { %v4204_v4 = vpop.f32.mrf.mxu0  ;;  %v4399_v23 = vadd.f32 %v5974_v49, %v9132_v28  ;;  %6060 = vrcp.f32 %v4697_v2  ;;  %v6043_v41 = vpop.eup %6042  ;;  %v4701_v28 = vadd.f32 1.0, %v6039_v48  ;;  %v4703_v14 = vadd.f32 1.0, %v6041_v12 }
 0x2f7   : > { %v4315_v50 = vpop.f32.mrf.mxu1  ;;  %v4562_v40 = vadd.f32 %v9273_v20, %v4418_v35  ;;  %v4419_v56 = vadd.f32 %v4204_v4, %v3941_v44  ;;  %v5485_v29 = vmul.f32 -1.442695, %v4560_v30  ;;  %6062 = vrcp.f32 %v4698_v22  ;;  %v9285_v48 = vpop.permute.xlu0 %4505 }
 0x2f8   : > { %v4208_v37 = vpop.f32.mrf.mxu0  ;;  %v4396_v6 = vadd.f32 %v4315_v50, %v9134_v53  ;;  %v4543_v5 = vadd.f32 %v9189_v55, %v4399_v23  ;;  %6064 = vrcp.f32 %v4700_v1  ;;  %v6045_v46 = vpop.eup %6044  ;;  %v4704_v30 = vadd.f32 1.0, %v6043_v41 }
 0x2f9   : > { %v5977_v0 = vpop.f32.mrf.mxu1  ;;  %6066 = vpow2.f32 %v5484_v39  ;;  %v5487_v49 = vmul.f32 -1.442695, %v4562_v40  ;;  %v4563_v2 = vadd.f32 %v9273_v20, %v4419_v56  ;;  %v4421_v35 = vadd.f32 %v4208_v37, %v3943_v19 }
 0x2fa   : > { %v4210_v15 = vpop.f32.mrf.mxu0  ;;  %6068 = vpow2.f32 %v5485_v29  ;;  %v4540_v53 = vadd.f32 %v9185_v25, %v4396_v6  ;;  %v5468_v4 = vmul.f32 -1.442695, %v4543_v5  ;;  %v4405_v55 = vadd.f32 %v5977_v0, %v9136_v47 }
 0x2fb   : > { %v4325_v16 = vpop.f32.mrf.mxu1  ;;  %6070 = vrcp.f32 %v4701_v28  ;;  %v6047_v23 = vpop.eup %6046  ;;  %v4706_v34 = vadd.f32 1.0, %v6045_v46  ;;  %v5488_v1 = vmul.f32 -1.442695, %v4563_v2  ;;  %v4565_v37 = vadd.f32 %v9285_v48, %v4421_v35 }
 0x2fc   : > { %v4214_v44 = vpop.f32.mrf.mxu0  ;;  %6072 = vrcp.f32 %v4703_v14  ;;  %v5465_v25 = vmul.f32 -1.442695, %v4540_v53  ;;  %v4422_v39 = vadd.f32 %v4210_v15, %v3944_v43  ;;  %v4707_v40 = vadd.f32 1.0, %v6047_v23  ;;  %v9310_v43 = vpop.permute.xlu1 %4510 }
 0x2fd   : > { %v5980_v22 = vpop.f32.mrf.mxu1  ;;  %v6049_v50 = vpop.eup %6048  ;;  %6074 = vpow2.f32 %v5487_v49  ;;  %v4549_v56 = vadd.f32 %v9215_v21, %v4405_v55  ;;  %v4402_v24 = vadd.f32 %v4325_v16, %v9138_v42  ;;  %v3946_v19 = vadd.f32 %v9201_v10, %v9095_v63 }
 0x2fe   : > { %v6051_v12 = vpop.eup %6050  ;;  %6076 = vrcp.f32 %v4704_v30  ;;  %v4216_v59 = vpop.f32.mrf.mxu0  ;;  %v4709_v6 = vadd.f32 1.0, %v6049_v50  ;;  %v4411_v41 = vadd.f32 %v5980_v22, %v9140_v13  ;;  %v5490_v14 = vmul.f32 -1.442695, %v4565_v37 }
 0x2ff   : > { %v9288_v47 = vpop.eup %6052  ;;  %6078 = vpow2.f32 %v5468_v4  ;;  %v4335_v0 = vpop.f32.mrf.mxu1  ;;  %v4710_v5 = vadd.f32 1.0, %v6051_v12  ;;  %v4566_v21 = vadd.f32 %v9285_v48, %v4422_v39  ;;  %v5474_v16 = vmul.f32 -1.442695, %v4549_v56 }
 0x300   : > { %v9292_v29 = vpop.eup %6054  ;;  %6080 = vrcp.f32 %v4706_v34  ;;  %v4546_v46 = vadd.f32 %v9203_v7, %v4402_v24  ;;  %v4408_v49 = vadd.f32 %v4335_v0, %v9142_v9  ;;  %v4220_v13 = vpop.f32.mrf.mxu0  ;;  %v4424_v35 = vadd.f32 %v4214_v44, %v3946_v19 }
 0x301   : > { %v6057_v28 = vpop.eup %6056  ;;  %6082 = vpow2.f32 %v5488_v1  ;;  %v5983_v2 = vpop.f32.mrf.mxu1  ;;  %v4555_v63 = vadd.f32 %v9239_v62, %v4411_v41  ;;  %v3947_v22 = vadd.f32 %v9208_v36, %v9098_v26  ;;  %v5491_v7 = vmul.f32 -1.442695, %v4566_v21 }
 0x302   : > { %v6059_v15 = vpop.eup %6058  ;;  %6084 = vpow2.f32 %v5465_v25  ;;  %v4712_v53 = vadd.f32 1.0, %v6057_v28  ;;  %v4417_v9 = vadd.f32 %v5983_v2, %v9144_v11  ;;  %v5471_v34 = vmul.f32 -1.442695, %v4546_v46  ;;  %v4222_v62 = vpop.f32.mrf.mxu0 }
 0x303   : > { %v9298_v42 = vpop.eup %6060  ;;  %6086 = vrcp.f32 %v4707_v40  ;;  %v4713_v4 = vadd.f32 1.0, %v6059_v15  ;;  %v4552_v44 = vadd.f32 %v9226_v18, %v4408_v49  ;;  %v4568_v1 = vadd.f32 %v9310_v43, %v4424_v35  ;;  %v4345_v37 = vpop.f32.mrf.mxu1 }
 0x304   : > { %v9302_v30 = vpop.eup %6062  ;;  %6088 = vrcp.f32 %v4709_v6  ;;  %v5480_v12 = vmul.f32 -1.442695, %v4555_v63  ;;  %v4425_v25 = vadd.f32 %v4216_v59, %v3947_v22  ;;  %v3949_v11 = vadd.f32 %v9211_v57, %v9101_v54  ;;  %v4226_v6 = vpop.f32.mrf.mxu0 }
 0x305   : > { %v9305_v10 = vpop.eup %6064  ;;  %6090 = vrcp.f32 %v4710_v5  ;;  %v4561_v18 = vadd.f32 %v9266_v17, %v4417_v9  ;;  %v5477_v24 = vmul.f32 -1.442695, %v4552_v44  ;;  %v5493_v41 = vmul.f32 -1.442695, %v4568_v1  ;;  %v9329_v19 = vpop.permute.xlu0 %4515 }
 0x306   : > { %v6067_v55 = vpop.eup %6066  ;;  %6092 = vpow2.f32 %v5490_v14  ;;  %v4427_v0 = vadd.f32 %v4220_v13, %v3949_v11  ;;  %v4569_v28 = vadd.f32 %v9310_v43, %v4425_v25  ;;  %v4414_v54 = vadd.f32 %v4345_v37, %v9146_v51  ;;  %v5986_v21 = vpop.f32.mrf.mxu1  ;;  %v9608_v37 = vld [vmem:[#allocation9_spill] sm:$0xff] }
 0x307   : > { %v6069_v23 = vpop.eup %6068  ;;  %6094 = vpow2.f32 %v5474_v16  ;;  %v4715_v36 = vadd.f32 1.0, %v6067_v55  ;;  %v3950_v17 = vadd.f32 %v9217_v32, %v9104_v33  ;;  %v5486_v14 = vmul.f32 -1.442695, %v4561_v18  ;;  %v4228_v13 = vpop.f32.mrf.mxu0 }
 0x308   : > { %v9313_v50 = vpop.eup %6070  ;;  %6096 = vrcp.f32 %v4712_v53  ;;  %v4716_v40 = vadd.f32 1.0, %v6069_v23  ;;  %v3952_v46 = vadd.f32 %v9223_v60, %v9107_v61  ;;  %v4571_v51 = vadd.f32 %v9329_v19, %v4427_v0  ;;  %v4355_v60 = vpop.f32.mrf.mxu1 }
 0x309   : > { %v9316_v26 = vpop.eup %6072  ;;  %6098 = vrcp.f32 %v4713_v4  ;;  %v5494_v53 = vmul.f32 -1.442695, %v4569_v28  ;;  %v4428_v35 = vadd.f32 %v4222_v62, %v3950_v17  ;;  %v4558_v33 = vadd.f32 %v9252_v38, %v4414_v54  ;;  %v9343_v62 = vpop.permute.xlu1 %4520  ;;  %v9610_v54 = vld [vmem:[#allocation14_spill] sm:$0xff] }
 0x30a   : > { %v6075_v39 = vpop.eup %6074  ;;  %6100 = vpow2.f32 %v5491_v7  ;;  %v4430_v4 = vadd.f32 %v4226_v6, %v3952_v46  ;;  %v9607_v7 = vld [vmem:[#allocation4_spill] sm:$0xff]  ;;  %v5496_v23 = vmul.f32 -1.442695, %v4571_v51  ;;  %v9611_v51 = vld [vmem:[#allocation6_spill] sm:$0xff] }
 0x30b   : > { %v9321_v56 = vpop.eup %6076  ;;  %6102 = vpow2.f32 %v5471_v34  ;;  %v4718_v5 = vadd.f32 1.0, %v6075_v39  ;;  %v3953_v9 = vadd.f32 %v9228_v52, %v9607_v7  ;;  %v4232_v34 = vpop.f32.mrf.mxu0  ;;  %v4572_v38 = vadd.f32 %v9329_v19, %v4428_v35  ;;  %v9612_v35 = vld [vmem:[#allocation15_spill] sm:$0xff] }
 0x30c   : > { %v6079_v59 = vpop.eup %6078  ;;  %6104 = vpow2.f32 %v5480_v12  ;;  %v5483_v1 = vmul.f32 -1.442695, %v4558_v33  ;;  %v4574_v25 = vadd.f32 %v9343_v62, %v4430_v4  ;;  %v4423_v39 = vadd.f32 %v5986_v21, %v9608_v37  ;;  %v9614_v37 = vld [vmem:[#allocation7_spill] sm:$0xff] }
 0x30d   : > { %v9325_v57 = vpop.eup %6080  ;;  %6106 = vrcp.f32 %v4715_v36  ;;  %v4699_v49 = vadd.f32 1.0, %v6079_v59  ;;  %v4431_v11 = vadd.f32 %v4228_v13, %v3953_v9  ;;  %v4234_v59 = vpop.f32.mrf.mxu0  ;;  %v5497_v28 = vmul.f32 -1.442695, %v4572_v38 }
 0x30e   : > { %v6083_v15 = vpop.eup %6082  ;;  %6108 = vrcp.f32 %v4716_v40  ;;  %v5989_v40 = vpop.f32.mrf.mxu1  ;;  %v3956_v13 = vadd.f32 %v9242_v27, %v9611_v51  ;;  %v9613_v27 = vld [vmem:[#allocation12_spill] sm:$0xff] }
 0x30f   : > { %v6085_v16 = vpop.eup %6084  ;;  %6110 = vpow2.f32 %v5477_v24  ;;  %v4719_v63 = vadd.f32 1.0, %v6083_v15  ;;  %v9609_v24 = vld [vmem:[#allocation5_spill] sm:$0xff]  ;;  %v4575_v17 = vadd.f32 %v9343_v62, %v4431_v11  ;;  %v4429_v33 = vadd.f32 %v5989_v40, %v9612_v35  ;;  %v9617_v51 = vld [vmem:[#allocation16_spill] sm:$0xff] }
 0x310   : > { %v9334_v2 = vpop.eup %6086  ;;  %6112 = vpow2.f32 %v5493_v41  ;;  %v4696_v61 = vadd.f32 1.0, %v6085_v16  ;;  %v3955_v0 = vadd.f32 %v9235_v45, %v9609_v24  ;;  %v4567_v45 = vadd.f32 %v9285_v48, %v4423_v39  ;;  %v4365_v46 = vpop.f32.mrf.mxu1 }
 0x311   : > { %v9337_v32 = vpop.eup %6088  ;;  %6114 = vrcp.f32 %v4718_v5  ;;  %v4420_v5 = vadd.f32 %v4355_v60, %v9610_v54  ;;  %v4434_v9 = vadd.f32 %v4234_v59, %v3956_v13  ;;  %v3959_v39 = vadd.f32 %v9254_v31, %v9614_v37  ;;  %v9392_v54 = vpop.permute.xlu1 %4530  ;;  %v9429_v37 = vld [vmem:[%s9385_s14 + $0x40] sm:$0xff] }
 0x312   : > { %v9339_v55 = vpop.eup %6090  ;;  %6116 = vpow2.f32 %v5486_v14  ;;  %v4433_v14 = vadd.f32 %v4232_v34, %v3955_v0  ;;  %v3958_v34 = vadd.f32 %v9246_v8, %v9613_v27  ;;  %v5992_v38 = vpop.f32.mrf.mxu1  ;;  %v4426_v13 = vadd.f32 %v4365_v46, %v9617_v51 }
 0x313   : > { %v6093_v22 = vpop.eup %6092  ;;  %6118 = vrcp.f32 %v4699_v49 }
 0x314   : > { %v6095_v44 = vpop.eup %6094  ;;  %6120 = vpow2.f32 %v5494_v53  ;;  %v4721_v52 = vadd.f32 1.0, %v6093_v22  ;;  %v4564_v22 = vadd.f32 %v9273_v20, %v4420_v5  ;;  %v4573_v20 = vadd.f32 %v9329_v19, %v4429_v33  ;;  %v9615_v19 = vld [vmem:[#allocation17_spill] sm:$0xff] }
 0x315   : > { %v9346_v12 = vpop.eup %6096  ;;  %6122 = vrcp.f32 %v4719_v63  ;;  %v4705_v6 = vadd.f32 1.0, %v6095_v44  ;;  %v4238_v63 = vpop.f32.mrf.mxu0  ;;  %v5492_v44 = vmul.f32 -1.442695, %v4567_v45  ;;  %v4435_v0 = vadd.f32 %v5992_v38, %v9615_v19  ;;  %v4814_v45 = vld [vmem:[%s9385_s14] sm:$0xff]  ;;  %v4820_v19 = vld [vmem:[%s9385_s14 + $0x30] sm:$0xff] }
 0x316   : > { %v9349_v36 = vpop.eup %6098  ;;  %6124 = vrcp.f32 %v4696_v61  ;;  %v4526_v61 = vpop.permute.xlu0 %4525  ;;  %v5489_v40 = vmul.f32 -1.442695, %v4564_v22  ;;  %v5498_v5 = vmul.f32 -1.442695, %v4573_v20  ;;  %v4826_v46 = vmul.f32 %v9325_v57, %v4814_v45  ;;  %v9423_v57 = vld [vmem:[%s9385_s14 + $0x10] sm:$0xff] }
 0x317   : > { %v6101_v18 = vpop.eup %6100  ;;  %6126 = vpow2.f32 %v5496_v23  ;;  %v4577_v48 = vadd.f32 %v4526_v61, %v4433_v14  ;;  %v4240_v11 = vpop.f32.mrf.mxu0  ;;  %v4578_v8 = vadd.f32 %v4526_v61, %v4434_v9  ;;  %v9616_v14 = vld [vmem:[#allocation13_spill] sm:$0xff]  ;;  %v4579_v33 = vadd.f32 %v4526_v61, %v4435_v0  ;;  %v9409_v61 = vld [vmem:[%s9385_s14 + $0x28] sm:$0xff] }
 0x318   : > { %v6103_v41 = vpop.eup %6102  ;;  %6128 = vpow2.f32 %v5483_v1  ;;  %v4722_v21 = vadd.f32 1.0, %v6101_v18  ;;  %v4436_v18 = vadd.f32 %v4238_v63, %v3958_v34  ;;  %v4437_v31 = vadd.f32 %v4240_v11, %v3959_v39  ;;  %v9618_v63 = vld [vmem:[#allocation18_spill] sm:$0xff]  ;;  %v4815_v34 = vld [vmem:[%s9385_s14 + $0x8] sm:$0xff]  ;;  %v9426_v11 = vld [vmem:[%s9385_s14 + $0x58] sm:$0xff] }
 0x319   : > { %v6105_v15 = vpop.eup %6104  ;;  %6130 = vtanh.f32 %v4574_v25  ;;  %v4702_v53 = vadd.f32 1.0, %v6103_v41  ;;  %v4375_v41 = vpop.f32.mrf.mxu1  ;;  %v9620_v0 = vld [vmem:[#allocation19_spill] sm:$0xff] }
 0x31a   : > { %v9356_v16 = vpop.eup %6106  ;;  %6132 = vrcp.f32 %v4721_v52  ;;  %v4711_v60 = vadd.f32 1.0, %v6105_v15  ;;  %v4244_v15 = vpop.f32.mrf.mxu0  ;;  %v4581_v22 = vadd.f32 %v9392_v54, %v4437_v31 }
 0x31b   : > { %v9359_v49 = vpop.eup %6108  ;;  %6134 = vrcp.f32 %v4705_v6 }
 0x31c   : > { %v6111_v4 = vpop.eup %6110  ;;  %6136 = vpow2.f32 %v5497_v28 }
 0x31d   : > { %v9365_v7 = vpop.eup %6112  ;;  %6138 = vtanh.f32 %v4575_v17  ;;  %v4708_v25 = vadd.f32 1.0, %v6111_v4  ;;  %v4432_v4 = vadd.f32 %v4375_v41, %v9618_v63  ;;  %v9439_v41 = vld [vmem:[%s9385_s14 + $0x38] sm:$0xff] }
 0x31e   : > { %v9370_v23 = vpop.eup %6114  ;;  %6140 = vrcp.f32 %v4722_v21  ;;  %v3961_v21 = vadd.f32 %v9259_v58, %v9616_v14 }
 0x31f   : > { %v6117_v1 = vpop.eup %6116  ;;  %6142 = vrcp.f32 %v4702_v53  ;;  %v4580_v53 = vadd.f32 %v9392_v54, %v4436_v18  ;;  %v4817_v18 = vld [vmem:[%s9385_s14 + $0x18] sm:$0xff] }
 0x320   : > { %v9375_v52 = vpop.eup %6118  ;;  %6144 = vrcp.f32 %v4711_v60  ;;  %v4717_v59 = vadd.f32 1.0, %v6117_v1  ;;  %v4439_v58 = vadd.f32 %v4244_v15, %v3961_v21  ;;  %v9619_v1 = vld [vmem:[#allocation8_spill] sm:$0xff]  ;;  %v9442_v15 = vld [vmem:[%s9385_s14 + $0x48] sm:$0xff] }
 0x321   : > { %v9379_v24 = vpop.eup %6120  ;;  %6146 = vtanh.f32 %v4577_v48  ;;  %v5995_v48 = vpop.f32.mrf.mxu1  ;;  %v9445_v21 = vld [vmem:[%s9385_s14 + $0x50] sm:$0xff] }
 0x322   : > { %v9388_v6 = vpop.eup %6122  ;;  %6148 = vpow2.f32 %v5492_v44  ;;  %v4246_v44 = vpop.f32.mrf.mxu0 }
 0x323   : > { %v9390_v28 = vpop.eup %6124  ;;  %6150 = vrcp.f32 %v4708_v25  ;;  %v3962_v25 = vadd.f32 %v9262_v3, %v9619_v1  ;;  %v4536_v3 = vpop.permute.xlu0 %4535 }
 0x324   : > { %v9394_v17 = vpop.eup %6126  ;;  %6152 = vpow2.f32 %v5489_v40  ;;  %v4385_v45 = vpop.f32.mrf.mxu1 }
 0x325   : > { %v6129_v35 = vpop.eup %6128  ;;  %6154 = vtanh.f32 %v4578_v8  ;;  %v4818_v8 = vld [vmem:[%s9385_s14 + $0x20] sm:$0xff]  ;;  %v4440_v14 = vadd.f32 %v4246_v44, %v3962_v25 }
 0x326   : > { %v6131_v60 = vpop.eup %6130  ;;  %6156 = vrcp.f32 %v4717_v59  ;;  %v4714_v20 = vadd.f32 1.0, %v6129_v35  ;;  %v4441_v59 = vadd.f32 %v5995_v48, %v9620_v0 }
 0x327   : > { %v9403_v9 = vpop.eup %6132  ;;  %v4838_v27 = vmul.f32 %v6131_v60, %v9288_v47  ;;  %6158 = vpow2.f32 %v5498_v5  ;;  %v4570_v47 = vadd.f32 %v9310_v43, %v4426_v13  ;;  %v4576_v43 = vadd.f32 %v9343_v62, %v4432_v4  ;;  %v9621_v60 = vld [vmem:[#allocation10_spill] sm:$0xff] }
 0x328   : > { %v9411_v38 = vpop.eup %6134  ;;  %6160 = vtanh.f32 %v4580_v53  ;;  %v4583_v5 = vadd.f32 %v4536_v3, %v4439_v58  ;;  %v4827_v13 = vmul.f32 %v9334_v2, %v4815_v34  ;;  %v4585_v4 = vadd.f32 %v4536_v3, %v4441_v59 }
 0x329   : > { %v9431_v39 = vpop.eup %6136  ;;  %v4850_v40 = vadd.f32 %v4838_v27, %v4826_v46  ;;  %6162 = vtanh.f32 %v4579_v33  ;;  %v5495_v35 = vmul.f32 -1.442695, %v4570_v47  ;;  %v4584_v48 = vadd.f32 %v4536_v3, %v4440_v14 }
 0x32a   : > { %v6139_v31 = vpop.eup %6138  ;;  %6164 = vtanh.f32 %v4581_v22  ;;  %v4438_v22 = vadd.f32 %v4385_v45, %v9621_v60  ;;  %v4829_v2 = vmul.f32 %v9337_v32, %v4817_v18  ;;  %v4724_v34 = vadd.f32 1.0, %v9365_v7 }
 0x32b   : > { %v9447_v51 = vpop.eup %6140  ;;  %6166 = vtanh.f32 %v4850_v40  ;;  %v4839_v62 = vmul.f32 %v6139_v31, %v9292_v29  ;;  %4899 = vst [vmem:[%s9419_s17] sm:$0xff] %v4850_v40  ;;  %v4725_v47 = vadd.f32 1.0, %v9379_v24  ;;  %v4830_v32 = vmul.f32 %v9339_v55, %v4818_v8 }
 0x32c   : > { %v9452_v53 = vpop.eup %6142  ;;  %6168 = vrcp.f32 %v4714_v20  ;;  %v4582_v25 = vadd.f32 %v9392_v54, %v4438_v22  ;;  %v4727_v7 = vadd.f32 1.0, %v9394_v17  ;;  %v4832_v59 = vmul.f32 %v9346_v12, %v4820_v19 }
 0x32d   : > { %v6145_v33 = vpop.eup %6144  ;;  %v4851_v63 = vadd.f32 %v4839_v62, %v4827_v13  ;;  %6170 = vtanh.f32 %v4576_v43  ;;  %v4833_v12 = vmul.f32 %v9349_v36, %v9439_v41 }
 0x32e   : > { %v6147_v58 = vpop.eup %6146  ;;  %6172 = vtanh.f32 %v4583_v5  ;;  %v4831_v0 = vmul.f32 %v6145_v33, %v9409_v61 }
 0x32f   : > { %v6149_v46 = vpop.eup %6148  ;;  %6174 = vtanh.f32 %v4851_v63  ;;  %v4841_v29 = vmul.f32 %v6147_v58, %v9298_v42  ;;  %4900 = vst [vmem:[%s9419_s17 + $0x8] sm:$0xff] %v4851_v63 }
 0x330   : > { %v6151_v27 = vpop.eup %6150  ;;  %6176 = vpow2.f32 %v5495_v35  ;;  %v4723_v43 = vadd.f32 1.0, %v6149_v46  ;;  %v4728_v35 = vadd.f32 1.0, %v9431_v39 }
 0x331   : > { %v6153_v44 = vpop.eup %6152  ;;  %v4853_v1 = vadd.f32 %v4841_v29, %v4829_v2  ;;  %6178 = vtanh.f32 %v4585_v4  ;;  %v4828_v5 = vmul.f32 %v6151_v27, %v9423_v57 }
 0x332   : > { %v6155_v20 = vpop.eup %6154  ;;  %6180 = vtanh.f32 %v4584_v48  ;;  %v4720_v45 = vadd.f32 1.0, %v6153_v44 }
 0x333   : > { %v6157_v3 = vpop.eup %6156  ;;  %6182 = vtanh.f32 %v4853_v1  ;;  %v4842_v42 = vmul.f32 %v6155_v20, %v9302_v30  ;;  %4902 = vst [vmem:[%s9419_s17 + $0x18] sm:$0xff] %v4853_v1 }
 0x334   : > { %v6159_v40 = vpop.eup %6158  ;;  %6184 = vrcp.f32 %v4724_v34 }
 0x335   : > { %v6161_v18 = vpop.eup %6160  ;;  %v4854_v54 = vadd.f32 %v4842_v42, %v4830_v32  ;;  %6186 = vtanh.f32 %v4582_v25  ;;  %v4729_v60 = vadd.f32 1.0, %v6159_v40 }
 0x336   : > { %v6163_v24 = vpop.eup %6162  ;;  %6188 = vrcp.f32 %v4725_v47  ;;  %v4844_v55 = vmul.f32 %v6161_v18, %v9305_v10 }
 0x337   : > { %v6165_v30 = vpop.eup %6164  ;;  %6190 = vtanh.f32 %v4854_v54  ;;  %v4843_v8 = vmul.f32 %v6163_v24, %v9375_v52  ;;  %4903 = vst [vmem:[%s9419_s17 + $0x20] sm:$0xff] %v4854_v54 }
 0x338   : > { %v6167_v17 = vpop.eup %6166  ;;  %6192 = vrcp.f32 %v4727_v7  ;;  %v4856_v61 = vadd.f32 %v4844_v55, %v4832_v59  ;;  %v4845_v10 = vmul.f32 %v6165_v30, %v9313_v50 }
 0x339   : > { %v6169_v19 = vpop.eup %6168  ;;  %v4874_v52 = vmul.f32 %v6167_v17, %v9370_v23  ;;  %6194 = vrcp.f32 %v4723_v43  ;;  %v4855_v31 = vadd.f32 %v4843_v8, %v4831_v0  ;;  %v4835_v23 = vmul.f32 %v9356_v16, %v9442_v15 }
 0x33a   : > { %v6171_v14 = vpop.eup %6170  ;;  %6196 = vtanh.f32 %v4856_v61  ;;  %v4857_v13 = vadd.f32 %v4845_v10, %v4833_v12  ;;  %4905 = vst [vmem:[%s9419_s17 + $0x30] sm:$0xff] %v4856_v61 }
 0x33b   : > { %v6173_v62 = vpop.eup %6172  ;;  %4886 = vst [vmem:[%s9474_s22] sm:$0xff] %v4874_v52  ;;  %6198 = vtanh.f32 %v4855_v31  ;;  %v4840_v36 = vmul.f32 %v6171_v14, %v9390_v28  ;;  %4904 = vst.msk [vmem:[%s9419_s17 + $0x28] sm:$0xff] %vm4888_vm10, %v4855_v31  ;;  %v4837_v28 = vmul.f32 %v6157_v3, %v9426_v11 }
 0x33c   : > { %v6175_v50 = vpop.eup %6174  ;;  %6200 = vtanh.f32 %v4857_v13  ;;  %v4847_v57 = vmul.f32 %v6173_v62, %v9316_v26  ;;  %4906 = vst [vmem:[%s9419_s17 + $0x38] sm:$0xff] %v4857_v13 }
 0x33d   : > { %v6177_v41 = vpop.eup %6176  ;;  %v4875_v33 = vmul.f32 %v6175_v50, %v9388_v6  ;;  %v4852_v63 = vadd.f32 %v4840_v36, %v4828_v5  ;;  %6202 = vrcp.f32 %v4720_v45  ;;  %v4836_v6 = vmul.f32 %v9359_v49, %v9445_v21 }
 0x33e   : > { %v6179_v4 = vpop.eup %6178  ;;  %v4859_v22 = vadd.f32 %v4847_v57, %v4835_v23  ;;  %v4726_v2 = vadd.f32 1.0, %v6177_v41 }
 0x33f   : > { %v6181_v58 = vpop.eup %6180  ;;  %4887 = vst [vmem:[%s9474_s22 + $0x8] sm:$0xff] %v4875_v33  ;;  %6204 = vtanh.f32 %v4852_v63  ;;  %v4849_v16 = vmul.f32 %v6179_v4, %v9411_v38  ;;  %4901 = vst.msk [vmem:[%s9419_s17 + $0x10] sm:$0xff] %vm4888_vm10, %v4852_v63  ;;  %v4834_v38 = vmul.f32 %v6169_v19, %v9429_v37 }
 0x340   : > { %v6183_v26 = vpop.eup %6182  ;;  %6206 = vtanh.f32 %v4859_v22  ;;  %v4848_v11 = vmul.f32 %v6181_v58, %v9321_v56  ;;  %4908 = vst [vmem:[%s9419_s17 + $0x48] sm:$0xff] %v4859_v22 }
 0x341   : > { %v6185_v39 = vpop.eup %6184  ;;  %6208 = vrcp.f32 %v4728_v35  ;;  %v4877_v15 = vmul.f32 %v6183_v26, %v9403_v9  ;;  %v4861_v48 = vadd.f32 %v4849_v16, %v4837_v28 }
 0x342   : > { %v6187_v46 = vpop.eup %6186  ;;  %6210 = vrcp.f32 %v4729_v60  ;;  %v4860_v29 = vadd.f32 %v4848_v11, %v4836_v6 }
 0x343   : > { %v6189_v27 = vpop.eup %6188  ;;  %4890 = vst [vmem:[%s9474_s22 + $0x18] sm:$0xff] %v4877_v15  ;;  %6212 = vtanh.f32 %v4861_v48  ;;  %v4846_v56 = vmul.f32 %v6187_v46, %v9452_v53  ;;  %4910 = vst.msk [vmem:[%s9419_s17 + $0x58] sm:$0xff] %vm4888_vm10, %v4861_v48 }
 0x344   : > { %v6191_v49 = vpop.eup %6190  ;;  %6214 = vtanh.f32 %v4860_v29  ;;  %4909 = vst [vmem:[%s9419_s17 + $0x50] sm:$0xff] %v4860_v29 }
 0x345   : > { %v6193_v9 = vpop.eup %6192  ;;  %v4878_v37 = vmul.f32 %v6191_v49, %v9447_v51  ;;  %v4858_v21 = vadd.f32 %v4846_v56, %v4834_v38  ;;  %6216 = vrcp.f32 %v4726_v2 }
 0x346   : > { %v6195_v34 = vpop.eup %6194 }
 0x347   : > { %v6197_v44 = vpop.eup %6196  ;;  %4891 = vst [vmem:[%s9474_s22 + $0x20] sm:$0xff] %v4878_v37  ;;  %6218 = vtanh.f32 %v4858_v21  ;;  %4907 = vst.msk [vmem:[%s9419_s17 + $0x40] sm:$0xff] %vm4888_vm10, %v4858_v21 }
 0x348   : > { %v6199_v53 = vpop.eup %6198  ;;  %v4880_v1 = vmul.f32 %v6197_v44, %v6185_v39 }
 0x349   : > { %v6201_v25 = vpop.eup %6200  ;;  %v4879_v20 = vmul.f32 %v6199_v53, %v6195_v34 }
 0x34a   : > { %4893 = vst [vmem:[%s9474_s22 + $0x30] sm:$0xff] %v4880_v1  ;;  %v4881_v47 = vmul.f32 %v6201_v25, %v6189_v27  ;;  %v6203_v3 = vpop.eup %6202 }
 0x34b   : > { %4892 = vst.msk [vmem:[%s9474_s22 + $0x28] sm:$0xff] %vm4888_vm10, %v4879_v20 }
 0x34c   : > { %v6205_v51 = vpop.eup %6204  ;;  %4894 = vst [vmem:[%s9474_s22 + $0x38] sm:$0xff] %v4881_v47 }
 0x34d   : > { %v6207_v32 = vpop.eup %6206  ;;  %v4876_v42 = vmul.f32 %v6205_v51, %v6203_v3 }
 0x34e   : > { %v6209_v40 = vpop.eup %6208  ;;  %v4883_v7 = vmul.f32 %v6207_v32, %v6193_v9 }
 0x34f   : > { %v6211_v18 = vpop.eup %6210  ;;  %4889 = vst.msk [vmem:[%s9474_s22 + $0x10] sm:$0xff] %vm4888_vm10, %v4876_v42 }
 0x350   : > { %v6213_v43 = vpop.eup %6212  ;;  %4896 = vst [vmem:[%s9474_s22 + $0x48] sm:$0xff] %v4883_v7 }
 0x351   : > { %v6215_v54 = vpop.eup %6214  ;;  %v4885_v0 = vmul.f32 %v6213_v43, %v6211_v18 }
 0x352   : > { %v4884_v24 = vmul.f32 %v6215_v54, %v6209_v40  ;;  %v6217_v59 = vpop.eup %6216 }
 0x353   : > { %4898 = vst.msk [vmem:[%s9474_s22 + $0x58] sm:$0xff] %vm4888_vm10, %v4885_v0 }
 0x354   : > { %v6219_v55 = vpop.eup %6218  ;;  %4897 = vst [vmem:[%s9474_s22 + $0x50] sm:$0xff] %v4884_v24 }
 0x355   : > { %v4882_v30 = vmul.f32 %v6219_v55, %v6217_v59 }
 0x357   : > { %4895 = vst.msk [vmem:[%s9474_s22 + $0x40] sm:$0xff] %vm4888_vm10, %v4882_v30 }
 0x358 PF: > { %s16_s18 = sadd.s32 1, %s6229_s18  }
 0x359   : > { %p13_p4 = scmp.ge.s32.totalorder %s16_s18, 4  }
 0x35b   :  { %15 = sbr.rel (!%p13_p4) target bundleno = 1 (0x1), region = 89 }

</bundles_post_ra>
